<compile_context>
chip_gen: v7x
topology: tpu7x:2x2x1
jax: 0.10.0
libtpu: 0.0.40
codegen_flags: <defaults>
</compile_context>

<pallas_src>
import functools

import jax
import jax.numpy as jnp
from jax.experimental import pallas as pl
from jax.experimental.pallas import tpu as pltpu


# ----------------------------------------------------------------------------
# Fused Pallas kernel: LSTM stack + fc_mean/fc_var + reparameterize + KL loss
# ----------------------------------------------------------------------------
def vae_encoder_kernel(emb_ref, h0_ref, wih_ref, whh_ref, b_ref,
                       wmv_ref, bmv_ref, eps_ref,
                       z_ref, hn_ref, cn_ref, loss_ref,
                       gxbuf,
                       *, num_layers, seq, batch, bpad, H, rep, fuse_dirs):
  """Whole encoder in one kernel invocation (shapes tiny & static).

  emb_ref : (seq*bpad, 2H)  bf16  embedded tokens, time-major, batch padded to
                                  bpad sublanes, lanes [H:2H] zero (layer-0 K pad)
  h0_ref  : (bpad, H)       f32   condition embedding (h0 == c0 for all layers/dirs)
  wih_ref : (L, 2H, 8H)     bf16  input->gate weights, fwd gates [:4H], bwd [4H:]
                                  (layer-0 rows [H:2H] are zero padding)
  whh_ref : (L, 2, H, 4H)   bf16  recurrent weights per direction
  b_ref   : (L, 1, 8H)      f32   b_ih + b_hh, fwd|bwd concatenated
  wmv_ref : (2H, 2*rep)     bf16  [fc_mean_w | fc_var_w]
  bmv_ref : (1, 2*rep)      f32   [fc_mean_b | fc_var_b]
  eps_ref : (seq*bpad, rep) f32   pre-drawn N(0,1) noise (padded rows are zero)
  z_ref   : (seq*bpad, rep) f32
  hn_ref  : (L*2, bpad, H)  f32   final hidden states (PyTorch ordering l*2+d)
  cn_ref  : (L*2, bpad, H)  f32
  loss_ref: (1, 1)          f32   SMEM scalar: -0.5*mean(1+logvar-mu^2-exp(logvar))
  gxbuf   : (seq, bpad, 8H) f32   VMEM staging for the hoisted input projection
  """
  f32 = jnp.float32
  bf16 = jnp.bfloat16
  G4 = 4 * H
  n = seq * bpad

  h0 = h0_ref[...]                                          # (bpad, H) f32

  def cell(h, c, whh, gx_t):
    # Recurrent matmul only (input projection already folded into gx_t).
    # NOTE: bf16 MXU operands with f32 accumulation; cell state stays f32.
    g = jnp.dot(h.astype(bf16), whh, preferred_element_type=f32) + gx_t
    sg = jax.nn.sigmoid(g)
    tg = jnp.tanh(g)
    c_new = sg[:, H:2 * H] * c + sg[:, 0:H] * tg[:, 2 * H:3 * H]
    h_new = sg[:, 3 * H:4 * H] * jnp.tanh(c_new)
    return h_new, c_new

  x_in = emb_ref[...]                                       # (n, 2H) bf16
  for l in range(num_layers):
    # Hoisted input projection: one MXU matmul per layer covers the whole
    # sequence, both directions and the bias.  Staged into a (seq, bpad, 8H)
    # scratch so per-step reads below are leading-index whole-tile loads.
    gx = jnp.dot(x_in, wih_ref[l], preferred_element_type=f32) + b_ref[l]
    gxbuf[...] = gx.reshape(seq, bpad, 8 * H)

    h_f = h0
    c_f = h0
    h_b = h0
    c_b = h0
    out_f = [None] * seq
    out_b = [None] * seq

    if fuse_dirs:
      # v6e / v7x (256-wide MXU): one block-diagonal (bpad,2H)@(2H,8H) bf16
      # matmul per step replaces the two per-direction 128-wide pushes.
      # TODO(synk): on v7x at larger seq/batch/H the two directions could be
      # sharded across the 2 TensorCores via pl.core_map + VMEM_SHARED exchange.
      zero = jnp.zeros((H, G4), bf16)
      whh_bd = jnp.concatenate(
          [jnp.concatenate([whh_ref[l, 0], zero], axis=1),
           jnp.concatenate([zero, whh_ref[l, 1]], axis=1)], axis=0)  # (2H, 8H)
      for s in range(seq):
        tf = s
        tb = seq - 1 - s
        # fwd half comes from time tf, bwd half from tb (both vreg-aligned).
        gx_s = jnp.concatenate([gxbuf[tf, :, 0:G4], gxbuf[tb, :, G4:]], axis=-1)
        h_cat = jnp.concatenate([h_f, h_b], axis=-1).astype(bf16)   # (bpad, 2H)
        g = jnp.dot(h_cat, whh_bd, preferred_element_type=f32) + gx_s
        sg = jax.nn.sigmoid(g)
        tg = jnp.tanh(g)
        c_f = sg[:, H:2 * H] * c_f + sg[:, 0:H] * tg[:, 2 * H:3 * H]
        h_f = sg[:, 3 * H:4 * H] * jnp.tanh(c_f)
        c_b = sg[:, 5 * H:6 * H] * c_b + sg[:, 4 * H:5 * H] * tg[:, 6 * H:7 * H]
        h_b = sg[:, 7 * H:8 * H] * jnp.tanh(c_b)
        out_f[tf] = h_f
        out_b[tb] = h_b
    else:
      # v5e (128-wide MXU): keep the two interleaved per-direction matmuls so
      # the independent fwd/bwd dependency chains overlap and hide MXU latency.
      whh_f = whh_ref[l, 0]                                 # (H, 4H) bf16
      whh_b = whh_ref[l, 1]
      for s in range(seq):
        tf = s
        tb = seq - 1 - s
        h_f, c_f = cell(h_f, c_f, whh_f, gxbuf[tf, :, 0:G4])
        h_b, c_b = cell(h_b, c_b, whh_b, gxbuf[tb, :, G4:])
        out_f[tf] = h_f
        out_b[tb] = h_b

    hn_ref[2 * l + 0] = h_f
    cn_ref[2 * l + 0] = c_f
    hn_ref[2 * l + 1] = h_b
    cn_ref[2 * l + 1] = c_b

    # One bulk assembly of the layer output (values only; no per-step stores).
    x_in = jnp.concatenate(
        [jnp.stack(out_f, axis=0), jnp.stack(out_b, axis=0)],
        axis=-1).astype(bf16).reshape(n, 2 * H)

  # VAE head on the final-layer activations (still in vregs): one fused
  # fc_mean/fc_var matmul, reparameterize, masked KL reduction.
  mv = jnp.dot(x_in, wmv_ref[...], preferred_element_type=f32) + bmv_ref[...]
  mu = mv[:, :rep]
  logvar = mv[:, rep:]
  std = jnp.exp(0.5 * logvar)
  z_ref[...] = mu + eps_ref[...] * std
  kl = 1.0 + logvar - mu * mu - std * std                  # std*std == exp(logvar)
  valid = (jax.lax.broadcasted_iota(jnp.int32, kl.shape, 0) % bpad) < batch
  kl = jnp.where(valid, kl, 0.0)                           # exclude padded batch rows
  loss_ref[0, 0] = -0.5 * jnp.sum(kl) / float(seq * batch * rep)


# ----------------------------------------------------------------------------
# Wrapper
# ----------------------------------------------------------------------------
def _mxu_is_256_wide():
  """True on chips with a 256-wide MXU (v6e/v7x); False on 128-wide (<= v5)."""
  try:
    kind = jax.devices()[0].device_kind.lower()
  except Exception:
    return True
  return not any(tag in kind for tag in ("v2", "v3", "v4", "v5"))


def kl_cost_annealing(step, mode="cyc", period=1000.0):
  # TODO(synk): host-side python schedule (stateful counter in the nn.Module);
  # kept outside the kernel.
  if mode == "mono":
    return 1.0 if step > period else step / period
  elif mode == "cyc":
    pd_point = step % period
    return 1.0 if pd_point > 0.5 * period else pd_point / (0.5 * period)
  else:
    raise ValueError("KLD annealing mode error!")


def vae_encoder_forward(params, e_input, cond, eps, *, num_layers, hidden_size,
                        rep_size, kl_anneal_step=0, mode="cyc", period=1000.0,
                        fuse_dirs=None):
  H = hidden_size
  seq, batch = e_input.shape
  bpad = max(8, -(-batch // 8) * 8)                  # batch padded to 8 sublanes
  n = seq * bpad
  bf16 = jnp.bfloat16
  if fuse_dirs is None:
    fuse_dirs = _mxu_is_256_wide()

  # Embedding gathers + zero-padding stay in plain JAX (data-dependent gather).
  embedded = params["word_embedding"][e_input]             # (seq, batch, H) f32
  cond_emb = params["cond_embedding"][cond[:, 0]]          # (batch, H) f32

  emb_p = jnp.zeros((seq, bpad, 2 * H), bf16)
  emb_p = emb_p.at[:, :batch, :H].set(embedded.astype(bf16))
  emb2d = emb_p.reshape(n, 2 * H)

  h0 = jnp.zeros((bpad, H), jnp.float32).at[:batch].set(cond_emb)

  eps_p = jnp.zeros((seq, bpad, rep_size), jnp.float32).at[:, :batch].set(eps)
  eps2d = eps_p.reshape(n, rep_size)

  kernel = functools.partial(
      vae_encoder_kernel, num_layers=num_layers, seq=seq, batch=batch,
      bpad=bpad, H=H, rep=rep_size, fuse_dirs=fuse_dirs)

  # TODO(synk): before scaling seq/batch/H, add a grid + BlockSpec row tiling so
  # inputs/outputs are pipelined HBM<->VMEM (matters first on v7x's 64 MiB VMEM).
  z2d, h_n, c_n, loss = pl.pallas_call(
      kernel,
      out_shape=(
          jax.ShapeDtypeStruct((n, rep_size), jnp.float32),
          jax.ShapeDtypeStruct((num_layers * 2, bpad, H), jnp.float32),
          jax.ShapeDtypeStruct((num_layers * 2, bpad, H), jnp.float32),
          jax.ShapeDtypeStruct((1, 1), jnp.float32),
      ),
      out_specs=(
          pl.BlockSpec(memory_space=pltpu.MemorySpace.VMEM),
          pl.BlockSpec(memory_space=pltpu.MemorySpace.VMEM),
          pl.BlockSpec(memory_space=pltpu.MemorySpace.VMEM),
          pl.BlockSpec(memory_space=pltpu.MemorySpace.SMEM),
      ),
      scratch_shapes=[pltpu.VMEM((seq, bpad, 8 * H), jnp.float32)],
  )(emb2d, h0,
    params["lstm_wih"], params["lstm_whh"], params["lstm_b"],
    params["fc_w"], params["fc_b"], eps2d)

  annealing_ratio = jnp.float32(kl_cost_annealing(kl_anneal_step, mode, period))
  z = z2d.reshape(seq, bpad, rep_size)[:, :batch, :]
  h_n = h_n[:, :batch, :]
  c_n = c_n[:, :batch, :]
  return z, (h_n, c_n), loss[0, 0] * annealing_ratio


# ----------------------------------------------------------------------------
# Deterministic parameter init (shapes follow the nn.Module __init__), stored in
# the stacked / pre-concatenated / pre-cast layout the fused kernel consumes.
# ----------------------------------------------------------------------------
def init_params(key, input_size, hidden_size, rep_size, num_layers):
  H = hidden_size
  keys = jax.random.split(key, 6 + 4 * num_layers * 2)
  it = iter(keys)
  u = lambda k, shape, s: jax.random.uniform(k, shape, jnp.float32, -s, s)

  params = {}
  params["word_embedding"] = jax.random.normal(next(it), (input_size, H), jnp.float32)
  params["cond_embedding"] = jax.random.normal(next(it), (4, H), jnp.float32)

  scale = 1.0 / float(H) ** 0.5
  wih_layers, whh_layers, b_layers = [], [], []
  for layer in range(num_layers):
    in_dim = H if layer == 0 else 2 * H
    wih_dirs, whh_dirs, b_dirs = [], [], []
    for _ in range(2):                                  # forward, backward
      wih = u(next(it), (in_dim, 4 * H), scale)         # transposed vs. torch
      whh = u(next(it), (H, 4 * H), scale)
      b_ih = u(next(it), (1, 4 * H), scale)
      b_hh = u(next(it), (1, 4 * H), scale)
      if in_dim < 2 * H:                                # zero-pad layer-0 K rows
        wih = jnp.concatenate(
            [wih, jnp.zeros((2 * H - in_dim, 4 * H), jnp.float32)], axis=0)
      wih_dirs.append(wih)
      whh_dirs.append(whh)
      b_dirs.append(b_ih + b_hh)
    wih_layers.append(jnp.concatenate(wih_dirs, axis=1))   # (2H, 8H)
    whh_layers.append(jnp.stack(whh_dirs, axis=0))         # (2, H, 4H)
    b_layers.append(jnp.concatenate(b_dirs, axis=1))       # (1, 8H)
  # Pre-cast MXU operands to bf16 once (no per-call casts / extra HBM copies).
  params["lstm_wih"] = jnp.stack(wih_layers, axis=0).astype(jnp.bfloat16)
  params["lstm_whh"] = jnp.stack(whh_layers, axis=0).astype(jnp.bfloat16)
  params["lstm_b"] = jnp.stack(b_layers, axis=0)            # (L, 1, 8H) f32

  fc_scale = 1.0 / float(2 * H) ** 0.5
  wm = u(next(it), (2 * H, rep_size), fc_scale)
  wv = u(next(it), (2 * H, rep_size), fc_scale)
  bm = u(next(it), (1, rep_size), fc_scale)
  bv = u(next(it), (1, rep_size), fc_scale)
  params["fc_w"] = jnp.concatenate([wm, wv], axis=1).astype(jnp.bfloat16)
  params["fc_b"] = jnp.concatenate([bm, bv], axis=1)        # (1, 2*rep) f32
  return params


# ----------------------------------------------------------------------------
if __name__ == "__main__":
  input_size = 29      # vocab size
  hidden_size = 32
  rep_size = 16
  num_layers = 2
  seq_len = 8
  batch = 2

  root = jax.random.PRNGKey(0)
  k_param, k_tok, k_cond, k_eps = jax.random.split(root, 4)

  params = init_params(k_param, input_size, hidden_size, rep_size, num_layers)

  e_input = jax.random.randint(k_tok, (seq_len, batch), 0, input_size,
                               dtype=jnp.int32)
  cond = jax.random.randint(k_cond, (batch, 1), 0, 4, dtype=jnp.int32)
  eps = jax.random.normal(k_eps, (seq_len, batch, rep_size), jnp.float32)

  fwd = functools.partial(vae_encoder_forward,
                          num_layers=num_layers, hidden_size=hidden_size,
                          rep_size=rep_size, kl_anneal_step=250,
                          mode="cyc", period=1000.0)
  z, (h_n, c_n), loss = jax.jit(fwd)(params, e_input, cond, eps)

  jax.block_until_ready((z, h_n, c_n, loss))
  assert z.shape == (seq_len, batch, rep_size)
  assert h_n.shape == (num_layers * 2, batch, hidden_size)
  assert c_n.shape == (num_layers * 2, batch, hidden_size)
  assert loss.shape == ()
  assert bool(jnp.all(jnp.isfinite(z)))
  assert bool(jnp.all(jnp.isfinite(h_n))) and bool(jnp.all(jnp.isfinite(c_n)))
  assert bool(jnp.isfinite(loss))
  print("KERNEL_OK")
</pallas_src>

<mosaic_0001>
module attributes {stable_mosaic.version = 11 : i64} {
  func.func @vae_encoder_kernel(%arg0: memref<64x64xbf16, #tpu.memory_space<vmem>>, %arg1: memref<8x32xf32, #tpu.memory_space<vmem>>, %arg2: memref<2x64x256xbf16, #tpu.memory_space<vmem>>, %arg3: memref<2x2x32x128xbf16, #tpu.memory_space<vmem>>, %arg4: memref<2x1x256xf32, #tpu.memory_space<vmem>>, %arg5: memref<64x32xbf16, #tpu.memory_space<vmem>>, %arg6: memref<1x32xf32, #tpu.memory_space<vmem>>, %arg7: memref<64x16xf32, #tpu.memory_space<vmem>>, %arg8: memref<64x16xf32, #tpu.memory_space<vmem>>, %arg9: memref<4x8x32xf32, #tpu.memory_space<vmem>>, %arg10: memref<4x8x32xf32, #tpu.memory_space<vmem>>, %arg11: memref<1x1xf32, #tpu.memory_space<smem>>, %arg12: memref<8x8x256xf32, #tpu.memory_space<vmem>>) attributes {dimension_semantics = [], scalar_prefetch = 0 : i64, scratch_operands = 1 : i64, tpu.core_type = #tpu.core_type<tc>} {
    %c0 = arith.constant 0 : index
    %c0_0 = arith.constant 0 : index
    %0 = vector.load %arg1[%c0, %c0_0] : memref<8x32xf32, #tpu.memory_space<vmem>>, vector<8x32xf32>
    %c0_1 = arith.constant 0 : index
    %c0_2 = arith.constant 0 : index
    %1 = vector.load %arg0[%c0_1, %c0_2] : memref<64x64xbf16, #tpu.memory_space<vmem>>, vector<64x64xbf16>
    %c0_3 = arith.constant 0 : index
    %c0_4 = arith.constant 0 : index
    %c0_5 = arith.constant 0 : index
    %2 = vector.load %arg2[%c0_3, %c0_4, %c0_5] : memref<2x64x256xbf16, #tpu.memory_space<vmem>>, vector<1x64x256xbf16>
    %3 = vector.shape_cast %2 : vector<1x64x256xbf16> to vector<64x256xbf16>
    %cst = arith.constant dense<0.000000e+00> : vector<64x256xf32>
    %4 = tpu.matmul %1, %3, %cst {dimension_numbers = #tpu.dot_dimension_numbers<[1], [0], [0], [1], [0, 0, 1, 1], [], []>} : vector<64x64xbf16>, vector<64x256xbf16>, vector<64x256xf32> -> vector<64x256xf32>
    %c0_6 = arith.constant 0 : index
    %c0_7 = arith.constant 0 : index
    %c0_8 = arith.constant 0 : index
    %5 = vector.load %arg4[%c0_6, %c0_7, %c0_8] : memref<2x1x256xf32, #tpu.memory_space<vmem>>, vector<1x1x256xf32>
    %6 = vector.shape_cast %5 : vector<1x1x256xf32> to vector<1x256xf32>
    %7 = vector.broadcast %6 : vector<1x256xf32> to vector<64x256xf32>
    %8 = arith.addf %4, %7 : vector<64x256xf32>
    %9 = vector.shape_cast %8 : vector<64x256xf32> to vector<8x8x256xf32>
    %c0_9 = arith.constant 0 : index
    %c0_10 = arith.constant 0 : index
    %c0_11 = arith.constant 0 : index
    %10 = vector.load %arg12[%c0_9, %c0_10, %c0_11] : memref<8x8x256xf32, #tpu.memory_space<vmem>>, vector<8x8x256xf32>
    tpu.vector_store %arg12[%c0_9, %c0_10, %c0_11], %9 {strides = array<i32>} : memref<8x8x256xf32, #tpu.memory_space<vmem>>, vector<8x8x256xf32>,
    %cst_12 = arith.constant 0.000000e+00 : bf16
    %11 = vector.broadcast %cst_12 : bf16 to vector<32x128xbf16>
    %c0_13 = arith.constant 0 : index
    %c0_14 = arith.constant 0 : index
    %c0_15 = arith.constant 0 : index
    %c0_16 = arith.constant 0 : index
    %12 = vector.load %arg3[%c0_13, %c0_14, %c0_15, %c0_16] : memref<2x2x32x128xbf16, #tpu.memory_space<vmem>>, vector<1x1x32x128xbf16>
    %13 = vector.shape_cast %12 : vector<1x1x32x128xbf16> to vector<32x128xbf16>
    %14 = tpu.concatenate %13, %11 in 1 : vector<32x128xbf16>, vector<32x128xbf16> -> vector<32x256xbf16>
    %c0_17 = arith.constant 0 : index
    %c1 = arith.constant 1 : index
    %c0_18 = arith.constant 0 : index
    %c0_19 = arith.constant 0 : index
    %15 = vector.load %arg3[%c0_17, %c1, %c0_18, %c0_19] : memref<2x2x32x128xbf16, #tpu.memory_space<vmem>>, vector<1x1x32x128xbf16>
    %16 = vector.shape_cast %15 : vector<1x1x32x128xbf16> to vector<32x128xbf16>
    %17 = tpu.concatenate %11, %16 in 1 : vector<32x128xbf16>, vector<32x128xbf16> -> vector<32x256xbf16>
    %18 = tpu.concatenate %14, %17 in 0 : vector<32x256xbf16>, vector<32x256xbf16> -> vector<64x256xbf16>
    %c0_20 = arith.constant 0 : index
    %c0_21 = arith.constant 0 : index
    %c0_22 = arith.constant 0 : index
    %19 = vector.load %arg12[%c0_20, %c0_21, %c0_22] : memref<8x8x256xf32, #tpu.memory_space<vmem>>, vector<1x8x128xf32>
    %20 = vector.shape_cast %19 : vector<1x8x128xf32> to vector<8x128xf32>
    %c7 = arith.constant 7 : index
    %c0_23 = arith.constant 0 : index
    %c128 = arith.constant 128 : index
    %21 = vector.load %arg12[%c7, %c0_23, %c128] : memref<8x8x256xf32, #tpu.memory_space<vmem>>, vector<1x8x128xf32>
    %22 = vector.shape_cast %21 : vector<1x8x128xf32> to vector<8x128xf32>
    %23 = tpu.concatenate %20, %22 in 1 : vector<8x128xf32>, vector<8x128xf32> -> vector<8x256xf32>
    %24 = tpu.concatenate %0, %0 in 1 : vector<8x32xf32>, vector<8x32xf32> -> vector<8x64xf32>
    %25 = arith.truncf %24 : vector<8x64xf32> to vector<8x64xbf16>
    %cst_24 = arith.constant dense<0.000000e+00> : vector<8x256xf32>
    %26 = tpu.matmul %25, %18, %cst_24 {dimension_numbers = #tpu.dot_dimension_numbers<[1], [0], [0], [1], [0, 0, 1, 1], [], []>} : vector<8x64xbf16>, vector<64x256xbf16>, vector<8x256xf32> -> vector<8x256xf32>
    %27 = arith.addf %26, %23 : vector<8x256xf32>
    %28 = arith.negf %27 : vector<8x256xf32>
    %29 = math.exp %28 : vector<8x256xf32>
    %cst_25 = arith.constant 1.000000e+00 : f32
    %30 = vector.broadcast %cst_25 : f32 to vector<8x256xf32>
    %31 = arith.addf %30, %29 : vector<8x256xf32>
    %32 = arith.divf %30, %31 : vector<8x256xf32>
    %33 = math.tanh %27 : vector<8x256xf32>
    %34 = vector.extract_strided_slice %32 {offsets = [0, 32], sizes = [8, 32], strides = [1, 1]} : vector<8x256xf32> to vector<8x32xf32>
    %35 = arith.mulf %34, %0 : vector<8x32xf32>
    %36 = vector.extract_strided_slice %32 {offsets = [0, 0], sizes = [8, 32], strides = [1, 1]} : vector<8x256xf32> to vector<8x32xf32>
    %37 = vector.extract_strided_slice %33 {offsets = [0, 64], sizes = [8, 32], strides = [1, 1]} : vector<8x256xf32> to vector<8x32xf32>
    %38 = arith.mulf %36, %37 : vector<8x32xf32>
    %39 = arith.addf %35, %38 : vector<8x32xf32>
    %40 = vector.extract_strided_slice %32 {offsets = [0, 96], sizes = [8, 32], strides = [1, 1]} : vector<8x256xf32> to vector<8x32xf32>
    %41 = math.tanh %39 : vector<8x32xf32>
    %42 = arith.mulf %40, %41 : vector<8x32xf32>
    %43 = vector.extract_strided_slice %32 {offsets = [0, 160], sizes = [8, 32], strides = [1, 1]} : vector<8x256xf32> to vector<8x32xf32>
    %44 = arith.mulf %43, %0 : vector<8x32xf32>
    %45 = vector.extract_strided_slice %32 {offsets = [0, 128], sizes = [8, 32], strides = [1, 1]} : vector<8x256xf32> to vector<8x32xf32>
    %46 = vector.extract_strided_slice %33 {offsets = [0, 192], sizes = [8, 32], strides = [1, 1]} : vector<8x256xf32> to vector<8x32xf32>
    %47 = arith.mulf %45, %46 : vector<8x32xf32>
    %48 = arith.addf %44, %47 : vector<8x32xf32>
    %49 = vector.extract_strided_slice %32 {offsets = [0, 224], sizes = [8, 32], strides = [1, 1]} : vector<8x256xf32> to vector<8x32xf32>
    %50 = math.tanh %48 : vector<8x32xf32>
    %51 = arith.mulf %49, %50 : vector<8x32xf32>
    %c1_26 = arith.constant 1 : index
    %c0_27 = arith.constant 0 : index
    %c0_28 = arith.constant 0 : index
    %52 = vector.load %arg12[%c1_26, %c0_27, %c0_28] : memref<8x8x256xf32, #tpu.memory_space<vmem>>, vector<1x8x128xf32>
    %53 = vector.shape_cast %52 : vector<1x8x128xf32> to vector<8x128xf32>
    %c6 = arith.constant 6 : index
    %c0_29 = arith.constant 0 : index
    %c128_30 = arith.constant 128 : index
    %54 = vector.load %arg12[%c6, %c0_29, %c128_30] : memref<8x8x256xf32, #tpu.memory_space<vmem>>, vector<1x8x128xf32>
    %55 = vector.shape_cast %54 : vector<1x8x128xf32> to vector<8x128xf32>
    %56 = tpu.concatenate %53, %55 in 1 : vector<8x128xf32>, vector<8x128xf32> -> vector<8x256xf32>
    %57 = tpu.concatenate %42, %51 in 1 : vector<8x32xf32>, vector<8x32xf32> -> vector<8x64xf32>
    %58 = arith.truncf %57 : vector<8x64xf32> to vector<8x64xbf16>
    %cst_31 = arith.constant dense<0.000000e+00> : vector<8x256xf32>
    %59 = tpu.matmul %58, %18, %cst_31 {dimension_numbers = #tpu.dot_dimension_numbers<[1], [0], [0], [1], [0, 0, 1, 1], [], []>} : vector<8x64xbf16>, vector<64x256xbf16>, vector<8x256xf32> -> vector<8x256xf32>
    %60 = arith.addf %59, %56 : vector<8x256xf32>
    %61 = arith.negf %60 : vector<8x256xf32>
    %62 = math.exp %61 : vector<8x256xf32>
    %cst_32 = arith.constant 1.000000e+00 : f32
    %63 = vector.broadcast %cst_32 : f32 to vector<8x256xf32>
    %64 = arith.addf %63, %62 : vector<8x256xf32>
    %65 = arith.divf %63, %64 : vector<8x256xf32>
    %66 = math.tanh %60 : vector<8x256xf32>
    %67 = vector.extract_strided_slice %65 {offsets = [0, 32], sizes = [8, 32], strides = [1, 1]} : vector<8x256xf32> to vector<8x32xf32>
    %68 = arith.mulf %67, %39 : vector<8x32xf32>
    %69 = vector.extract_strided_slice %65 {offsets = [0, 0], sizes = [8, 32], strides = [1, 1]} : vector<8x256xf32> to vector<8x32xf32>
    %70 = vector.extract_strided_slice %66 {offsets = [0, 64], sizes = [8, 32], strides = [1, 1]} : vector<8x256xf32> to vector<8x32xf32>
    %71 = arith.mulf %69, %70 : vector<8x32xf32>
    %72 = arith.addf %68, %71 : vector<8x32xf32>
    %73 = vector.extract_strided_slice %65 {offsets = [0, 96], sizes = [8, 32], strides = [1, 1]} : vector<8x256xf32> to vector<8x32xf32>
    %74 = math.tanh %72 : vector<8x32xf32>
    %75 = arith.mulf %73, %74 : vector<8x32xf32>
    %76 = vector.extract_strided_slice %65 {offsets = [0, 160], sizes = [8, 32], strides = [1, 1]} : vector<8x256xf32> to vector<8x32xf32>
    %77 = arith.mulf %76, %48 : vector<8x32xf32>
    %78 = vector.extract_strided_slice %65 {offsets = [0, 128], sizes = [8, 32], strides = [1, 1]} : vector<8x256xf32> to vector<8x32xf32>
    %79 = vector.extract_strided_slice %66 {offsets = [0, 192], sizes = [8, 32], strides = [1, 1]} : vector<8x256xf32> to vector<8x32xf32>
    %80 = arith.mulf %78, %79 : vector<8x32xf32>
    %81 = arith.addf %77, %80 : vector<8x32xf32>
    %82 = vector.extract_strided_slice %65 {offsets = [0, 224], sizes = [8, 32], strides = [1, 1]} : vector<8x256xf32> to vector<8x32xf32>
    %83 = math.tanh %81 : vector<8x32xf32>
    %84 = arith.mulf %82, %83 : vector<8x32xf32>
    %c2 = arith.constant 2 : index
    %c0_33 = arith.constant 0 : index
    %c0_34 = arith.constant 0 : index
    %85 = vector.load %arg12[%c2, %c0_33, %c0_34] : memref<8x8x256xf32, #tpu.memory_space<vmem>>, vector<1x8x128xf32>
    %86 = vector.shape_cast %85 : vector<1x8x128xf32> to vector<8x128xf32>
    %c5 = arith.constant 5 : index
    %c0_35 = arith.constant 0 : index
    %c128_36 = arith.constant 128 : index
    %87 = vector.load %arg12[%c5, %c0_35, %c128_36] : memref<8x8x256xf32, #tpu.memory_space<vmem>>, vector<1x8x128xf32>
    %88 = vector.shape_cast %87 : vector<1x8x128xf32> to vector<8x128xf32>
    %89 = tpu.concatenate %86, %88 in 1 : vector<8x128xf32>, vector<8x128xf32> -> vector<8x256xf32>
    %90 = tpu.concatenate %75, %84 in 1 : vector<8x32xf32>, vector<8x32xf32> -> vector<8x64xf32>
    %91 = arith.truncf %90 : vector<8x64xf32> to vector<8x64xbf16>
    %cst_37 = arith.constant dense<0.000000e+00> : vector<8x256xf32>
    %92 = tpu.matmul %91, %18, %cst_37 {dimension_numbers = #tpu.dot_dimension_numbers<[1], [0], [0], [1], [0, 0, 1, 1], [], []>} : vector<8x64xbf16>, vector<64x256xbf16>, vector<8x256xf32> -> vector<8x256xf32>
    %93 = arith.addf %92, %89 : vector<8x256xf32>
    %94 = arith.negf %93 : vector<8x256xf32>
    %95 = math.exp %94 : vector<8x256xf32>
    %cst_38 = arith.constant 1.000000e+00 : f32
    %96 = vector.broadcast %cst_38 : f32 to vector<8x256xf32>
    %97 = arith.addf %96, %95 : vector<8x256xf32>
    %98 = arith.divf %96, %97 : vector<8x256xf32>
    %99 = math.tanh %93 : vector<8x256xf32>
    %100 = vector.extract_strided_slice %98 {offsets = [0, 32], sizes = [8, 32], strides = [1, 1]} : vector<8x256xf32> to vector<8x32xf32>
    %101 = arith.mulf %100, %72 : vector<8x32xf32>
    %102 = vector.extract_strided_slice %98 {offsets = [0, 0], sizes = [8, 32], strides = [1, 1]} : vector<8x256xf32> to vector<8x32xf32>
    %103 = vector.extract_strided_slice %99 {offsets = [0, 64], sizes = [8, 32], strides = [1, 1]} : vector<8x256xf32> to vector<8x32xf32>
    %104 = arith.mulf %102, %103 : vector<8x32xf32>
    %105 = arith.addf %101, %104 : vector<8x32xf32>
    %106 = vector.extract_strided_slice %98 {offsets = [0, 96], sizes = [8, 32], strides = [1, 1]} : vector<8x256xf32> to vector<8x32xf32>
    %107 = math.tanh %105 : vector<8x32xf32>
    %108 = arith.mulf %106, %107 : vector<8x32xf32>
    %109 = vector.extract_strided_slice %98 {offsets = [0, 160], sizes = [8, 32], strides = [1, 1]} : vector<8x256xf32> to vector<8x32xf32>
    %110 = arith.mulf %109, %81 : vector<8x32xf32>
    %111 = vector.extract_strided_slice %98 {offsets = [0, 128], sizes = [8, 32], strides = [1, 1]} : vector<8x256xf32> to vector<8x32xf32>
    %112 = vector.extract_strided_slice %99 {offsets = [0, 192], sizes = [8, 32], strides = [1, 1]} : vector<8x256xf32> to vector<8x32xf32>
    %113 = arith.mulf %111, %112 : vector<8x32xf32>
    %114 = arith.addf %110, %113 : vector<8x32xf32>
    %115 = vector.extract_strided_slice %98 {offsets = [0, 224], sizes = [8, 32], strides = [1, 1]} : vector<8x256xf32> to vector<8x32xf32>
    %116 = math.tanh %114 : vector<8x32xf32>
    %117 = arith.mulf %115, %116 : vector<8x32xf32>
    %c3 = arith.constant 3 : index
    %c0_39 = arith.constant 0 : index
    %c0_40 = arith.constant 0 : index
    %118 = vector.load %arg12[%c3, %c0_39, %c0_40] : memref<8x8x256xf32, #tpu.memory_space<vmem>>, vector<1x8x128xf32>
    %119 = vector.shape_cast %118 : vector<1x8x128xf32> to vector<8x128xf32>
    %c4 = arith.constant 4 : index
    %c0_41 = arith.constant 0 : index
    %c128_42 = arith.constant 128 : index
    %120 = vector.load %arg12[%c4, %c0_41, %c128_42] : memref<8x8x256xf32, #tpu.memory_space<vmem>>, vector<1x8x128xf32>
    %121 = vector.shape_cast %120 : vector<1x8x128xf32> to vector<8x128xf32>
    %122 = tpu.concatenate %119, %121 in 1 : vector<8x128xf32>, vector<8x128xf32> -> vector<8x256xf32>
    %123 = tpu.concatenate %108, %117 in 1 : vector<8x32xf32>, vector<8x32xf32> -> vector<8x64xf32>
    %124 = arith.truncf %123 : vector<8x64xf32> to vector<8x64xbf16>
    %cst_43 = arith.constant dense<0.000000e+00> : vector<8x256xf32>
    %125 = tpu.matmul %124, %18, %cst_43 {dimension_numbers = #tpu.dot_dimension_numbers<[1], [0], [0], [1], [0, 0, 1, 1], [], []>} : vector<8x64xbf16>, vector<64x256xbf16>, vector<8x256xf32> -> vector<8x256xf32>
    %126 = arith.addf %125, %122 : vector<8x256xf32>
    %127 = arith.negf %126 : vector<8x256xf32>
    %128 = math.exp %127 : vector<8x256xf32>
    %cst_44 = arith.constant 1.000000e+00 : f32
    %129 = vector.broadcast %cst_44 : f32 to vector<8x256xf32>
    %130 = arith.addf %129, %128 : vector<8x256xf32>
    %131 = arith.divf %129, %130 : vector<8x256xf32>
    %132 = math.tanh %126 : vector<8x256xf32>
    %133 = vector.extract_strided_slice %131 {offsets = [0, 32], sizes = [8, 32], strides = [1, 1]} : vector<8x256xf32> to vector<8x32xf32>
    %134 = arith.mulf %133, %105 : vector<8x32xf32>
    %135 = vector.extract_strided_slice %131 {offsets = [0, 0], sizes = [8, 32], strides = [1, 1]} : vector<8x256xf32> to vector<8x32xf32>
    %136 = vector.extract_strided_slice %132 {offsets = [0, 64], sizes = [8, 32], strides = [1, 1]} : vector<8x256xf32> to vector<8x32xf32>
    %137 = arith.mulf %135, %136 : vector<8x32xf32>
    %138 = arith.addf %134, %137 : vector<8x32xf32>
    %139 = vector.extract_strided_slice %131 {offsets = [0, 96], sizes = [8, 32], strides = [1, 1]} : vector<8x256xf32> to vector<8x32xf32>
    %140 = math.tanh %138 : vector<8x32xf32>
    %141 = arith.mulf %139, %140 : vector<8x32xf32>
    %142 = vector.extract_strided_slice %131 {offsets = [0, 160], sizes = [8, 32], strides = [1, 1]} : vector<8x256xf32> to vector<8x32xf32>
    %143 = arith.mulf %142, %114 : vector<8x32xf32>
    %144 = vector.extract_strided_slice %131 {offsets = [0, 128], sizes = [8, 32], strides = [1, 1]} : vector<8x256xf32> to vector<8x32xf32>
    %145 = vector.extract_strided_slice %132 {offsets = [0, 192], sizes = [8, 32], strides = [1, 1]} : vector<8x256xf32> to vector<8x32xf32>
    %146 = arith.mulf %144, %145 : vector<8x32xf32>
    %147 = arith.addf %143, %146 : vector<8x32xf32>
    %148 = vector.extract_strided_slice %131 {offsets = [0, 224], sizes = [8, 32], strides = [1, 1]} : vector<8x256xf32> to vector<8x32xf32>
    %149 = math.tanh %147 : vector<8x32xf32>
    %150 = arith.mulf %148, %149 : vector<8x32xf32>
    %c4_45 = arith.constant 4 : index
    %c0_46 = arith.constant 0 : index
    %c0_47 = arith.constant 0 : index
    %151 = vector.load %arg12[%c4_45, %c0_46, %c0_47] : memref<8x8x256xf32, #tpu.memory_space<vmem>>, vector<1x8x128xf32>
    %152 = vector.shape_cast %151 : vector<1x8x128xf32> to vector<8x128xf32>
    %c3_48 = arith.constant 3 : index
    %c0_49 = arith.constant 0 : index
    %c128_50 = arith.constant 128 : index
    %153 = vector.load %arg12[%c3_48, %c0_49, %c128_50] : memref<8x8x256xf32, #tpu.memory_space<vmem>>, vector<1x8x128xf32>
    %154 = vector.shape_cast %153 : vector<1x8x128xf32> to vector<8x128xf32>
    %155 = tpu.concatenate %152, %154 in 1 : vector<8x128xf32>, vector<8x128xf32> -> vector<8x256xf32>
    %156 = tpu.concatenate %141, %150 in 1 : vector<8x32xf32>, vector<8x32xf32> -> vector<8x64xf32>
    %157 = arith.truncf %156 : vector<8x64xf32> to vector<8x64xbf16>
    %cst_51 = arith.constant dense<0.000000e+00> : vector<8x256xf32>
    %158 = tpu.matmul %157, %18, %cst_51 {dimension_numbers = #tpu.dot_dimension_numbers<[1], [0], [0], [1], [0, 0, 1, 1], [], []>} : vector<8x64xbf16>, vector<64x256xbf16>, vector<8x256xf32> -> vector<8x256xf32>
    %159 = arith.addf %158, %155 : vector<8x256xf32>
    %160 = arith.negf %159 : vector<8x256xf32>
    %161 = math.exp %160 : vector<8x256xf32>
    %cst_52 = arith.constant 1.000000e+00 : f32
    %162 = vector.broadcast %cst_52 : f32 to vector<8x256xf32>
    %163 = arith.addf %162, %161 : vector<8x256xf32>
    %164 = arith.divf %162, %163 : vector<8x256xf32>
    %165 = math.tanh %159 : vector<8x256xf32>
    %166 = vector.extract_strided_slice %164 {offsets = [0, 32], sizes = [8, 32], strides = [1, 1]} : vector<8x256xf32> to vector<8x32xf32>
    %167 = arith.mulf %166, %138 : vector<8x32xf32>
    %168 = vector.extract_strided_slice %164 {offsets = [0, 0], sizes = [8, 32], strides = [1, 1]} : vector<8x256xf32> to vector<8x32xf32>
    %169 = vector.extract_strided_slice %165 {offsets = [0, 64], sizes = [8, 32], strides = [1, 1]} : vector<8x256xf32> to vector<8x32xf32>
    %170 = arith.mulf %168, %169 : vector<8x32xf32>
    %171 = arith.addf %167, %170 : vector<8x32xf32>
    %172 = vector.extract_strided_slice %164 {offsets = [0, 96], sizes = [8, 32], strides = [1, 1]} : vector<8x256xf32> to vector<8x32xf32>
    %173 = math.tanh %171 : vector<8x32xf32>
    %174 = arith.mulf %172, %173 : vector<8x32xf32>
    %175 = vector.extract_strided_slice %164 {offsets = [0, 160], sizes = [8, 32], strides = [1, 1]} : vector<8x256xf32> to vector<8x32xf32>
    %176 = arith.mulf %175, %147 : vector<8x32xf32>
    %177 = vector.extract_strided_slice %164 {offsets = [0, 128], sizes = [8, 32], strides = [1, 1]} : vector<8x256xf32> to vector<8x32xf32>
    %178 = vector.extract_strided_slice %165 {offsets = [0, 192], sizes = [8, 32], strides = [1, 1]} : vector<8x256xf32> to vector<8x32xf32>
    %179 = arith.mulf %177, %178 : vector<8x32xf32>
    %180 = arith.addf %176, %179 : vector<8x32xf32>
    %181 = vector.extract_strided_slice %164 {offsets = [0, 224], sizes = [8, 32], strides = [1, 1]} : vector<8x256xf32> to vector<8x32xf32>
    %182 = math.tanh %180 : vector<8x32xf32>
    %183 = arith.mulf %181, %182 : vector<8x32xf32>
    %c5_53 = arith.constant 5 : index
    %c0_54 = arith.constant 0 : index
    %c0_55 = arith.constant 0 : index
    %184 = vector.load %arg12[%c5_53, %c0_54, %c0_55] : memref<8x8x256xf32, #tpu.memory_space<vmem>>, vector<1x8x128xf32>
    %185 = vector.shape_cast %184 : vector<1x8x128xf32> to vector<8x128xf32>
    %c2_56 = arith.constant 2 : index
    %c0_57 = arith.constant 0 : index
    %c128_58 = arith.constant 128 : index
    %186 = vector.load %arg12[%c2_56, %c0_57, %c128_58] : memref<8x8x256xf32, #tpu.memory_space<vmem>>, vector<1x8x128xf32>
    %187 = vector.shape_cast %186 : vector<1x8x128xf32> to vector<8x128xf32>
    %188 = tpu.concatenate %185, %187 in 1 : vector<8x128xf32>, vector<8x128xf32> -> vector<8x256xf32>
    %189 = tpu.concatenate %174, %183 in 1 : vector<8x32xf32>, vector<8x32xf32> -> vector<8x64xf32>
    %190 = arith.truncf %189 : vector<8x64xf32> to vector<8x64xbf16>
    %cst_59 = arith.constant dense<0.000000e+00> : vector<8x256xf32>
    %191 = tpu.matmul %190, %18, %cst_59 {dimension_numbers = #tpu.dot_dimension_numbers<[1], [0], [0], [1], [0, 0, 1, 1], [], []>} : vector<8x64xbf16>, vector<64x256xbf16>, vector<8x256xf32> -> vector<8x256xf32>
    %192 = arith.addf %191, %188 : vector<8x256xf32>
    %193 = arith.negf %192 : vector<8x256xf32>
    %194 = math.exp %193 : vector<8x256xf32>
    %cst_60 = arith.constant 1.000000e+00 : f32
    %195 = vector.broadcast %cst_60 : f32 to vector<8x256xf32>
    %196 = arith.addf %195, %194 : vector<8x256xf32>
    %197 = arith.divf %195, %196 : vector<8x256xf32>
    %198 = math.tanh %192 : vector<8x256xf32>
    %199 = vector.extract_strided_slice %197 {offsets = [0, 32], sizes = [8, 32], strides = [1, 1]} : vector<8x256xf32> to vector<8x32xf32>
    %200 = arith.mulf %199, %171 : vector<8x32xf32>
    %201 = vector.extract_strided_slice %197 {offsets = [0, 0], sizes = [8, 32], strides = [1, 1]} : vector<8x256xf32> to vector<8x32xf32>
    %202 = vector.extract_strided_slice %198 {offsets = [0, 64], sizes = [8, 32], strides = [1, 1]} : vector<8x256xf32> to vector<8x32xf32>
    %203 = arith.mulf %201, %202 : vector<8x32xf32>
    %204 = arith.addf %200, %203 : vector<8x32xf32>
    %205 = vector.extract_strided_slice %197 {offsets = [0, 96], sizes = [8, 32], strides = [1, 1]} : vector<8x256xf32> to vector<8x32xf32>
    %206 = math.tanh %204 : vector<8x32xf32>
    %207 = arith.mulf %205, %206 : vector<8x32xf32>
    %208 = vector.extract_strided_slice %197 {offsets = [0, 160], sizes = [8, 32], strides = [1, 1]} : vector<8x256xf32> to vector<8x32xf32>
    %209 = arith.mulf %208, %180 : vector<8x32xf32>
    %210 = vector.extract_strided_slice %197 {offsets = [0, 128], sizes = [8, 32], strides = [1, 1]} : vector<8x256xf32> to vector<8x32xf32>
    %211 = vector.extract_strided_slice %198 {offsets = [0, 192], sizes = [8, 32], strides = [1, 1]} : vector<8x256xf32> to vector<8x32xf32>
    %212 = arith.mulf %210, %211 : vector<8x32xf32>
    %213 = arith.addf %209, %212 : vector<8x32xf32>
    %214 = vector.extract_strided_slice %197 {offsets = [0, 224], sizes = [8, 32], strides = [1, 1]} : vector<8x256xf32> to vector<8x32xf32>
    %215 = math.tanh %213 : vector<8x32xf32>
    %216 = arith.mulf %214, %215 : vector<8x32xf32>
    %c6_61 = arith.constant 6 : index
    %c0_62 = arith.constant 0 : index
    %c0_63 = arith.constant 0 : index
    %217 = vector.load %arg12[%c6_61, %c0_62, %c0_63] : memref<8x8x256xf32, #tpu.memory_space<vmem>>, vector<1x8x128xf32>
    %218 = vector.shape_cast %217 : vector<1x8x128xf32> to vector<8x128xf32>
    %c1_64 = arith.constant 1 : index
    %c0_65 = arith.constant 0 : index
    %c128_66 = arith.constant 128 : index
    %219 = vector.load %arg12[%c1_64, %c0_65, %c128_66] : memref<8x8x256xf32, #tpu.memory_space<vmem>>, vector<1x8x128xf32>
    %220 = vector.shape_cast %219 : vector<1x8x128xf32> to vector<8x128xf32>
    %221 = tpu.concatenate %218, %220 in 1 : vector<8x128xf32>, vector<8x128xf32> -> vector<8x256xf32>
    %222 = tpu.concatenate %207, %216 in 1 : vector<8x32xf32>, vector<8x32xf32> -> vector<8x64xf32>
    %223 = arith.truncf %222 : vector<8x64xf32> to vector<8x64xbf16>
    %cst_67 = arith.constant dense<0.000000e+00> : vector<8x256xf32>
    %224 = tpu.matmul %223, %18, %cst_67 {dimension_numbers = #tpu.dot_dimension_numbers<[1], [0], [0], [1], [0, 0, 1, 1], [], []>} : vector<8x64xbf16>, vector<64x256xbf16>, vector<8x256xf32> -> vector<8x256xf32>
    %225 = arith.addf %224, %221 : vector<8x256xf32>
    %226 = arith.negf %225 : vector<8x256xf32>
    %227 = math.exp %226 : vector<8x256xf32>
    %cst_68 = arith.constant 1.000000e+00 : f32
    %228 = vector.broadcast %cst_68 : f32 to vector<8x256xf32>
    %229 = arith.addf %228, %227 : vector<8x256xf32>
    %230 = arith.divf %228, %229 : vector<8x256xf32>
    %231 = math.tanh %225 : vector<8x256xf32>
    %232 = vector.extract_strided_slice %230 {offsets = [0, 32], sizes = [8, 32], strides = [1, 1]} : vector<8x256xf32> to vector<8x32xf32>
    %233 = arith.mulf %232, %204 : vector<8x32xf32>
    %234 = vector.extract_strided_slice %230 {offsets = [0, 0], sizes = [8, 32], strides = [1, 1]} : vector<8x256xf32> to vector<8x32xf32>
    %235 = vector.extract_strided_slice %231 {offsets = [0, 64], sizes = [8, 32], strides = [1, 1]} : vector<8x256xf32> to vector<8x32xf32>
    %236 = arith.mulf %234, %235 : vector<8x32xf32>
    %237 = arith.addf %233, %236 : vector<8x32xf32>
    %238 = vector.extract_strided_slice %230 {offsets = [0, 96], sizes = [8, 32], strides = [1, 1]} : vector<8x256xf32> to vector<8x32xf32>
    %239 = math.tanh %237 : vector<8x32xf32>
    %240 = arith.mulf %238, %239 : vector<8x32xf32>
    %241 = vector.extract_strided_slice %230 {offsets = [0, 160], sizes = [8, 32], strides = [1, 1]} : vector<8x256xf32> to vector<8x32xf32>
    %242 = arith.mulf %241, %213 : vector<8x32xf32>
    %243 = vector.extract_strided_slice %230 {offsets = [0, 128], sizes = [8, 32], strides = [1, 1]} : vector<8x256xf32> to vector<8x32xf32>
    %244 = vector.extract_strided_slice %231 {offsets = [0, 192], sizes = [8, 32], strides = [1, 1]} : vector<8x256xf32> to vector<8x32xf32>
    %245 = arith.mulf %243, %244 : vector<8x32xf32>
    %246 = arith.addf %242, %245 : vector<8x32xf32>
    %247 = vector.extract_strided_slice %230 {offsets = [0, 224], sizes = [8, 32], strides = [1, 1]} : vector<8x256xf32> to vector<8x32xf32>
    %248 = math.tanh %246 : vector<8x32xf32>
    %249 = arith.mulf %247, %248 : vector<8x32xf32>
    %c7_69 = arith.constant 7 : index
    %c0_70 = arith.constant 0 : index
    %c0_71 = arith.constant 0 : index
    %250 = vector.load %arg12[%c7_69, %c0_70, %c0_71] : memref<8x8x256xf32, #tpu.memory_space<vmem>>, vector<1x8x128xf32>
    %251 = vector.shape_cast %250 : vector<1x8x128xf32> to vector<8x128xf32>
    %c0_72 = arith.constant 0 : index
    %c0_73 = arith.constant 0 : index
    %c128_74 = arith.constant 128 : index
    %252 = vector.load %arg12[%c0_72, %c0_73, %c128_74] : memref<8x8x256xf32, #tpu.memory_space<vmem>>, vector<1x8x128xf32>
    %253 = vector.shape_cast %252 : vector<1x8x128xf32> to vector<8x128xf32>
    %254 = tpu.concatenate %251, %253 in 1 : vector<8x128xf32>, vector<8x128xf32> -> vector<8x256xf32>
    %255 = tpu.concatenate %240, %249 in 1 : vector<8x32xf32>, vector<8x32xf32> -> vector<8x64xf32>
    %256 = arith.truncf %255 : vector<8x64xf32> to vector<8x64xbf16>
    %cst_75 = arith.constant dense<0.000000e+00> : vector<8x256xf32>
    %257 = tpu.matmul %256, %18, %cst_75 {dimension_numbers = #tpu.dot_dimension_numbers<[1], [0], [0], [1], [0, 0, 1, 1], [], []>} : vector<8x64xbf16>, vector<64x256xbf16>, vector<8x256xf32> -> vector<8x256xf32>
    %258 = arith.addf %257, %254 : vector<8x256xf32>
    %259 = arith.negf %258 : vector<8x256xf32>
    %260 = math.exp %259 : vector<8x256xf32>
    %cst_76 = arith.constant 1.000000e+00 : f32
    %261 = vector.broadcast %cst_76 : f32 to vector<8x256xf32>
    %262 = arith.addf %261, %260 : vector<8x256xf32>
    %263 = arith.divf %261, %262 : vector<8x256xf32>
    %264 = math.tanh %258 : vector<8x256xf32>
    %265 = vector.extract_strided_slice %263 {offsets = [0, 32], sizes = [8, 32], strides = [1, 1]} : vector<8x256xf32> to vector<8x32xf32>
    %266 = arith.mulf %265, %237 : vector<8x32xf32>
    %267 = vector.extract_strided_slice %263 {offsets = [0, 0], sizes = [8, 32], strides = [1, 1]} : vector<8x256xf32> to vector<8x32xf32>
    %268 = vector.extract_strided_slice %264 {offsets = [0, 64], sizes = [8, 32], strides = [1, 1]} : vector<8x256xf32> to vector<8x32xf32>
    %269 = arith.mulf %267, %268 : vector<8x32xf32>
    %270 = arith.addf %266, %269 : vector<8x32xf32>
    %271 = vector.extract_strided_slice %263 {offsets = [0, 96], sizes = [8, 32], strides = [1, 1]} : vector<8x256xf32> to vector<8x32xf32>
    %272 = math.tanh %270 : vector<8x32xf32>
    %273 = arith.mulf %271, %272 : vector<8x32xf32>
    %274 = vector.extract_strided_slice %263 {offsets = [0, 160], sizes = [8, 32], strides = [1, 1]} : vector<8x256xf32> to vector<8x32xf32>
    %275 = arith.mulf %274, %246 : vector<8x32xf32>
    %276 = vector.extract_strided_slice %263 {offsets = [0, 128], sizes = [8, 32], strides = [1, 1]} : vector<8x256xf32> to vector<8x32xf32>
    %277 = vector.extract_strided_slice %264 {offsets = [0, 192], sizes = [8, 32], strides = [1, 1]} : vector<8x256xf32> to vector<8x32xf32>
    %278 = arith.mulf %276, %277 : vector<8x32xf32>
    %279 = arith.addf %275, %278 : vector<8x32xf32>
    %280 = vector.extract_strided_slice %263 {offsets = [0, 224], sizes = [8, 32], strides = [1, 1]} : vector<8x256xf32> to vector<8x32xf32>
    %281 = math.tanh %279 : vector<8x32xf32>
    %282 = arith.mulf %280, %281 : vector<8x32xf32>
    %c0_77 = arith.constant 0 : index
    %c0_78 = arith.constant 0 : index
    %c0_79 = arith.constant 0 : index
    %283 = vector.load %arg9[%c0_77, %c0_78, %c0_79] : memref<4x8x32xf32, #tpu.memory_space<vmem>>, vector<1x8x32xf32>
    %284 = vector.shape_cast %283 : vector<1x8x32xf32> to vector<8x32xf32>
    %285 = vector.shape_cast %273 : vector<8x32xf32> to vector<1x8x32xf32>
    tpu.vector_store %arg9[%c0_77, %c0_78, %c0_79], %285 {strides = array<i32>} : memref<4x8x32xf32, #tpu.memory_space<vmem>>, vector<1x8x32xf32>,
    %c0_80 = arith.constant 0 : index
    %c0_81 = arith.constant 0 : index
    %c0_82 = arith.constant 0 : index
    %286 = vector.load %arg10[%c0_80, %c0_81, %c0_82] : memref<4x8x32xf32, #tpu.memory_space<vmem>>, vector<1x8x32xf32>
    %287 = vector.shape_cast %286 : vector<1x8x32xf32> to vector<8x32xf32>
    %288 = vector.shape_cast %270 : vector<8x32xf32> to vector<1x8x32xf32>
    tpu.vector_store %arg10[%c0_80, %c0_81, %c0_82], %288 {strides = array<i32>} : memref<4x8x32xf32, #tpu.memory_space<vmem>>, vector<1x8x32xf32>,
    %c1_83 = arith.constant 1 : index
    %c0_84 = arith.constant 0 : index
    %c0_85 = arith.constant 0 : index
    %289 = vector.load %arg9[%c1_83, %c0_84, %c0_85] : memref<4x8x32xf32, #tpu.memory_space<vmem>>, vector<1x8x32xf32>
    %290 = vector.shape_cast %289 : vector<1x8x32xf32> to vector<8x32xf32>
    %291 = vector.shape_cast %282 : vector<8x32xf32> to vector<1x8x32xf32>
    tpu.vector_store %arg9[%c1_83, %c0_84, %c0_85], %291 {strides = array<i32>} : memref<4x8x32xf32, #tpu.memory_space<vmem>>, vector<1x8x32xf32>,
    %c1_86 = arith.constant 1 : index
    %c0_87 = arith.constant 0 : index
    %c0_88 = arith.constant 0 : index
    %292 = vector.load %arg10[%c1_86, %c0_87, %c0_88] : memref<4x8x32xf32, #tpu.memory_space<vmem>>, vector<1x8x32xf32>
    %293 = vector.shape_cast %292 : vector<1x8x32xf32> to vector<8x32xf32>
    %294 = vector.shape_cast %279 : vector<8x32xf32> to vector<1x8x32xf32>
    tpu.vector_store %arg10[%c1_86, %c0_87, %c0_88], %294 {strides = array<i32>} : memref<4x8x32xf32, #tpu.memory_space<vmem>>, vector<1x8x32xf32>,
    %295 = vector.shape_cast %42 : vector<8x32xf32> to vector<1x8x32xf32>
    %296 = vector.shape_cast %75 : vector<8x32xf32> to vector<1x8x32xf32>
    %297 = vector.shape_cast %108 : vector<8x32xf32> to vector<1x8x32xf32>
    %298 = vector.shape_cast %141 : vector<8x32xf32> to vector<1x8x32xf32>
    %299 = vector.shape_cast %174 : vector<8x32xf32> to vector<1x8x32xf32>
    %300 = vector.shape_cast %207 : vector<8x32xf32> to vector<1x8x32xf32>
    %301 = vector.shape_cast %240 : vector<8x32xf32> to vector<1x8x32xf32>
    %302 = vector.shape_cast %273 : vector<8x32xf32> to vector<1x8x32xf32>
    %303 = tpu.concatenate %295, %296, %297, %298, %299, %300, %301, %302 in 0 : vector<1x8x32xf32>, vector<1x8x32xf32>, vector<1x8x32xf32>, vector<1x8x32xf32>, vector<1x8x32xf32>, vector<1x8x32xf32>, vector<1x8x32xf32>, vector<1x8x32xf32> -> vector<8x8x32xf32>
    %304 = vector.shape_cast %282 : vector<8x32xf32> to vector<1x8x32xf32>
    %305 = vector.shape_cast %249 : vector<8x32xf32> to vector<1x8x32xf32>
    %306 = vector.shape_cast %216 : vector<8x32xf32> to vector<1x8x32xf32>
    %307 = vector.shape_cast %183 : vector<8x32xf32> to vector<1x8x32xf32>
    %308 = vector.shape_cast %150 : vector<8x32xf32> to vector<1x8x32xf32>
    %309 = vector.shape_cast %117 : vector<8x32xf32> to vector<1x8x32xf32>
    %310 = vector.shape_cast %84 : vector<8x32xf32> to vector<1x8x32xf32>
    %311 = vector.shape_cast %51 : vector<8x32xf32> to vector<1x8x32xf32>
    %312 = tpu.concatenate %304, %305, %306, %307, %308, %309, %310, %311 in 0 : vector<1x8x32xf32>, vector<1x8x32xf32>, vector<1x8x32xf32>, vector<1x8x32xf32>, vector<1x8x32xf32>, vector<1x8x32xf32>, vector<1x8x32xf32>, vector<1x8x32xf32> -> vector<8x8x32xf32>
    %313 = tpu.concatenate %303, %312 in 2 : vector<8x8x32xf32>, vector<8x8x32xf32> -> vector<8x8x64xf32>
    %314 = arith.truncf %313 : vector<8x8x64xf32> to vector<8x8x64xbf16>
    %315 = vector.shape_cast %314 : vector<8x8x64xbf16> to vector<64x64xbf16>
    %c1_89 = arith.constant 1 : index
    %c0_90 = arith.constant 0 : index
    %c0_91 = arith.constant 0 : index
    %316 = vector.load %arg2[%c1_89, %c0_90, %c0_91] : memref<2x64x256xbf16, #tpu.memory_space<vmem>>, vector<1x64x256xbf16>
    %317 = vector.shape_cast %316 : vector<1x64x256xbf16> to vector<64x256xbf16>
    %cst_92 = arith.constant dense<0.000000e+00> : vector<64x256xf32>
    %318 = tpu.matmul %315, %317, %cst_92 {dimension_numbers = #tpu.dot_dimension_numbers<[1], [0], [0], [1], [0, 0, 1, 1], [], []>} : vector<64x64xbf16>, vector<64x256xbf16>, vector<64x256xf32> -> vector<64x256xf32>
    %c1_93 = arith.constant 1 : index
    %c0_94 = arith.constant 0 : index
    %c0_95 = arith.constant 0 : index
    %319 = vector.load %arg4[%c1_93, %c0_94, %c0_95] : memref<2x1x256xf32, #tpu.memory_space<vmem>>, vector<1x1x256xf32>
    %320 = vector.shape_cast %319 : vector<1x1x256xf32> to vector<1x256xf32>
    %321 = vector.broadcast %320 : vector<1x256xf32> to vector<64x256xf32>
    %322 = arith.addf %318, %321 : vector<64x256xf32>
    %323 = vector.shape_cast %322 : vector<64x256xf32> to vector<8x8x256xf32>
    %c0_96 = arith.constant 0 : index
    %c0_97 = arith.constant 0 : index
    %c0_98 = arith.constant 0 : index
    %324 = vector.load %arg12[%c0_96, %c0_97, %c0_98] : memref<8x8x256xf32, #tpu.memory_space<vmem>>, vector<8x8x256xf32>
    tpu.vector_store %arg12[%c0_96, %c0_97, %c0_98], %323 {strides = array<i32>} : memref<8x8x256xf32, #tpu.memory_space<vmem>>, vector<8x8x256xf32>,
    %cst_99 = arith.constant 0.000000e+00 : bf16
    %325 = vector.broadcast %cst_99 : bf16 to vector<32x128xbf16>
    %c1_100 = arith.constant 1 : index
    %c0_101 = arith.constant 0 : index
    %c0_102 = arith.constant 0 : index
    %c0_103 = arith.constant 0 : index
    %326 = vector.load %arg3[%c1_100, %c0_101, %c0_102, %c0_103] : memref<2x2x32x128xbf16, #tpu.memory_space<vmem>>, vector<1x1x32x128xbf16>
    %327 = vector.shape_cast %326 : vector<1x1x32x128xbf16> to vector<32x128xbf16>
    %328 = tpu.concatenate %327, %325 in 1 : vector<32x128xbf16>, vector<32x128xbf16> -> vector<32x256xbf16>
    %c1_104 = arith.constant 1 : index
    %c1_105 = arith.constant 1 : index
    %c0_106 = arith.constant 0 : index
    %c0_107 = arith.constant 0 : index
    %329 = vector.load %arg3[%c1_104, %c1_105, %c0_106, %c0_107] : memref<2x2x32x128xbf16, #tpu.memory_space<vmem>>, vector<1x1x32x128xbf16>
    %330 = vector.shape_cast %329 : vector<1x1x32x128xbf16> to vector<32x128xbf16>
    %331 = tpu.concatenate %325, %330 in 1 : vector<32x128xbf16>, vector<32x128xbf16> -> vector<32x256xbf16>
    %332 = tpu.concatenate %328, %331 in 0 : vector<32x256xbf16>, vector<32x256xbf16> -> vector<64x256xbf16>
    %c0_108 = arith.constant 0 : index
    %c0_109 = arith.constant 0 : index
    %c0_110 = arith.constant 0 : index
    %333 = vector.load %arg12[%c0_108, %c0_109, %c0_110] : memref<8x8x256xf32, #tpu.memory_space<vmem>>, vector<1x8x128xf32>
    %334 = vector.shape_cast %333 : vector<1x8x128xf32> to vector<8x128xf32>
    %c7_111 = arith.constant 7 : index
    %c0_112 = arith.constant 0 : index
    %c128_113 = arith.constant 128 : index
    %335 = vector.load %arg12[%c7_111, %c0_112, %c128_113] : memref<8x8x256xf32, #tpu.memory_space<vmem>>, vector<1x8x128xf32>
    %336 = vector.shape_cast %335 : vector<1x8x128xf32> to vector<8x128xf32>
    %337 = tpu.concatenate %334, %336 in 1 : vector<8x128xf32>, vector<8x128xf32> -> vector<8x256xf32>
    %338 = tpu.concatenate %0, %0 in 1 : vector<8x32xf32>, vector<8x32xf32> -> vector<8x64xf32>
    %339 = arith.truncf %338 : vector<8x64xf32> to vector<8x64xbf16>
    %cst_114 = arith.constant dense<0.000000e+00> : vector<8x256xf32>
    %340 = tpu.matmul %339, %332, %cst_114 {dimension_numbers = #tpu.dot_dimension_numbers<[1], [0], [0], [1], [0, 0, 1, 1], [], []>} : vector<8x64xbf16>, vector<64x256xbf16>, vector<8x256xf32> -> vector<8x256xf32>
    %341 = arith.addf %340, %337 : vector<8x256xf32>
    %342 = arith.negf %341 : vector<8x256xf32>
    %343 = math.exp %342 : vector<8x256xf32>
    %cst_115 = arith.constant 1.000000e+00 : f32
    %344 = vector.broadcast %cst_115 : f32 to vector<8x256xf32>
    %345 = arith.addf %344, %343 : vector<8x256xf32>
    %346 = arith.divf %344, %345 : vector<8x256xf32>
    %347 = math.tanh %341 : vector<8x256xf32>
    %348 = vector.extract_strided_slice %346 {offsets = [0, 32], sizes = [8, 32], strides = [1, 1]} : vector<8x256xf32> to vector<8x32xf32>
    %349 = arith.mulf %348, %0 : vector<8x32xf32>
    %350 = vector.extract_strided_slice %346 {offsets = [0, 0], sizes = [8, 32], strides = [1, 1]} : vector<8x256xf32> to vector<8x32xf32>
    %351 = vector.extract_strided_slice %347 {offsets = [0, 64], sizes = [8, 32], strides = [1, 1]} : vector<8x256xf32> to vector<8x32xf32>
    %352 = arith.mulf %350, %351 : vector<8x32xf32>
    %353 = arith.addf %349, %352 : vector<8x32xf32>
    %354 = vector.extract_strided_slice %346 {offsets = [0, 96], sizes = [8, 32], strides = [1, 1]} : vector<8x256xf32> to vector<8x32xf32>
    %355 = math.tanh %353 : vector<8x32xf32>
    %356 = arith.mulf %354, %355 : vector<8x32xf32>
    %357 = vector.extract_strided_slice %346 {offsets = [0, 160], sizes = [8, 32], strides = [1, 1]} : vector<8x256xf32> to vector<8x32xf32>
    %358 = arith.mulf %357, %0 : vector<8x32xf32>
    %359 = vector.extract_strided_slice %346 {offsets = [0, 128], sizes = [8, 32], strides = [1, 1]} : vector<8x256xf32> to vector<8x32xf32>
    %360 = vector.extract_strided_slice %347 {offsets = [0, 192], sizes = [8, 32], strides = [1, 1]} : vector<8x256xf32> to vector<8x32xf32>
    %361 = arith.mulf %359, %360 : vector<8x32xf32>
    %362 = arith.addf %358, %361 : vector<8x32xf32>
    %363 = vector.extract_strided_slice %346 {offsets = [0, 224], sizes = [8, 32], strides = [1, 1]} : vector<8x256xf32> to vector<8x32xf32>
    %364 = math.tanh %362 : vector<8x32xf32>
    %365 = arith.mulf %363, %364 : vector<8x32xf32>
    %c1_116 = arith.constant 1 : index
    %c0_117 = arith.constant 0 : index
    %c0_118 = arith.constant 0 : index
    %366 = vector.load %arg12[%c1_116, %c0_117, %c0_118] : memref<8x8x256xf32, #tpu.memory_space<vmem>>, vector<1x8x128xf32>
    %367 = vector.shape_cast %366 : vector<1x8x128xf32> to vector<8x128xf32>
    %c6_119 = arith.constant 6 : index
    %c0_120 = arith.constant 0 : index
    %c128_121 = arith.constant 128 : index
    %368 = vector.load %arg12[%c6_119, %c0_120, %c128_121] : memref<8x8x256xf32, #tpu.memory_space<vmem>>, vector<1x8x128xf32>
    %369 = vector.shape_cast %368 : vector<1x8x128xf32> to vector<8x128xf32>
    %370 = tpu.concatenate %367, %369 in 1 : vector<8x128xf32>, vector<8x128xf32> -> vector<8x256xf32>
    %371 = tpu.concatenate %356, %365 in 1 : vector<8x32xf32>, vector<8x32xf32> -> vector<8x64xf32>
    %372 = arith.truncf %371 : vector<8x64xf32> to vector<8x64xbf16>
    %cst_122 = arith.constant dense<0.000000e+00> : vector<8x256xf32>
    %373 = tpu.matmul %372, %332, %cst_122 {dimension_numbers = #tpu.dot_dimension_numbers<[1], [0], [0], [1], [0, 0, 1, 1], [], []>} : vector<8x64xbf16>, vector<64x256xbf16>, vector<8x256xf32> -> vector<8x256xf32>
    %374 = arith.addf %373, %370 : vector<8x256xf32>
    %375 = arith.negf %374 : vector<8x256xf32>
    %376 = math.exp %375 : vector<8x256xf32>
    %cst_123 = arith.constant 1.000000e+00 : f32
    %377 = vector.broadcast %cst_123 : f32 to vector<8x256xf32>
    %378 = arith.addf %377, %376 : vector<8x256xf32>
    %379 = arith.divf %377, %378 : vector<8x256xf32>
    %380 = math.tanh %374 : vector<8x256xf32>
    %381 = vector.extract_strided_slice %379 {offsets = [0, 32], sizes = [8, 32], strides = [1, 1]} : vector<8x256xf32> to vector<8x32xf32>
    %382 = arith.mulf %381, %353 : vector<8x32xf32>
    %383 = vector.extract_strided_slice %379 {offsets = [0, 0], sizes = [8, 32], strides = [1, 1]} : vector<8x256xf32> to vector<8x32xf32>
    %384 = vector.extract_strided_slice %380 {offsets = [0, 64], sizes = [8, 32], strides = [1, 1]} : vector<8x256xf32> to vector<8x32xf32>
    %385 = arith.mulf %383, %384 : vector<8x32xf32>
    %386 = arith.addf %382, %385 : vector<8x32xf32>
    %387 = vector.extract_strided_slice %379 {offsets = [0, 96], sizes = [8, 32], strides = [1, 1]} : vector<8x256xf32> to vector<8x32xf32>
    %388 = math.tanh %386 : vector<8x32xf32>
    %389 = arith.mulf %387, %388 : vector<8x32xf32>
    %390 = vector.extract_strided_slice %379 {offsets = [0, 160], sizes = [8, 32], strides = [1, 1]} : vector<8x256xf32> to vector<8x32xf32>
    %391 = arith.mulf %390, %362 : vector<8x32xf32>
    %392 = vector.extract_strided_slice %379 {offsets = [0, 128], sizes = [8, 32], strides = [1, 1]} : vector<8x256xf32> to vector<8x32xf32>
    %393 = vector.extract_strided_slice %380 {offsets = [0, 192], sizes = [8, 32], strides = [1, 1]} : vector<8x256xf32> to vector<8x32xf32>
    %394 = arith.mulf %392, %393 : vector<8x32xf32>
    %395 = arith.addf %391, %394 : vector<8x32xf32>
    %396 = vector.extract_strided_slice %379 {offsets = [0, 224], sizes = [8, 32], strides = [1, 1]} : vector<8x256xf32> to vector<8x32xf32>
    %397 = math.tanh %395 : vector<8x32xf32>
    %398 = arith.mulf %396, %397 : vector<8x32xf32>
    %c2_124 = arith.constant 2 : index
    %c0_125 = arith.constant 0 : index
    %c0_126 = arith.constant 0 : index
    %399 = vector.load %arg12[%c2_124, %c0_125, %c0_126] : memref<8x8x256xf32, #tpu.memory_space<vmem>>, vector<1x8x128xf32>
    %400 = vector.shape_cast %399 : vector<1x8x128xf32> to vector<8x128xf32>
    %c5_127 = arith.constant 5 : index
    %c0_128 = arith.constant 0 : index
    %c128_129 = arith.constant 128 : index
    %401 = vector.load %arg12[%c5_127, %c0_128, %c128_129] : memref<8x8x256xf32, #tpu.memory_space<vmem>>, vector<1x8x128xf32>
    %402 = vector.shape_cast %401 : vector<1x8x128xf32> to vector<8x128xf32>
    %403 = tpu.concatenate %400, %402 in 1 : vector<8x128xf32>, vector<8x128xf32> -> vector<8x256xf32>
    %404 = tpu.concatenate %389, %398 in 1 : vector<8x32xf32>, vector<8x32xf32> -> vector<8x64xf32>
    %405 = arith.truncf %404 : vector<8x64xf32> to vector<8x64xbf16>
    %cst_130 = arith.constant dense<0.000000e+00> : vector<8x256xf32>
    %406 = tpu.matmul %405, %332, %cst_130 {dimension_numbers = #tpu.dot_dimension_numbers<[1], [0], [0], [1], [0, 0, 1, 1], [], []>} : vector<8x64xbf16>, vector<64x256xbf16>, vector<8x256xf32> -> vector<8x256xf32>
    %407 = arith.addf %406, %403 : vector<8x256xf32>
    %408 = arith.negf %407 : vector<8x256xf32>
    %409 = math.exp %408 : vector<8x256xf32>
    %cst_131 = arith.constant 1.000000e+00 : f32
    %410 = vector.broadcast %cst_131 : f32 to vector<8x256xf32>
    %411 = arith.addf %410, %409 : vector<8x256xf32>
    %412 = arith.divf %410, %411 : vector<8x256xf32>
    %413 = math.tanh %407 : vector<8x256xf32>
    %414 = vector.extract_strided_slice %412 {offsets = [0, 32], sizes = [8, 32], strides = [1, 1]} : vector<8x256xf32> to vector<8x32xf32>
    %415 = arith.mulf %414, %386 : vector<8x32xf32>
    %416 = vector.extract_strided_slice %412 {offsets = [0, 0], sizes = [8, 32], strides = [1, 1]} : vector<8x256xf32> to vector<8x32xf32>
    %417 = vector.extract_strided_slice %413 {offsets = [0, 64], sizes = [8, 32], strides = [1, 1]} : vector<8x256xf32> to vector<8x32xf32>
    %418 = arith.mulf %416, %417 : vector<8x32xf32>
    %419 = arith.addf %415, %418 : vector<8x32xf32>
    %420 = vector.extract_strided_slice %412 {offsets = [0, 96], sizes = [8, 32], strides = [1, 1]} : vector<8x256xf32> to vector<8x32xf32>
    %421 = math.tanh %419 : vector<8x32xf32>
    %422 = arith.mulf %420, %421 : vector<8x32xf32>
    %423 = vector.extract_strided_slice %412 {offsets = [0, 160], sizes = [8, 32], strides = [1, 1]} : vector<8x256xf32> to vector<8x32xf32>
    %424 = arith.mulf %423, %395 : vector<8x32xf32>
    %425 = vector.extract_strided_slice %412 {offsets = [0, 128], sizes = [8, 32], strides = [1, 1]} : vector<8x256xf32> to vector<8x32xf32>
    %426 = vector.extract_strided_slice %413 {offsets = [0, 192], sizes = [8, 32], strides = [1, 1]} : vector<8x256xf32> to vector<8x32xf32>
    %427 = arith.mulf %425, %426 : vector<8x32xf32>
    %428 = arith.addf %424, %427 : vector<8x32xf32>
    %429 = vector.extract_strided_slice %412 {offsets = [0, 224], sizes = [8, 32], strides = [1, 1]} : vector<8x256xf32> to vector<8x32xf32>
    %430 = math.tanh %428 : vector<8x32xf32>
    %431 = arith.mulf %429, %430 : vector<8x32xf32>
    %c3_132 = arith.constant 3 : index
    %c0_133 = arith.constant 0 : index
    %c0_134 = arith.constant 0 : index
    %432 = vector.load %arg12[%c3_132, %c0_133, %c0_134] : memref<8x8x256xf32, #tpu.memory_space<vmem>>, vector<1x8x128xf32>
    %433 = vector.shape_cast %432 : vector<1x8x128xf32> to vector<8x128xf32>
    %c4_135 = arith.constant 4 : index
    %c0_136 = arith.constant 0 : index
    %c128_137 = arith.constant 128 : index
    %434 = vector.load %arg12[%c4_135, %c0_136, %c128_137] : memref<8x8x256xf32, #tpu.memory_space<vmem>>, vector<1x8x128xf32>
    %435 = vector.shape_cast %434 : vector<1x8x128xf32> to vector<8x128xf32>
    %436 = tpu.concatenate %433, %435 in 1 : vector<8x128xf32>, vector<8x128xf32> -> vector<8x256xf32>
    %437 = tpu.concatenate %422, %431 in 1 : vector<8x32xf32>, vector<8x32xf32> -> vector<8x64xf32>
    %438 = arith.truncf %437 : vector<8x64xf32> to vector<8x64xbf16>
    %cst_138 = arith.constant dense<0.000000e+00> : vector<8x256xf32>
    %439 = tpu.matmul %438, %332, %cst_138 {dimension_numbers = #tpu.dot_dimension_numbers<[1], [0], [0], [1], [0, 0, 1, 1], [], []>} : vector<8x64xbf16>, vector<64x256xbf16>, vector<8x256xf32> -> vector<8x256xf32>
    %440 = arith.addf %439, %436 : vector<8x256xf32>
    %441 = arith.negf %440 : vector<8x256xf32>
    %442 = math.exp %441 : vector<8x256xf32>
    %cst_139 = arith.constant 1.000000e+00 : f32
    %443 = vector.broadcast %cst_139 : f32 to vector<8x256xf32>
    %444 = arith.addf %443, %442 : vector<8x256xf32>
    %445 = arith.divf %443, %444 : vector<8x256xf32>
    %446 = math.tanh %440 : vector<8x256xf32>
    %447 = vector.extract_strided_slice %445 {offsets = [0, 32], sizes = [8, 32], strides = [1, 1]} : vector<8x256xf32> to vector<8x32xf32>
    %448 = arith.mulf %447, %419 : vector<8x32xf32>
    %449 = vector.extract_strided_slice %445 {offsets = [0, 0], sizes = [8, 32], strides = [1, 1]} : vector<8x256xf32> to vector<8x32xf32>
    %450 = vector.extract_strided_slice %446 {offsets = [0, 64], sizes = [8, 32], strides = [1, 1]} : vector<8x256xf32> to vector<8x32xf32>
    %451 = arith.mulf %449, %450 : vector<8x32xf32>
    %452 = arith.addf %448, %451 : vector<8x32xf32>
    %453 = vector.extract_strided_slice %445 {offsets = [0, 96], sizes = [8, 32], strides = [1, 1]} : vector<8x256xf32> to vector<8x32xf32>
    %454 = math.tanh %452 : vector<8x32xf32>
    %455 = arith.mulf %453, %454 : vector<8x32xf32>
    %456 = vector.extract_strided_slice %445 {offsets = [0, 160], sizes = [8, 32], strides = [1, 1]} : vector<8x256xf32> to vector<8x32xf32>
    %457 = arith.mulf %456, %428 : vector<8x32xf32>
    %458 = vector.extract_strided_slice %445 {offsets = [0, 128], sizes = [8, 32], strides = [1, 1]} : vector<8x256xf32> to vector<8x32xf32>
    %459 = vector.extract_strided_slice %446 {offsets = [0, 192], sizes = [8, 32], strides = [1, 1]} : vector<8x256xf32> to vector<8x32xf32>
    %460 = arith.mulf %458, %459 : vector<8x32xf32>
    %461 = arith.addf %457, %460 : vector<8x32xf32>
    %462 = vector.extract_strided_slice %445 {offsets = [0, 224], sizes = [8, 32], strides = [1, 1]} : vector<8x256xf32> to vector<8x32xf32>
    %463 = math.tanh %461 : vector<8x32xf32>
    %464 = arith.mulf %462, %463 : vector<8x32xf32>
    %c4_140 = arith.constant 4 : index
    %c0_141 = arith.constant 0 : index
    %c0_142 = arith.constant 0 : index
    %465 = vector.load %arg12[%c4_140, %c0_141, %c0_142] : memref<8x8x256xf32, #tpu.memory_space<vmem>>, vector<1x8x128xf32>
    %466 = vector.shape_cast %465 : vector<1x8x128xf32> to vector<8x128xf32>
    %c3_143 = arith.constant 3 : index
    %c0_144 = arith.constant 0 : index
    %c128_145 = arith.constant 128 : index
    %467 = vector.load %arg12[%c3_143, %c0_144, %c128_145] : memref<8x8x256xf32, #tpu.memory_space<vmem>>, vector<1x8x128xf32>
    %468 = vector.shape_cast %467 : vector<1x8x128xf32> to vector<8x128xf32>
    %469 = tpu.concatenate %466, %468 in 1 : vector<8x128xf32>, vector<8x128xf32> -> vector<8x256xf32>
    %470 = tpu.concatenate %455, %464 in 1 : vector<8x32xf32>, vector<8x32xf32> -> vector<8x64xf32>
    %471 = arith.truncf %470 : vector<8x64xf32> to vector<8x64xbf16>
    %cst_146 = arith.constant dense<0.000000e+00> : vector<8x256xf32>
    %472 = tpu.matmul %471, %332, %cst_146 {dimension_numbers = #tpu.dot_dimension_numbers<[1], [0], [0], [1], [0, 0, 1, 1], [], []>} : vector<8x64xbf16>, vector<64x256xbf16>, vector<8x256xf32> -> vector<8x256xf32>
    %473 = arith.addf %472, %469 : vector<8x256xf32>
    %474 = arith.negf %473 : vector<8x256xf32>
    %475 = math.exp %474 : vector<8x256xf32>
    %cst_147 = arith.constant 1.000000e+00 : f32
    %476 = vector.broadcast %cst_147 : f32 to vector<8x256xf32>
    %477 = arith.addf %476, %475 : vector<8x256xf32>
    %478 = arith.divf %476, %477 : vector<8x256xf32>
    %479 = math.tanh %473 : vector<8x256xf32>
    %480 = vector.extract_strided_slice %478 {offsets = [0, 32], sizes = [8, 32], strides = [1, 1]} : vector<8x256xf32> to vector<8x32xf32>
    %481 = arith.mulf %480, %452 : vector<8x32xf32>
    %482 = vector.extract_strided_slice %478 {offsets = [0, 0], sizes = [8, 32], strides = [1, 1]} : vector<8x256xf32> to vector<8x32xf32>
    %483 = vector.extract_strided_slice %479 {offsets = [0, 64], sizes = [8, 32], strides = [1, 1]} : vector<8x256xf32> to vector<8x32xf32>
    %484 = arith.mulf %482, %483 : vector<8x32xf32>
    %485 = arith.addf %481, %484 : vector<8x32xf32>
    %486 = vector.extract_strided_slice %478 {offsets = [0, 96], sizes = [8, 32], strides = [1, 1]} : vector<8x256xf32> to vector<8x32xf32>
    %487 = math.tanh %485 : vector<8x32xf32>
    %488 = arith.mulf %486, %487 : vector<8x32xf32>
    %489 = vector.extract_strided_slice %478 {offsets = [0, 160], sizes = [8, 32], strides = [1, 1]} : vector<8x256xf32> to vector<8x32xf32>
    %490 = arith.mulf %489, %461 : vector<8x32xf32>
    %491 = vector.extract_strided_slice %478 {offsets = [0, 128], sizes = [8, 32], strides = [1, 1]} : vector<8x256xf32> to vector<8x32xf32>
    %492 = vector.extract_strided_slice %479 {offsets = [0, 192], sizes = [8, 32], strides = [1, 1]} : vector<8x256xf32> to vector<8x32xf32>
    %493 = arith.mulf %491, %492 : vector<8x32xf32>
    %494 = arith.addf %490, %493 : vector<8x32xf32>
    %495 = vector.extract_strided_slice %478 {offsets = [0, 224], sizes = [8, 32], strides = [1, 1]} : vector<8x256xf32> to vector<8x32xf32>
    %496 = math.tanh %494 : vector<8x32xf32>
    %497 = arith.mulf %495, %496 : vector<8x32xf32>
    %c5_148 = arith.constant 5 : index
    %c0_149 = arith.constant 0 : index
    %c0_150 = arith.constant 0 : index
    %498 = vector.load %arg12[%c5_148, %c0_149, %c0_150] : memref<8x8x256xf32, #tpu.memory_space<vmem>>, vector<1x8x128xf32>
    %499 = vector.shape_cast %498 : vector<1x8x128xf32> to vector<8x128xf32>
    %c2_151 = arith.constant 2 : index
    %c0_152 = arith.constant 0 : index
    %c128_153 = arith.constant 128 : index
    %500 = vector.load %arg12[%c2_151, %c0_152, %c128_153] : memref<8x8x256xf32, #tpu.memory_space<vmem>>, vector<1x8x128xf32>
    %501 = vector.shape_cast %500 : vector<1x8x128xf32> to vector<8x128xf32>
    %502 = tpu.concatenate %499, %501 in 1 : vector<8x128xf32>, vector<8x128xf32> -> vector<8x256xf32>
    %503 = tpu.concatenate %488, %497 in 1 : vector<8x32xf32>, vector<8x32xf32> -> vector<8x64xf32>
    %504 = arith.truncf %503 : vector<8x64xf32> to vector<8x64xbf16>
    %cst_154 = arith.constant dense<0.000000e+00> : vector<8x256xf32>
    %505 = tpu.matmul %504, %332, %cst_154 {dimension_numbers = #tpu.dot_dimension_numbers<[1], [0], [0], [1], [0, 0, 1, 1], [], []>} : vector<8x64xbf16>, vector<64x256xbf16>, vector<8x256xf32> -> vector<8x256xf32>
    %506 = arith.addf %505, %502 : vector<8x256xf32>
    %507 = arith.negf %506 : vector<8x256xf32>
    %508 = math.exp %507 : vector<8x256xf32>
    %cst_155 = arith.constant 1.000000e+00 : f32
    %509 = vector.broadcast %cst_155 : f32 to vector<8x256xf32>
    %510 = arith.addf %509, %508 : vector<8x256xf32>
    %511 = arith.divf %509, %510 : vector<8x256xf32>
    %512 = math.tanh %506 : vector<8x256xf32>
    %513 = vector.extract_strided_slice %511 {offsets = [0, 32], sizes = [8, 32], strides = [1, 1]} : vector<8x256xf32> to vector<8x32xf32>
    %514 = arith.mulf %513, %485 : vector<8x32xf32>
    %515 = vector.extract_strided_slice %511 {offsets = [0, 0], sizes = [8, 32], strides = [1, 1]} : vector<8x256xf32> to vector<8x32xf32>
    %516 = vector.extract_strided_slice %512 {offsets = [0, 64], sizes = [8, 32], strides = [1, 1]} : vector<8x256xf32> to vector<8x32xf32>
    %517 = arith.mulf %515, %516 : vector<8x32xf32>
    %518 = arith.addf %514, %517 : vector<8x32xf32>
    %519 = vector.extract_strided_slice %511 {offsets = [0, 96], sizes = [8, 32], strides = [1, 1]} : vector<8x256xf32> to vector<8x32xf32>
    %520 = math.tanh %518 : vector<8x32xf32>
    %521 = arith.mulf %519, %520 : vector<8x32xf32>
    %522 = vector.extract_strided_slice %511 {offsets = [0, 160], sizes = [8, 32], strides = [1, 1]} : vector<8x256xf32> to vector<8x32xf32>
    %523 = arith.mulf %522, %494 : vector<8x32xf32>
    %524 = vector.extract_strided_slice %511 {offsets = [0, 128], sizes = [8, 32], strides = [1, 1]} : vector<8x256xf32> to vector<8x32xf32>
    %525 = vector.extract_strided_slice %512 {offsets = [0, 192], sizes = [8, 32], strides = [1, 1]} : vector<8x256xf32> to vector<8x32xf32>
    %526 = arith.mulf %524, %525 : vector<8x32xf32>
    %527 = arith.addf %523, %526 : vector<8x32xf32>
    %528 = vector.extract_strided_slice %511 {offsets = [0, 224], sizes = [8, 32], strides = [1, 1]} : vector<8x256xf32> to vector<8x32xf32>
    %529 = math.tanh %527 : vector<8x32xf32>
    %530 = arith.mulf %528, %529 : vector<8x32xf32>
    %c6_156 = arith.constant 6 : index
    %c0_157 = arith.constant 0 : index
    %c0_158 = arith.constant 0 : index
    %531 = vector.load %arg12[%c6_156, %c0_157, %c0_158] : memref<8x8x256xf32, #tpu.memory_space<vmem>>, vector<1x8x128xf32>
    %532 = vector.shape_cast %531 : vector<1x8x128xf32> to vector<8x128xf32>
    %c1_159 = arith.constant 1 : index
    %c0_160 = arith.constant 0 : index
    %c128_161 = arith.constant 128 : index
    %533 = vector.load %arg12[%c1_159, %c0_160, %c128_161] : memref<8x8x256xf32, #tpu.memory_space<vmem>>, vector<1x8x128xf32>
    %534 = vector.shape_cast %533 : vector<1x8x128xf32> to vector<8x128xf32>
    %535 = tpu.concatenate %532, %534 in 1 : vector<8x128xf32>, vector<8x128xf32> -> vector<8x256xf32>
    %536 = tpu.concatenate %521, %530 in 1 : vector<8x32xf32>, vector<8x32xf32> -> vector<8x64xf32>
    %537 = arith.truncf %536 : vector<8x64xf32> to vector<8x64xbf16>
    %cst_162 = arith.constant dense<0.000000e+00> : vector<8x256xf32>
    %538 = tpu.matmul %537, %332, %cst_162 {dimension_numbers = #tpu.dot_dimension_numbers<[1], [0], [0], [1], [0, 0, 1, 1], [], []>} : vector<8x64xbf16>, vector<64x256xbf16>, vector<8x256xf32> -> vector<8x256xf32>
    %539 = arith.addf %538, %535 : vector<8x256xf32>
    %540 = arith.negf %539 : vector<8x256xf32>
    %541 = math.exp %540 : vector<8x256xf32>
    %cst_163 = arith.constant 1.000000e+00 : f32
    %542 = vector.broadcast %cst_163 : f32 to vector<8x256xf32>
    %543 = arith.addf %542, %541 : vector<8x256xf32>
    %544 = arith.divf %542, %543 : vector<8x256xf32>
    %545 = math.tanh %539 : vector<8x256xf32>
    %546 = vector.extract_strided_slice %544 {offsets = [0, 32], sizes = [8, 32], strides = [1, 1]} : vector<8x256xf32> to vector<8x32xf32>
    %547 = arith.mulf %546, %518 : vector<8x32xf32>
    %548 = vector.extract_strided_slice %544 {offsets = [0, 0], sizes = [8, 32], strides = [1, 1]} : vector<8x256xf32> to vector<8x32xf32>
    %549 = vector.extract_strided_slice %545 {offsets = [0, 64], sizes = [8, 32], strides = [1, 1]} : vector<8x256xf32> to vector<8x32xf32>
    %550 = arith.mulf %548, %549 : vector<8x32xf32>
    %551 = arith.addf %547, %550 : vector<8x32xf32>
    %552 = vector.extract_strided_slice %544 {offsets = [0, 96], sizes = [8, 32], strides = [1, 1]} : vector<8x256xf32> to vector<8x32xf32>
    %553 = math.tanh %551 : vector<8x32xf32>
    %554 = arith.mulf %552, %553 : vector<8x32xf32>
    %555 = vector.extract_strided_slice %544 {offsets = [0, 160], sizes = [8, 32], strides = [1, 1]} : vector<8x256xf32> to vector<8x32xf32>
    %556 = arith.mulf %555, %527 : vector<8x32xf32>
    %557 = vector.extract_strided_slice %544 {offsets = [0, 128], sizes = [8, 32], strides = [1, 1]} : vector<8x256xf32> to vector<8x32xf32>
    %558 = vector.extract_strided_slice %545 {offsets = [0, 192], sizes = [8, 32], strides = [1, 1]} : vector<8x256xf32> to vector<8x32xf32>
    %559 = arith.mulf %557, %558 : vector<8x32xf32>
    %560 = arith.addf %556, %559 : vector<8x32xf32>
    %561 = vector.extract_strided_slice %544 {offsets = [0, 224], sizes = [8, 32], strides = [1, 1]} : vector<8x256xf32> to vector<8x32xf32>
    %562 = math.tanh %560 : vector<8x32xf32>
    %563 = arith.mulf %561, %562 : vector<8x32xf32>
    %c7_164 = arith.constant 7 : index
    %c0_165 = arith.constant 0 : index
    %c0_166 = arith.constant 0 : index
    %564 = vector.load %arg12[%c7_164, %c0_165, %c0_166] : memref<8x8x256xf32, #tpu.memory_space<vmem>>, vector<1x8x128xf32>
    %565 = vector.shape_cast %564 : vector<1x8x128xf32> to vector<8x128xf32>
    %c0_167 = arith.constant 0 : index
    %c0_168 = arith.constant 0 : index
    %c128_169 = arith.constant 128 : index
    %566 = vector.load %arg12[%c0_167, %c0_168, %c128_169] : memref<8x8x256xf32, #tpu.memory_space<vmem>>, vector<1x8x128xf32>
    %567 = vector.shape_cast %566 : vector<1x8x128xf32> to vector<8x128xf32>
    %568 = tpu.concatenate %565, %567 in 1 : vector<8x128xf32>, vector<8x128xf32> -> vector<8x256xf32>
    %569 = tpu.concatenate %554, %563 in 1 : vector<8x32xf32>, vector<8x32xf32> -> vector<8x64xf32>
    %570 = arith.truncf %569 : vector<8x64xf32> to vector<8x64xbf16>
    %cst_170 = arith.constant dense<0.000000e+00> : vector<8x256xf32>
    %571 = tpu.matmul %570, %332, %cst_170 {dimension_numbers = #tpu.dot_dimension_numbers<[1], [0], [0], [1], [0, 0, 1, 1], [], []>} : vector<8x64xbf16>, vector<64x256xbf16>, vector<8x256xf32> -> vector<8x256xf32>
    %572 = arith.addf %571, %568 : vector<8x256xf32>
    %573 = arith.negf %572 : vector<8x256xf32>
    %574 = math.exp %573 : vector<8x256xf32>
    %cst_171 = arith.constant 1.000000e+00 : f32
    %575 = vector.broadcast %cst_171 : f32 to vector<8x256xf32>
    %576 = arith.addf %575, %574 : vector<8x256xf32>
    %577 = arith.divf %575, %576 : vector<8x256xf32>
    %578 = math.tanh %572 : vector<8x256xf32>
    %579 = vector.extract_strided_slice %577 {offsets = [0, 32], sizes = [8, 32], strides = [1, 1]} : vector<8x256xf32> to vector<8x32xf32>
    %580 = arith.mulf %579, %551 : vector<8x32xf32>
    %581 = vector.extract_strided_slice %577 {offsets = [0, 0], sizes = [8, 32], strides = [1, 1]} : vector<8x256xf32> to vector<8x32xf32>
    %582 = vector.extract_strided_slice %578 {offsets = [0, 64], sizes = [8, 32], strides = [1, 1]} : vector<8x256xf32> to vector<8x32xf32>
    %583 = arith.mulf %581, %582 : vector<8x32xf32>
    %584 = arith.addf %580, %583 : vector<8x32xf32>
    %585 = vector.extract_strided_slice %577 {offsets = [0, 96], sizes = [8, 32], strides = [1, 1]} : vector<8x256xf32> to vector<8x32xf32>
    %586 = math.tanh %584 : vector<8x32xf32>
    %587 = arith.mulf %585, %586 : vector<8x32xf32>
    %588 = vector.extract_strided_slice %577 {offsets = [0, 160], sizes = [8, 32], strides = [1, 1]} : vector<8x256xf32> to vector<8x32xf32>
    %589 = arith.mulf %588, %560 : vector<8x32xf32>
    %590 = vector.extract_strided_slice %577 {offsets = [0, 128], sizes = [8, 32], strides = [1, 1]} : vector<8x256xf32> to vector<8x32xf32>
    %591 = vector.extract_strided_slice %578 {offsets = [0, 192], sizes = [8, 32], strides = [1, 1]} : vector<8x256xf32> to vector<8x32xf32>
    %592 = arith.mulf %590, %591 : vector<8x32xf32>
    %593 = arith.addf %589, %592 : vector<8x32xf32>
    %594 = vector.extract_strided_slice %577 {offsets = [0, 224], sizes = [8, 32], strides = [1, 1]} : vector<8x256xf32> to vector<8x32xf32>
    %595 = math.tanh %593 : vector<8x32xf32>
    %596 = arith.mulf %594, %595 : vector<8x32xf32>
    %c2_172 = arith.constant 2 : index
    %c0_173 = arith.constant 0 : index
    %c0_174 = arith.constant 0 : index
    %597 = vector.load %arg9[%c2_172, %c0_173, %c0_174] : memref<4x8x32xf32, #tpu.memory_space<vmem>>, vector<1x8x32xf32>
    %598 = vector.shape_cast %597 : vector<1x8x32xf32> to vector<8x32xf32>
    %599 = vector.shape_cast %587 : vector<8x32xf32> to vector<1x8x32xf32>
    tpu.vector_store %arg9[%c2_172, %c0_173, %c0_174], %599 {strides = array<i32>} : memref<4x8x32xf32, #tpu.memory_space<vmem>>, vector<1x8x32xf32>,
    %c2_175 = arith.constant 2 : index
    %c0_176 = arith.constant 0 : index
    %c0_177 = arith.constant 0 : index
    %600 = vector.load %arg10[%c2_175, %c0_176, %c0_177] : memref<4x8x32xf32, #tpu.memory_space<vmem>>, vector<1x8x32xf32>
    %601 = vector.shape_cast %600 : vector<1x8x32xf32> to vector<8x32xf32>
    %602 = vector.shape_cast %584 : vector<8x32xf32> to vector<1x8x32xf32>
    tpu.vector_store %arg10[%c2_175, %c0_176, %c0_177], %602 {strides = array<i32>} : memref<4x8x32xf32, #tpu.memory_space<vmem>>, vector<1x8x32xf32>,
    %c3_178 = arith.constant 3 : index
    %c0_179 = arith.constant 0 : index
    %c0_180 = arith.constant 0 : index
    %603 = vector.load %arg9[%c3_178, %c0_179, %c0_180] : memref<4x8x32xf32, #tpu.memory_space<vmem>>, vector<1x8x32xf32>
    %604 = vector.shape_cast %603 : vector<1x8x32xf32> to vector<8x32xf32>
    %605 = vector.shape_cast %596 : vector<8x32xf32> to vector<1x8x32xf32>
    tpu.vector_store %arg9[%c3_178, %c0_179, %c0_180], %605 {strides = array<i32>} : memref<4x8x32xf32, #tpu.memory_space<vmem>>, vector<1x8x32xf32>,
    %c3_181 = arith.constant 3 : index
    %c0_182 = arith.constant 0 : index
    %c0_183 = arith.constant 0 : index
    %606 = vector.load %arg10[%c3_181, %c0_182, %c0_183] : memref<4x8x32xf32, #tpu.memory_space<vmem>>, vector<1x8x32xf32>
    %607 = vector.shape_cast %606 : vector<1x8x32xf32> to vector<8x32xf32>
    %608 = vector.shape_cast %593 : vector<8x32xf32> to vector<1x8x32xf32>
    tpu.vector_store %arg10[%c3_181, %c0_182, %c0_183], %608 {strides = array<i32>} : memref<4x8x32xf32, #tpu.memory_space<vmem>>, vector<1x8x32xf32>,
    %609 = vector.shape_cast %356 : vector<8x32xf32> to vector<1x8x32xf32>
    %610 = vector.shape_cast %389 : vector<8x32xf32> to vector<1x8x32xf32>
    %611 = vector.shape_cast %422 : vector<8x32xf32> to vector<1x8x32xf32>
    %612 = vector.shape_cast %455 : vector<8x32xf32> to vector<1x8x32xf32>
    %613 = vector.shape_cast %488 : vector<8x32xf32> to vector<1x8x32xf32>
    %614 = vector.shape_cast %521 : vector<8x32xf32> to vector<1x8x32xf32>
    %615 = vector.shape_cast %554 : vector<8x32xf32> to vector<1x8x32xf32>
    %616 = vector.shape_cast %587 : vector<8x32xf32> to vector<1x8x32xf32>
    %617 = tpu.concatenate %609, %610, %611, %612, %613, %614, %615, %616 in 0 : vector<1x8x32xf32>, vector<1x8x32xf32>, vector<1x8x32xf32>, vector<1x8x32xf32>, vector<1x8x32xf32>, vector<1x8x32xf32>, vector<1x8x32xf32>, vector<1x8x32xf32> -> vector<8x8x32xf32>
    %618 = vector.shape_cast %596 : vector<8x32xf32> to vector<1x8x32xf32>
    %619 = vector.shape_cast %563 : vector<8x32xf32> to vector<1x8x32xf32>
    %620 = vector.shape_cast %530 : vector<8x32xf32> to vector<1x8x32xf32>
    %621 = vector.shape_cast %497 : vector<8x32xf32> to vector<1x8x32xf32>
    %622 = vector.shape_cast %464 : vector<8x32xf32> to vector<1x8x32xf32>
    %623 = vector.shape_cast %431 : vector<8x32xf32> to vector<1x8x32xf32>
    %624 = vector.shape_cast %398 : vector<8x32xf32> to vector<1x8x32xf32>
    %625 = vector.shape_cast %365 : vector<8x32xf32> to vector<1x8x32xf32>
    %626 = tpu.concatenate %618, %619, %620, %621, %622, %623, %624, %625 in 0 : vector<1x8x32xf32>, vector<1x8x32xf32>, vector<1x8x32xf32>, vector<1x8x32xf32>, vector<1x8x32xf32>, vector<1x8x32xf32>, vector<1x8x32xf32>, vector<1x8x32xf32> -> vector<8x8x32xf32>
    %627 = tpu.concatenate %617, %626 in 2 : vector<8x8x32xf32>, vector<8x8x32xf32> -> vector<8x8x64xf32>
    %628 = arith.truncf %627 : vector<8x8x64xf32> to vector<8x8x64xbf16>
    %629 = vector.shape_cast %628 : vector<8x8x64xbf16> to vector<64x64xbf16>
    %c0_184 = arith.constant 0 : index
    %c0_185 = arith.constant 0 : index
    %630 = vector.load %arg5[%c0_184, %c0_185] : memref<64x32xbf16, #tpu.memory_space<vmem>>, vector<64x32xbf16>
    %cst_186 = arith.constant dense<0.000000e+00> : vector<64x32xf32>
    %631 = tpu.matmul %629, %630, %cst_186 {dimension_numbers = #tpu.dot_dimension_numbers<[1], [0], [0], [1], [0, 0, 1, 1], [], []>} : vector<64x64xbf16>, vector<64x32xbf16>, vector<64x32xf32> -> vector<64x32xf32>
    %c0_187 = arith.constant 0 : index
    %c0_188 = arith.constant 0 : index
    %632 = vector.load %arg6[%c0_187, %c0_188] : memref<1x32xf32, #tpu.memory_space<vmem>>, vector<1x32xf32>
    %633 = vector.broadcast %632 : vector<1x32xf32> to vector<64x32xf32>
    %634 = arith.addf %631, %633 : vector<64x32xf32>
    %635 = vector.extract_strided_slice %634 {offsets = [0, 0], sizes = [64, 16], strides = [1, 1]} : vector<64x32xf32> to vector<64x16xf32>
    %636 = vector.extract_strided_slice %634 {offsets = [0, 16], sizes = [64, 16], strides = [1, 1]} : vector<64x32xf32> to vector<64x16xf32>
    %cst_189 = arith.constant 5.000000e-01 : f32
    %637 = vector.broadcast %cst_189 : f32 to vector<64x16xf32>
    %638 = arith.mulf %637, %636 : vector<64x16xf32>
    %639 = math.exp %638 : vector<64x16xf32>
    %c0_190 = arith.constant 0 : index
    %c0_191 = arith.constant 0 : index
    %640 = vector.load %arg7[%c0_190, %c0_191] : memref<64x16xf32, #tpu.memory_space<vmem>>, vector<64x16xf32>
    %641 = arith.mulf %640, %639 : vector<64x16xf32>
    %642 = arith.addf %635, %641 : vector<64x16xf32>
    %c0_192 = arith.constant 0 : index
    %c0_193 = arith.constant 0 : index
    %643 = vector.load %arg8[%c0_192, %c0_193] : memref<64x16xf32, #tpu.memory_space<vmem>>, vector<64x16xf32>
    tpu.vector_store %arg8[%c0_192, %c0_193], %642 {strides = array<i32>} : memref<64x16xf32, #tpu.memory_space<vmem>>, vector<64x16xf32>,
    %cst_194 = arith.constant 1.000000e+00 : f32
    %644 = vector.broadcast %cst_194 : f32 to vector<64x16xf32>
    %645 = arith.addf %644, %636 : vector<64x16xf32>
    %646 = arith.mulf %635, %635 : vector<64x16xf32>
    %647 = arith.subf %645, %646 : vector<64x16xf32>
    %648 = arith.mulf %639, %639 : vector<64x16xf32>
    %649 = arith.subf %647, %648 : vector<64x16xf32>
    %650 = tpu.iota {dimensions = array<i32: 0>} : vector<64x16xi32>
    %c8_i32 = arith.constant 8 : i32
    %c0_i32 = arith.constant 0 : i32
    %651 = arith.cmpi eq, %c8_i32, %c0_i32 : i32
    %c1_i32 = arith.constant 1 : i32
    %652 = arith.select %651, %c1_i32, %c8_i32 : i32
    %653 = vector.broadcast %652 : i32 to vector<64x16xi32>
    %654 = arith.remsi %650, %653 : vector<64x16xi32>
    %c0_i32_195 = arith.constant 0 : i32
    %655 = vector.broadcast %c0_i32_195 : i32 to vector<64x16xi32>
    %656 = arith.cmpi ne, %654, %655 : vector<64x16xi32>
    %c0_i32_196 = arith.constant 0 : i32
    %657 = vector.broadcast %c0_i32_196 : i32 to vector<64x16xi32>
    %658 = arith.cmpi slt, %654, %657 : vector<64x16xi32>
    %c0_i32_197 = arith.constant 0 : i32
    %659 = arith.cmpi slt, %652, %c0_i32_197 : i32
    %660 = vector.broadcast %659 : i1 to vector<64x16xi1>
    %661 = vector.broadcast %660 : vector<64x16xi1> to vector<64x16xi1>
    %662 = arith.xori %658, %661 : vector<64x16xi1>
    %663 = arith.andi %662, %656 : vector<64x16xi1>
    %664 = vector.broadcast %652 : i32 to vector<64x16xi32>
    %665 = arith.addi %654, %664 : vector<64x16xi32>
    %666 = arith.select %663, %665, %654 : vector<64x16xi1>, vector<64x16xi32>
    %c2_i32 = arith.constant 2 : i32
    %667 = vector.broadcast %c2_i32 : i32 to vector<64x16xi32>
    %668 = arith.cmpi slt, %666, %667 : vector<64x16xi32>
    %cst_198 = arith.constant 0.000000e+00 : f32
    %669 = vector.broadcast %cst_198 : f32 to vector<64x16xf32>
    %670 = arith.select %668, %649, %669 : vector<64x16xi1>, vector<64x16xf32>
    %671 = vector.shape_cast %670 : vector<64x16xf32> to vector<1x64x16xf32>
    %cst_199 = arith.constant dense<0.000000e+00> : vector<1xf32>
    %672 = vector.multi_reduction <add>, %671, %cst_199 [1, 2] : vector<1x64x16xf32> to vector<1xf32>
    %673 = vector.shape_cast %672 : vector<1xf32> to vector<1x1x1xf32>
    %674 = vector.extract %673[0, 0, 0] : f32 from vector<1x1x1xf32>
    %cst_200 = arith.constant -5.000000e-01 : f32
    %675 = arith.mulf %cst_200, %674 : f32
    %cst_201 = arith.constant 2.560000e+02 : f32
    %676 = arith.divf %675, %cst_201 : f32
    %c0_202 = arith.constant 0 : index
    %c0_203 = arith.constant 0 : index
    %677 = memref.load %arg11[%c0_202, %c0_203] : memref<1x1xf32, #tpu.memory_space<smem>>
    memref.store %676, %arg11[%c0_202, %c0_203] : memref<1x1xf32, #tpu.memory_space<smem>>
    return
  }
}

</mosaic_0001>

<bundles_post_ra>
// kernel: vae_encoder_forward.1
= control target key start
LH: loop header
LB: loop body
LE: loop exit
PB: predicated region body
PF: predicated region fallthrough
CT: control target
= control target key end

     0   :  { %s3221_s19 = smov 32   ;;  %v3222_v3 = vmov 0   ;;  %vm124_vm0 = vcmask 523264   ;;  %s4275_s0 = inlined_call_operand.vmem [shape: bf16[64,64], index: 0, kind: input, shape index: {}]   ;;  %s4276_s1 = inlined_call_operand.vmem [shape: f32[8,32], index: 1, kind: input, shape index: {}]   ;;  %s4277_s2 = inlined_call_operand.vmem [shape: bf16[2,64,256], index: 2, kind: input, shape index: {}]   ;;  %s4278_s3 = inlined_call_operand.vmem [shape: bf16[2,2,32,128], index: 3, kind: input, shape index: {}]   ;;  %s4279_s4 = inlined_call_operand.vmem [shape: f32[2,1,256], index: 4, kind: input, shape index: {}]   ;;  %s4280_s5 = inlined_call_operand.vmem [shape: bf16[64,32], index: 5, kind: input, shape index: {}]   ;;  %s4281_s6 = inlined_call_operand.vmem [shape: f32[1,32], index: 6, kind: input, shape index: {}]   ;;  %s4282_s7 = inlined_call_operand.vmem [shape: f32[64,16], index: 7, kind: input, shape index: {}]   ;;  %s4283_s8 = inlined_call_operand.vmem [shape: f32[64,16], index: 8, kind: output, shape index: {0}]   ;;  %s4284_s9 = inlined_call_operand.vmem [shape: f32[4,8,32], index: 9, kind: output, shape index: {1}]   ;;  %s4285_s10 = inlined_call_operand.vmem [shape: f32[4,8,32], index: 10, kind: output, shape index: {2}]   ;;  %s4286_s11 = inlined_call_operand.hbm [shape: f32[1,1], index: 11, kind: output, shape index: {3}]  }
   0x1   :  { %v3291_v0 = vld [vmem:[%s4276_s1] sm:$0xff]  ;;  %189 = vmatprep.mubr.bf16.mxu1 %v3222_v3  ;;  %v2900_v4 = vld [vmem:[%s4277_s2 + $0x14] ss:$8 sps:$4 sm:$0xff]   ;;  %169 = vmatprep.mubr.bf16.mxu0 %v3222_v3  ;;  %v2902_v5 = vld [vmem:[%s4277_s2 + $0x10] ss:$8 sps:$4 sm:$0xff]  }
   0x2   :  { %263 = vrot.lane.b32.xlu0 %v3291_v0, %s3221_s19  ;;  %v2897_v1 = vld [vmem:[%s4277_s2 + $0x4] ss:$8 sps:$4 sm:$0xff]   ;;  %v2899_v2 = vld [vmem:[%s4277_s2] ss:$8 sps:$4 sm:$0xff]   ;;  %v2906_v8 = vld [vmem:[%s4277_s2 + $0x34] ss:$8 sps:$4 sm:$0xff]  }
   0x3   :  { %2880 = vmatprep.subr.bf16.mxu1 %v2897_v1  ;;  %137 = vmatprep.subr.bf16.mxu0 %v2897_v1  ;;  %v2903_v6 = vld [vmem:[%s4277_s2 + $0x24] ss:$8 sps:$4 sm:$0xff]   ;;  %v2905_v7 = vld [vmem:[%s4277_s2 + $0x20] ss:$8 sps:$4 sm:$0xff]   ;;  %v2908_v9 = vld [vmem:[%s4277_s2 + $0x30] ss:$8 sps:$4 sm:$0xff]  }
   0x4   :  { %2884 = vmatpush1.bf16.msra.mxu1 %v2899_v2  ;;  %138 = vmatpush1.bf16.msra.mxu0 %v2899_v2  ;;  %v2909_v10 = vld [vmem:[%s4275_s0 + $0x10] sm:$0xff]   ;;  %v2915_v11 = vld [vmem:[%s4275_s0] sm:$0xff]   ;;  %v3337_v13 = vld [vmem:[%s4278_s3 + $0x8] sm:$0xff]  }
   0x5   :  { %2881 = vmatprep.subr.bf16.mxu1 %v2900_v4  ;;  %139 = vmatprep.subr.bf16.mxu0 %v2900_v4  ;;  %v3330_v12 = vld [vmem:[%s4278_s3] sm:$0xff]   ;;  %v3343_v14 = vld [vmem:[%s4278_s3 + $0x10] sm:$0xff]  }
   0x8   :  { %2885 = vmatpush1.bf16.msra.mxu1 %v2902_v5  ;;  %140 = vmatpush1.bf16.msra.mxu0 %v2902_v5 }
   0x9   :  { %2882 = vmatprep.subr.bf16.mxu1 %v2903_v6  ;;  %141 = vmatprep.subr.bf16.mxu0 %v2903_v6 }
   0xc   :  { %2886 = vmatpush1.bf16.msra.mxu1 %v2905_v7  ;;  %142 = vmatpush1.bf16.msra.mxu0 %v2905_v7 }
   0xd   :  { %2883 = vmatprep.subr.bf16.mxu1 %v2906_v8  ;;  %143 = vmatprep.subr.bf16.mxu0 %v2906_v8 }
  0x10   :  { %2887 = vmatpush1.bf16.msra.mxu1 %v2908_v9  ;;  %144 = vmatpush1.bf16.msra.mxu0 %v2908_v9 }
  0x11   :  { %272 = vmatprep.subr.bf16.mxu1 %v3222_v3  ;;  %484 = vmatprep.subr.bf16.mxu0 %v3222_v3 }
  0x13   :  { %2734 = vmatmul.mubr.msk.bf16.vlgmr.msra.gmra.mrb[0].mxu1 %vm124_vm0, %v2909_v10  ;;  %2732 = vmatmul.mubr.msk.bf16.vlgmr.msra.gmra.mrb[0].mxu0 %vm124_vm0, %v2915_v11 }
  0x14   :  { %273 = vmatpush1.bf16.msra.mxu1 %v3330_v12  ;;  %199 = vmatprep.mubr.bf16.mxu1 %v3222_v3 }
  0x15   :  { %274 = vmatprep.subr.bf16.mxu1 %v3222_v3  ;;  %485 = vmatpush1.bf16.msra.mxu0 %v3330_v12 }
  0x16   :  { %17 = vsyncpa [#allocation4], 0  ;;  %486 = vmatprep.subr.bf16.mxu0 %v3222_v3  ;;  %179 = vmatprep.mubr.bf16.mxu0 %v3222_v3  ;;  %v2912_v15 = vld [vmem:[%s4275_s0 + $0x18] sm:$0xff]   ;;  %vm266_vm1 = vcmask 261120   ;;  %v54_v32 = vlaneseq  ;;  %v52_v35 = vld [vmem:[%s4279_s4] sm:$0x3] }
  0x17   :  { %v3360_v16 = vld [vmem:[%s4278_s3 + $0x18] sm:$0xff]   ;;  %s3223_s13 = smov 64   ;;  %s3224_s30 = smov 16   ;;  %vm2431_vm10 = vcmask 130048  }
  0x18   :  { %275 = vmatpush1.bf16.msra.mxu1 %v3337_v13  ;;  %v3412_v33 = vshrl.u32 %v54_v32, 7  ;;  %s3226_s12 = smov 96  }
  0x19   :  { %276 = vmatprep.subr.bf16.mxu1 %v3343_v14  ;;  %487 = vmatpush1.bf16.msra.mxu0 %v3337_v13 }
  0x1a   :  { %488 = vmatprep.subr.bf16.mxu0 %v3343_v14  ;;  %v56_v34 = vsub.s32 0, %v3412_v33  ;;  %v60_v36 = vsub.s32 1, %v3412_v33 }
  0x1b   :  { %2735 = vmatmul.mubr.msk.bf16.gmra.mrb[4].mxu1 %vm124_vm0, %v2912_v15 }
  0x1c   :  { %277 = vmatpush1.bf16.msra.mxu1 %v3222_v3  ;;  %304 = vmatprep.mubr.bf16.mxu1 %v3222_v3  ;;  %v3421_v37 = vrot.slane %v52_v35, %v56_v34  ;;  %v3426_v39 = vrot.slane %v52_v35, %v60_v36 }
  0x1d   :  { %278 = vmatprep.subr.bf16.mxu1 %v3360_v16  ;;  %489 = vmatpush1.bf16.msra.mxu0 %v3222_v3 }
  0x1e   :  { %490 = vmatprep.subr.bf16.mxu0 %v3360_v16 }
  0x20   :  { %279 = vmatpush1.bf16.msra.mxu1 %v3222_v3 }
  0x21   :  { %378 = vmatprep.subr.bf16.mxu1 %v3222_v3  ;;  %491 = vmatpush1.bf16.msra.mxu0 %v3222_v3 }
  0x22   :  { %694 = vmatprep.subr.bf16.mxu0 %v3222_v3 }
  0x74   :  { %v3374_v17 = vpop.permute.xlu0 %263 }
  0x75   :  { %v267_v18 = vsel %vm266_vm1, %v3291_v0, %v3374_v17 }
  0x76   :  { %v3379_v19 = vpack.c.bf16 %v267_v18, %v267_v18 }
  0x78   :  { %2744 = vmatmul.mubr.msk.bf16.vlgmr.msra.gmra.mrb[8].mxu1 %vm124_vm0, %v3379_v19 }
  0x79   :  { %379 = vmatpush1.bf16.msra.mxu1 %v3330_v12  ;;  %410 = vmatprep.mubr.bf16.mxu1 %v3222_v3 }
  0x7a   :  { %380 = vmatprep.subr.bf16.mxu1 %v3222_v3 }
  0x7d   :  { %381 = vmatpush1.bf16.msra.mxu1 %v3337_v13 }
  0x7e   :  { %382 = vmatprep.subr.bf16.mxu1 %v3343_v14 }
  0x81   :  { %383 = vmatpush1.bf16.msra.mxu1 %v3222_v3 }
  0x82   :  { %384 = vmatprep.subr.bf16.mxu1 %v3360_v16 }
  0x85   :  { %385 = vmatpush1.bf16.msra.mxu1 %v3222_v3 }
  0x86   :  { %590 = vmatprep.subr.bf16.mxu1 %v3222_v3 }
  0xe6   :  { %v3392_v20 = vpop.f32.mrb[0].mxu1  ;;  %v171_v21 = vpop.f32.mrb[0].mxu0 }
  0xe7   :  { %v3394_v22 = vpop.f32.mrb[1].mxu1  ;;  %v3396_v23 = vpop.f32.mrb[1].mxu0  ;;  %v172_v38 = vadd.f32 %v171_v21, %v3421_v37 }
  0xe8   :  { %v3398_v24 = vpop.f32.mrb[2].mxu1  ;;  %v3400_v25 = vpop.f32.mrb[2].mxu0 }
  0xe9   :  { %v3402_v26 = vpop.f32.mrb[3].mxu1  ;;  %v3404_v27 = vpop.f32.mrb[3].mxu0  ;;  %v176_v21 = vadd.f32 %v3400_v25, %v3421_v37 }
  0xee   :  { %v3406_v28 = vpop.f32.mrb[4].mxu1 }
  0xef   :  { %v3408_v29 = vpop.f32.mrb[5].mxu1 }
  0xf0   :  { %v3410_v30 = vpop.f32.mrb[6].mxu1 }
  0xf1   :  { %v207_v31 = vpop.f32.mrb[7].mxu1 }
  0xf2   :  { %v208_v40 = vadd.f32 %v207_v31, %v3426_v39  ;;  %v204_v31 = vadd.f32 %v3408_v29, %v3426_v39 }
 0x14b   :  { %v306_v41 = vpop.f32.mrb[8].mxu1 }
 0x14c   :  { %v307_v42 = vadd.f32 %v306_v41, %v172_v38  ;;  %v308_v43 = vpop.f32.mrb[9].mxu1 }
 0x14d   :  { %v309_v44 = vadd.f32 %v308_v43, %v208_v40  ;;  %v310_v45 = vpop.f32.mrb[10].mxu1 }
 0x14e   :  { %2937 = vtanh.f32 %v307_v42  ;;  %v311_v46 = vpop.f32.mrb[11].mxu1  ;;  %v2745_v49 = vmul.f32 -1.442695, %v307_v42 }
 0x14f   :  { %2939 = vtanh.f32 %v309_v44  ;;  %v2746_v50 = vmul.f32 -1.442695, %v309_v44 }
 0x150   :  { %2941 = vpow2.f32 %v2745_v49 }
 0x151   :  { %2943 = vpow2.f32 %v2746_v50 }
 0x158   :  { %v2938_v47 = vpop.eup %2937 }
 0x159   :  { %v2940_v48 = vpop.eup %2939  ;;  %329 = vrot.lane.b32.xlu0 %v2938_v47, %s3223_s13 }
 0x15a   :  { %346 = vrot.lane.b32.xlu1 %v2940_v48, %s3223_s13  ;;  %v2942_v51 = vpop.eup %2941 }
 0x15b   :  { %v2944_v52 = vpop.eup %2943  ;;  %v319_v53 = vadd.f32 1.0, %v2942_v51 }
 0x15c   :  { %v320_v54 = vadd.f32 1.0, %v2944_v52 }
 0x15d   :  { %2945 = vrcp.f32 %v319_v53 }
 0x15e   :  { %2947 = vrcp.f32 %v320_v54 }
 0x167   :  { %v2946_v55 = vpop.eup %2945 }
 0x168   :  { %v2948_v57 = vpop.eup %2947  ;;  %v327_v61 = vmul.f32 %v2946_v55, %v3374_v17 }
 0x169   :  { %v344_v63 = vmul.f32 %v2948_v57, %v3374_v17 }
 0x1cb   :  { %v330_v56 = vpop.permute.xlu0 %329 }
 0x1cc   :  { %v332_v58 = vmul.f32 %v2946_v55, %v330_v56  ;;  %v347_v59 = vpop.permute.xlu1 %346 }
 0x1cd   :  { %v349_v60 = vmul.f32 %v2948_v57, %v347_v59 }
 0x1ce   :  { %334 = vrot.lane.b32.xlu1 %v332_v58, %s3221_s19 }
 0x1cf   :  { %351 = vrot.lane.b32.xlu0 %v349_v60, %s3221_s19 }
 0x240   :  { %v335_v62 = vpop.permute.xlu1 %334 }
 0x241   :  { %v337_v0 = vadd.f32 %v335_v62, %v327_v61  ;;  %v352_v1 = vpop.permute.xlu0 %351  ;;  %v2916_v61 = vld [vmem:[%s4275_s0 + $0x8] sm:$0xff]  }
 0x242   :  { %v354_v2 = vadd.f32 %v352_v1, %v344_v63  ;;  %2733 = vmatmul.mubr.msk.bf16.gmra.mrb[4].mxu0 %vm124_vm0, %v2916_v61 }
 0x243   :  { %2949 = vtanh.f32 %v337_v0  ;;  %516 = vmatprep.mubr.bf16.mxu0 %v3222_v3 }
 0x244   :  { %2951 = vtanh.f32 %v354_v2 }
 0x24d   :  { %v2950_v4 = vpop.eup %2949 }
 0x24e   :  { %v2952_v5 = vpop.eup %2951  ;;  %340 = vrot.lane.b32.xlu1 %v2950_v4, %s3223_s13 }
 0x24f   :  { %357 = vrot.lane.b32.xlu0 %v2952_v5, %s3223_s13 }
 0x2c0   :  { %v341_v6 = vpop.permute.xlu1 %340 }
 0x2c1   :  { %v343_v7 = vmul.f32 %v2946_v55, %v341_v6  ;;  %v358_v8 = vpop.permute.xlu0 %357 }
 0x2c2   :  { %v360_v9 = vmul.f32 %v2948_v57, %v358_v8 }
 0x2c3   :  { %366 = vrot.lane.b32.xlu1 %v343_v7, %s3221_s19 }
 0x2c4   :  { %370 = vrot.lane.b32.xlu0 %v360_v9, %s3223_s13 }
 0x315   :  { %v181_v5 = vpop.f32.mrb[4].mxu0 }
 0x316   :  { %v3479_v6 = vpop.f32.mrb[5].mxu0 }
 0x317   :  { %v3481_v7 = vpop.f32.mrb[6].mxu0 }
 0x318   :  { %v3483_v8 = vpop.f32.mrb[7].mxu0 }
 0x335   :  { %v3439_v10 = vpop.permute.xlu1 %366 }
 0x336   :  { %v3441_v11 = vpop.permute.xlu0 %370 }
 0x337   :  { %v373_v15 = vsel %vm266_vm1, %v3439_v10, %v3441_v11 }
 0x338   :  { %v374_v18 = vpack.c.bf16 %v373_v15, %v373_v15 }
 0x33a   :  { %2747 = vmatmul.mubr.msk.bf16.vlgmr.msra.gmra.mrb[12].mxu1 %vm124_vm0, %v374_v18 }
 0x33b   :  { %591 = vmatpush1.bf16.msra.mxu1 %v3330_v12  ;;  %622 = vmatprep.mubr.bf16.mxu1 %v3222_v3 }
 0x33c   :  { %592 = vmatprep.subr.bf16.mxu1 %v3222_v3 }
 0x33f   :  { %593 = vmatpush1.bf16.msra.mxu1 %v3337_v13 }
 0x340   :  { %594 = vmatprep.subr.bf16.mxu1 %v3343_v14 }
 0x343   :  { %595 = vmatpush1.bf16.msra.mxu1 %v3222_v3 }
 0x344   :  { %596 = vmatprep.subr.bf16.mxu1 %v3360_v16 }
 0x347   :  { %597 = vmatpush1.bf16.msra.mxu1 %v3222_v3 }
 0x348   :  { %798 = vmatprep.subr.bf16.mxu1 %v3222_v3 }
 0x40d   :  { %v412_v32 = vpop.f32.mrb[12].mxu1 }
 0x40e   :  { %v413_v35 = vadd.f32 %v412_v32, %v176_v21  ;;  %v414_v38 = vpop.f32.mrb[13].mxu1  ;;  %v198_v32 = vadd.f32 %v3402_v26, %v3426_v39 }
 0x40f   :  { %v415_v40 = vadd.f32 %v414_v38, %v204_v31  ;;  %v416_v41 = vpop.f32.mrb[14].mxu1  ;;  %v182_v31 = vadd.f32 %v181_v5, %v3421_v37 }
 0x410   :  { %2953 = vtanh.f32 %v413_v35  ;;  %v417_v42 = vpop.f32.mrb[15].mxu1  ;;  %v2748_v45 = vmul.f32 -1.442695, %v413_v35 }
 0x411   :  { %2955 = vtanh.f32 %v415_v40  ;;  %v2749_v46 = vmul.f32 -1.442695, %v415_v40 }
 0x412   :  { %2957 = vpow2.f32 %v2748_v45 }
 0x413   :  { %2959 = vpow2.f32 %v2749_v46 }
 0x41a   :  { %v2954_v43 = vpop.eup %2953 }
 0x41b   :  { %v2956_v44 = vpop.eup %2955  ;;  %435 = vrot.lane.b32.xlu1 %v2954_v43, %s3223_s13 }
 0x41c   :  { %452 = vrot.lane.b32.xlu0 %v2956_v44, %s3223_s13  ;;  %v2958_v25 = vpop.eup %2957 }
 0x41d   :  { %v2960_v29 = vpop.eup %2959  ;;  %v425_v47 = vadd.f32 1.0, %v2958_v25 }
 0x41e   :  { %v426_v48 = vadd.f32 1.0, %v2960_v29 }
 0x41f   :  { %2961 = vrcp.f32 %v425_v47 }
 0x420   :  { %2963 = vrcp.f32 %v426_v48 }
 0x429   :  { %v2962_v49 = vpop.eup %2961 }
 0x42a   :  { %v2964_v51 = vpop.eup %2963  ;;  %v433_v55 = vmul.f32 %v2962_v49, %v337_v0 }
 0x42b   :  { %v450_v57 = vmul.f32 %v2964_v51, %v354_v2 }
 0x48d   :  { %v436_v50 = vpop.permute.xlu1 %435 }
 0x48e   :  { %v438_v52 = vmul.f32 %v2962_v49, %v436_v50  ;;  %v453_v53 = vpop.permute.xlu0 %452 }
 0x48f   :  { %v455_v54 = vmul.f32 %v2964_v51, %v453_v53 }
 0x490   :  { %440 = vrot.lane.b32.xlu1 %v438_v52, %s3221_s19 }
 0x491   :  { %457 = vrot.lane.b32.xlu0 %v455_v54, %s3221_s19 }
 0x502   :  { %v441_v56 = vpop.permute.xlu1 %440 }
 0x503   :  { %v3464_v58 = vadd.f32 %v441_v56, %v433_v55  ;;  %v458_v59 = vpop.permute.xlu0 %457 }
 0x504   :  { %v3466_v60 = vadd.f32 %v458_v59, %v450_v57 }
 0x505   :  { %2965 = vtanh.f32 %v3464_v58 }
 0x506   :  { %2967 = vtanh.f32 %v3466_v60 }
 0x50f   :  { %v2966_v62 = vpop.eup %2965 }
 0x510   :  { %v2968_v63 = vpop.eup %2967  ;;  %446 = vrot.lane.b32.xlu1 %v2966_v62, %s3223_s13 }
 0x511   :  { %463 = vrot.lane.b32.xlu0 %v2968_v63, %s3223_s13 }
 0x582   :  { %v447_v0 = vpop.permute.xlu1 %446 }
 0x583   :  { %v449_v1 = vmul.f32 %v2962_v49, %v447_v0  ;;  %v464_v2 = vpop.permute.xlu0 %463 }
 0x584   :  { %v466_v4 = vmul.f32 %v2964_v51, %v464_v2 }
 0x585   :  { %472 = vrot.lane.b32.xlu1 %v449_v1, %s3221_s19 }
 0x586   :  { %476 = vrot.lane.b32.xlu0 %v466_v4, %s3223_s13 }
 0x5f7   :  { %v3485_v9 = vpop.permute.xlu1 %472 }
 0x5f8   :  { %v3487_v15 = vpop.permute.xlu0 %476 }
 0x5f9   :  { %v479_v18 = vsel %vm266_vm1, %v3485_v9, %v3487_v15 }
 0x5fa   :  { %v480_v21 = vpack.c.bf16 %v479_v18, %v479_v18 }
 0x5fc   :  { %2750 = vmatmul.mubr.msk.bf16.vlgmr.msra.gmra.mrb[8].mxu0 %vm124_vm0, %v480_v21 }
 0x5fd   :  { %695 = vmatpush1.bf16.msra.mxu0 %v3330_v12  ;;  %726 = vmatprep.mubr.bf16.mxu0 %v3222_v3 }
 0x5fe   :  { %696 = vmatprep.subr.bf16.mxu0 %v3222_v3 }
 0x601   :  { %697 = vmatpush1.bf16.msra.mxu0 %v3337_v13 }
 0x602   :  { %698 = vmatprep.subr.bf16.mxu0 %v3343_v14 }
 0x605   :  { %699 = vmatpush1.bf16.msra.mxu0 %v3222_v3 }
 0x606   :  { %700 = vmatprep.subr.bf16.mxu0 %v3360_v16 }
 0x609   :  { %701 = vmatpush1.bf16.msra.mxu0 %v3222_v3 }
 0x60a   :  { %902 = vmatprep.subr.bf16.mxu0 %v3222_v3 }
 0x6cf   :  { %v518_v35 = vpop.f32.mrb[8].mxu0 }
 0x6d0   :  { %v519_v38 = vadd.f32 %v518_v35, %v182_v31  ;;  %v520_v40 = vpop.f32.mrb[9].mxu0  ;;  %v186_v31 = vadd.f32 %v3481_v7, %v3421_v37 }
 0x6d1   :  { %v521_v41 = vadd.f32 %v520_v40, %v198_v32  ;;  %v522_v42 = vpop.f32.mrb[10].mxu0  ;;  %v194_v32 = vadd.f32 %v3394_v22, %v3426_v39 }
 0x6d2   :  { %2969 = vtanh.f32 %v519_v38  ;;  %v523_v43 = vpop.f32.mrb[11].mxu0  ;;  %v2751_v46 = vmul.f32 -1.442695, %v519_v38 }
 0x6d3   :  { %2971 = vtanh.f32 %v521_v41  ;;  %v2752_v25 = vmul.f32 -1.442695, %v521_v41 }
 0x6d4   :  { %2973 = vpow2.f32 %v2751_v46 }
 0x6d5   :  { %2975 = vpow2.f32 %v2752_v25 }
 0x6dc   :  { %v2970_v44 = vpop.eup %2969 }
 0x6dd   :  { %v2972_v45 = vpop.eup %2971  ;;  %541 = vrot.lane.b32.xlu1 %v2970_v44, %s3223_s13 }
 0x6de   :  { %558 = vrot.lane.b32.xlu0 %v2972_v45, %s3223_s13  ;;  %v2974_v29 = vpop.eup %2973 }
 0x6df   :  { %v2976_v26 = vpop.eup %2975  ;;  %v531_v47 = vadd.f32 1.0, %v2974_v29 }
 0x6e0   :  { %v532_v48 = vadd.f32 1.0, %v2976_v26 }
 0x6e1   :  { %2977 = vrcp.f32 %v531_v47 }
 0x6e2   :  { %2979 = vrcp.f32 %v532_v48 }
 0x6eb   :  { %v2978_v49 = vpop.eup %2977 }
 0x6ec   :  { %v2980_v51 = vpop.eup %2979  ;;  %v539_v55 = vmul.f32 %v2978_v49, %v3464_v58 }
 0x6ed   :  { %v556_v57 = vmul.f32 %v2980_v51, %v3466_v60 }
 0x74f   :  { %v542_v50 = vpop.permute.xlu1 %541 }
 0x750   :  { %v544_v52 = vmul.f32 %v2978_v49, %v542_v50  ;;  %v559_v53 = vpop.permute.xlu0 %558 }
 0x751   :  { %v561_v54 = vmul.f32 %v2980_v51, %v559_v53 }
 0x752   :  { %546 = vrot.lane.b32.xlu1 %v544_v52, %s3221_s19 }
 0x753   :  { %563 = vrot.lane.b32.xlu0 %v561_v54, %s3221_s19 }
 0x7c4   :  { %v547_v56 = vpop.permute.xlu1 %546 }
 0x7c5   :  { %v549_v59 = vadd.f32 %v547_v56, %v539_v55  ;;  %v564_v61 = vpop.permute.xlu0 %563 }
 0x7c6   :  { %v566_v62 = vadd.f32 %v564_v61, %v556_v57 }
 0x7c7   :  { %2981 = vtanh.f32 %v549_v59 }
 0x7c8   :  { %2983 = vtanh.f32 %v566_v62 }
 0x7d1   :  { %v2982_v63 = vpop.eup %2981 }
 0x7d2   :  { %v2984_v0 = vpop.eup %2983  ;;  %552 = vrot.lane.b32.xlu1 %v2982_v63, %s3223_s13 }
 0x7d3   :  { %569 = vrot.lane.b32.xlu0 %v2984_v0, %s3223_s13 }
 0x844   :  { %v553_v1 = vpop.permute.xlu1 %552 }
 0x845   :  { %v555_v2 = vmul.f32 %v2978_v49, %v553_v1  ;;  %v570_v4 = vpop.permute.xlu0 %569 }
 0x846   :  { %v572_v5 = vmul.f32 %v2980_v51, %v570_v4 }
 0x847   :  { %578 = vrot.lane.b32.xlu1 %v555_v2, %s3221_s19 }
 0x848   :  { %582 = vrot.lane.b32.xlu0 %v572_v5, %s3223_s13 }
 0x8b9   :  { %v3515_v58 = vpop.permute.xlu1 %578 }
 0x8ba   :  { %v3517_v60 = vpop.permute.xlu0 %582 }
 0x8bb   :  { %v585_v18 = vsel %vm266_vm1, %v3515_v58, %v3517_v60 }
 0x8bc   :  { %v586_v21 = vpack.c.bf16 %v585_v18, %v585_v18 }
 0x8be   :  { %2753 = vmatmul.mubr.msk.bf16.vlgmr.msra.gmra.mrb[16].mxu1 %vm124_vm0, %v586_v21 }
 0x8bf   :  { %799 = vmatpush1.bf16.msra.mxu1 %v3330_v12  ;;  %830 = vmatprep.mubr.bf16.mxu1 %v3222_v3 }
 0x8c0   :  { %800 = vmatprep.subr.bf16.mxu1 %v3222_v3 }
 0x8c3   :  { %801 = vmatpush1.bf16.msra.mxu1 %v3337_v13 }
 0x8c4   :  { %802 = vmatprep.subr.bf16.mxu1 %v3343_v14 }
 0x8c7   :  { %803 = vmatpush1.bf16.msra.mxu1 %v3222_v3 }
 0x8c8   :  { %804 = vmatprep.subr.bf16.mxu1 %v3360_v16 }
 0x8cb   :  { %805 = vmatpush1.bf16.msra.mxu1 %v3222_v3 }
 0x8cc   :  { %1006 = vmatprep.subr.bf16.mxu1 %v3222_v3 }
 0x991   :  { %v624_v35 = vpop.f32.mrb[16].mxu1 }
 0x992   :  { %v625_v38 = vadd.f32 %v624_v35, %v186_v31  ;;  %v626_v40 = vpop.f32.mrb[17].mxu1  ;;  %v192_v31 = vadd.f32 %v3392_v20, %v3421_v37 }
 0x993   :  { %v627_v41 = vadd.f32 %v626_v40, %v194_v32  ;;  %v628_v42 = vpop.f32.mrb[18].mxu1  ;;  %v188_v32 = vadd.f32 %v3483_v8, %v3426_v39 }
 0x994   :  { %2985 = vtanh.f32 %v625_v38  ;;  %v629_v43 = vpop.f32.mrb[19].mxu1  ;;  %v2754_v46 = vmul.f32 -1.442695, %v625_v38 }
 0x995   :  { %2987 = vtanh.f32 %v627_v41  ;;  %v2755_v25 = vmul.f32 -1.442695, %v627_v41 }
 0x996   :  { %2989 = vpow2.f32 %v2754_v46 }
 0x997   :  { %2991 = vpow2.f32 %v2755_v25 }
 0x99e   :  { %v2986_v44 = vpop.eup %2985 }
 0x99f   :  { %v2988_v45 = vpop.eup %2987  ;;  %647 = vrot.lane.b32.xlu1 %v2986_v44, %s3223_s13 }
 0x9a0   :  { %664 = vrot.lane.b32.xlu0 %v2988_v45, %s3223_s13  ;;  %v2990_v7 = vpop.eup %2989 }
 0x9a1   :  { %v2992_v22 = vpop.eup %2991  ;;  %v637_v29 = vadd.f32 1.0, %v2990_v7 }
 0x9a2   :  { %v638_v26 = vadd.f32 1.0, %v2992_v22 }
 0x9a3   :  { %2993 = vrcp.f32 %v637_v29 }
 0x9a4   :  { %2995 = vrcp.f32 %v638_v26 }
 0x9ad   :  { %v2994_v47 = vpop.eup %2993 }
 0x9ae   :  { %v2996_v49 = vpop.eup %2995  ;;  %v645_v53 = vmul.f32 %v2994_v47, %v549_v59 }
 0x9af   :  { %v662_v55 = vmul.f32 %v2996_v49, %v566_v62 }
 0xa11   :  { %v648_v48 = vpop.permute.xlu1 %647 }
 0xa12   :  { %v650_v50 = vmul.f32 %v2994_v47, %v648_v48  ;;  %v665_v51 = vpop.permute.xlu0 %664 }
 0xa13   :  { %v667_v52 = vmul.f32 %v2996_v49, %v665_v51 }
 0xa14   :  { %652 = vrot.lane.b32.xlu1 %v650_v50, %s3221_s19 }
 0xa15   :  { %669 = vrot.lane.b32.xlu0 %v667_v52, %s3221_s19 }
 0xa86   :  { %v653_v54 = vpop.permute.xlu1 %652 }
 0xa87   :  { %v655_v56 = vadd.f32 %v653_v54, %v645_v53  ;;  %v670_v57 = vpop.permute.xlu0 %669 }
 0xa88   :  { %v672_v61 = vadd.f32 %v670_v57, %v662_v55 }
 0xa89   :  { %2997 = vtanh.f32 %v655_v56 }
 0xa8a   :  { %2999 = vtanh.f32 %v672_v61 }
 0xa93   :  { %v2998_v63 = vpop.eup %2997 }
 0xa94   :  { %v3000_v0 = vpop.eup %2999  ;;  %658 = vrot.lane.b32.xlu1 %v2998_v63, %s3223_s13 }
 0xa95   :  { %675 = vrot.lane.b32.xlu0 %v3000_v0, %s3223_s13 }
 0xb06   :  { %v659_v1 = vpop.permute.xlu1 %658 }
 0xb07   :  { %v661_v2 = vmul.f32 %v2994_v47, %v659_v1  ;;  %v676_v4 = vpop.permute.xlu0 %675 }
 0xb08   :  { %v678_v5 = vmul.f32 %v2996_v49, %v676_v4 }
 0xb09   :  { %682 = vrot.lane.b32.xlu1 %v661_v2, %s3221_s19 }
 0xb0a   :  { %686 = vrot.lane.b32.xlu0 %v678_v5, %s3223_s13 }
 0xb7b   :  { %v3544_v59 = vpop.permute.xlu1 %682 }
 0xb7c   :  { %v3546_v62 = vpop.permute.xlu0 %686 }
 0xb7d   :  { %v689_v18 = vsel %vm266_vm1, %v3544_v59, %v3546_v62 }
 0xb7e   :  { %v690_v21 = vpack.c.bf16 %v689_v18, %v689_v18 }
 0xb80   :  { %2756 = vmatmul.mubr.msk.bf16.vlgmr.msra.gmra.mrb[12].mxu0 %vm124_vm0, %v690_v21 }
 0xb81   :  { %903 = vmatpush1.bf16.msra.mxu0 %v3330_v12  ;;  %934 = vmatprep.mubr.bf16.mxu0 %v3222_v3 }
 0xb82   :  { %904 = vmatprep.subr.bf16.mxu0 %v3222_v3 }
 0xb85   :  { %905 = vmatpush1.bf16.msra.mxu0 %v3337_v13 }
 0xb86   :  { %906 = vmatprep.subr.bf16.mxu0 %v3343_v14 }
 0xb89   :  { %907 = vmatpush1.bf16.msra.mxu0 %v3222_v3 }
 0xb8a   :  { %908 = vmatprep.subr.bf16.mxu0 %v3360_v16 }
 0xb8d   :  { %909 = vmatpush1.bf16.msra.mxu0 %v3222_v3 }
 0xc53   :  { %v728_v35 = vpop.f32.mrb[12].mxu0 }
 0xc54   :  { %v729_v38 = vadd.f32 %v728_v35, %v192_v31  ;;  %v730_v40 = vpop.f32.mrb[13].mxu0  ;;  %v196_v31 = vadd.f32 %v3398_v24, %v3421_v37 }
 0xc55   :  { %v731_v41 = vadd.f32 %v730_v40, %v188_v32  ;;  %v732_v42 = vpop.f32.mrb[14].mxu0 }
 0xc56   :  { %3001 = vtanh.f32 %v729_v38  ;;  %v733_v43 = vpop.f32.mrb[15].mxu0  ;;  %v2757_v46 = vmul.f32 -1.442695, %v729_v38 }
 0xc57   :  { %3003 = vtanh.f32 %v731_v41  ;;  %v2758_v25 = vmul.f32 -1.442695, %v731_v41 }
 0xc58   :  { %3005 = vpow2.f32 %v2757_v46 }
 0xc59   :  { %3007 = vpow2.f32 %v2758_v25 }
 0xc60   :  { %v3002_v44 = vpop.eup %3001 }
 0xc61   :  { %v3004_v45 = vpop.eup %3003  ;;  %751 = vrot.lane.b32.xlu1 %v3002_v44, %s3223_s13 }
 0xc62   :  { %768 = vrot.lane.b32.xlu0 %v3004_v45, %s3223_s13  ;;  %v3006_v20 = vpop.eup %3005 }
 0xc63   :  { %v3008_v8 = vpop.eup %3007  ;;  %v741_v7 = vadd.f32 1.0, %v3006_v20 }
 0xc64   :  { %v742_v22 = vadd.f32 1.0, %v3008_v8 }
 0xc65   :  { %3009 = vrcp.f32 %v741_v7 }
 0xc66   :  { %3011 = vrcp.f32 %v742_v22 }
 0xc6f   :  { %v3010_v29 = vpop.eup %3009 }
 0xc70   :  { %v3012_v47 = vpop.eup %3011  ;;  %v749_v51 = vmul.f32 %v3010_v29, %v655_v56 }
 0xc71   :  { %v766_v53 = vmul.f32 %v3012_v47, %v672_v61 }
 0xcd3   :  { %v752_v26 = vpop.permute.xlu1 %751 }
 0xcd4   :  { %v754_v48 = vmul.f32 %v3010_v29, %v752_v26  ;;  %v769_v49 = vpop.permute.xlu0 %768 }
 0xcd5   :  { %v771_v50 = vmul.f32 %v3012_v47, %v769_v49 }
 0xcd6   :  { %756 = vrot.lane.b32.xlu1 %v754_v48, %s3221_s19 }
 0xcd7   :  { %773 = vrot.lane.b32.xlu0 %v771_v50, %s3221_s19 }
 0xd48   :  { %v757_v52 = vpop.permute.xlu1 %756 }
 0xd49   :  { %v759_v54 = vadd.f32 %v757_v52, %v749_v51  ;;  %v774_v55 = vpop.permute.xlu0 %773 }
 0xd4a   :  { %v776_v57 = vadd.f32 %v774_v55, %v766_v53 }
 0xd4b   :  { %3013 = vtanh.f32 %v759_v54 }
 0xd4c   :  { %3015 = vtanh.f32 %v776_v57 }
 0xd55   :  { %v3014_v63 = vpop.eup %3013 }
 0xd56   :  { %v3016_v0 = vpop.eup %3015  ;;  %762 = vrot.lane.b32.xlu1 %v3014_v63, %s3223_s13 }
 0xd57   :  { %779 = vrot.lane.b32.xlu0 %v3016_v0, %s3223_s13 }
 0xdc8   :  { %v763_v1 = vpop.permute.xlu1 %762 }
 0xdc9   :  { %v765_v2 = vmul.f32 %v3010_v29, %v763_v1  ;;  %v780_v4 = vpop.permute.xlu0 %779 }
 0xdca   :  { %v782_v5 = vmul.f32 %v3012_v47, %v780_v4  ;;  %v202_v4 = vadd.f32 %v3406_v28, %v3421_v37 }
 0xdcb   :  { %786 = vrot.lane.b32.xlu1 %v765_v2, %s3221_s19 }
 0xdcc   :  { %790 = vrot.lane.b32.xlu0 %v782_v5, %s3223_s13  ;;  %v178_v5 = vadd.f32 %v3404_v27, %v3426_v39 }
 0xe3d   :  { %v3572_v56 = vpop.permute.xlu1 %786 }
 0xe3e   :  { %v3574_v61 = vpop.permute.xlu0 %790 }
 0xe3f   :  { %v793_v18 = vsel %vm266_vm1, %v3572_v56, %v3574_v61 }
 0xe40   :  { %v794_v21 = vpack.c.bf16 %v793_v18, %v793_v18 }
 0xe42   :  { %2759 = vmatmul.mubr.msk.bf16.vlgmr.msra.gmra.mrb[20].mxu1 %vm124_vm0, %v794_v21 }
 0xe43   :  { %1007 = vmatpush1.bf16.msra.mxu1 %v3330_v12  ;;  %1038 = vmatprep.mubr.bf16.mxu1 %v3222_v3  ;;  %v184_v12 = vadd.f32 %v3479_v6, %v3426_v39 }
 0xe44   :  { %1008 = vmatprep.subr.bf16.mxu1 %v3222_v3 }
 0xe47   :  { %1009 = vmatpush1.bf16.msra.mxu1 %v3337_v13 }
 0xe48   :  { %1010 = vmatprep.subr.bf16.mxu1 %v3343_v14 }
 0xe4b   :  { %1011 = vmatpush1.bf16.msra.mxu1 %v3222_v3 }
 0xe4c   :  { %1012 = vmatprep.subr.bf16.mxu1 %v3360_v16 }
 0xe4f   :  { %1013 = vmatpush1.bf16.msra.mxu1 %v3222_v3 }
 0xe50   :  { %1355 = vmatprep.subr.bf16.mxu1 %v3222_v3 }
 0xf15   :  { %v832_v32 = vpop.f32.mrb[20].mxu1 }
 0xf16   :  { %v833_v35 = vadd.f32 %v832_v32, %v196_v31  ;;  %v834_v38 = vpop.f32.mrb[21].mxu1 }
 0xf17   :  { %v835_v13 = vadd.f32 %v834_v38, %v184_v12  ;;  %v836_v40 = vpop.f32.mrb[22].mxu1 }
 0xf18   :  { %3017 = vtanh.f32 %v833_v35  ;;  %v837_v14 = vpop.f32.mrb[23].mxu1  ;;  %v2760_v42 = vmul.f32 -1.442695, %v833_v35 }
 0xf19   :  { %3019 = vtanh.f32 %v835_v13  ;;  %v2761_v43 = vmul.f32 -1.442695, %v835_v13 }
 0xf1a   :  { %3021 = vpow2.f32 %v2760_v42 }
 0xf1b   :  { %3023 = vpow2.f32 %v2761_v43 }
 0xf22   :  { %v3018_v41 = vpop.eup %3017 }
 0xf23   :  { %v3020_v16 = vpop.eup %3019  ;;  %855 = vrot.lane.b32.xlu1 %v3018_v41, %s3223_s13 }
 0xf24   :  { %872 = vrot.lane.b32.xlu0 %v3020_v16, %s3223_s13  ;;  %v3022_v24 = vpop.eup %3021 }
 0xf25   :  { %v3024_v6 = vpop.eup %3023  ;;  %v845_v44 = vadd.f32 1.0, %v3022_v24 }
 0xf26   :  { %v846_v45 = vadd.f32 1.0, %v3024_v6 }
 0xf27   :  { %3025 = vrcp.f32 %v845_v44 }
 0xf28   :  { %3027 = vrcp.f32 %v846_v45 }
 0xf31   :  { %v3026_v46 = vpop.eup %3025 }
 0xf32   :  { %v3028_v20 = vpop.eup %3027  ;;  %v853_v29 = vmul.f32 %v3026_v46, %v759_v54 }
 0xf33   :  { %v870_v47 = vmul.f32 %v3028_v20, %v776_v57 }
 0xf95   :  { %v856_v25 = vpop.permute.xlu1 %855 }
 0xf96   :  { %v858_v8 = vmul.f32 %v3026_v46, %v856_v25  ;;  %v873_v7 = vpop.permute.xlu0 %872 }
 0xf97   :  { %v875_v22 = vmul.f32 %v3028_v20, %v873_v7 }
 0xf98   :  { %860 = vrot.lane.b32.xlu1 %v858_v8, %s3221_s19 }
 0xf99   :  { %877 = vrot.lane.b32.xlu0 %v875_v22, %s3221_s19 }
0x100a   :  { %v861_v26 = vpop.permute.xlu1 %860 }
0x100b   :  { %v863_v48 = vadd.f32 %v861_v26, %v853_v29  ;;  %v878_v49 = vpop.permute.xlu0 %877 }
0x100c   :  { %v880_v50 = vadd.f32 %v878_v49, %v870_v47 }
0x100d   :  { %3029 = vtanh.f32 %v863_v48 }
0x100e   :  { %3031 = vtanh.f32 %v880_v50 }
0x1017   :  { %v3030_v51 = vpop.eup %3029 }
0x1018   :  { %v3032_v52 = vpop.eup %3031  ;;  %866 = vrot.lane.b32.xlu1 %v3030_v51, %s3223_s13 }
0x1019   :  { %883 = vrot.lane.b32.xlu0 %v3032_v52, %s3223_s13 }
0x108a   :  { %v867_v53 = vpop.permute.xlu1 %866 }
0x108b   :  { %v869_v55 = vmul.f32 %v3026_v46, %v867_v53  ;;  %v884_v63 = vpop.permute.xlu0 %883 }
0x108c   :  { %v886_v0 = vmul.f32 %v3028_v20, %v884_v63 }
0x108d   :  { %890 = vrot.lane.b32.xlu1 %v869_v55, %s3221_s19  ;;  %v3638_v55 = vld [vmem:[%s4278_s3 + $0x20] sm:$0xff]  }
0x108e   :  { %894 = vrot.lane.b32.xlu0 %v886_v0, %s3223_s13  ;;  %v3645_v0 = vld [vmem:[%s4278_s3 + $0x28] sm:$0xff]  }
0x10ff   :  { %v3601_v54 = vpop.permute.xlu1 %890 }
0x1100   :  { %v3603_v57 = vpop.permute.xlu0 %894 }
0x1101   :  { %v897_v1 = vsel %vm266_vm1, %v3601_v54, %v3603_v57 }
0x1102   :  { %v898_v2 = vpack.c.bf16 %v897_v1, %v897_v1  ;;  %v3652_v1 = vld [vmem:[%s4278_s3 + $0x30] sm:$0xff]  }
0x1104   :  { %2762 = vmatmul.mubr.msk.bf16.vlgmr.msra.gmra.mrb[16].mxu0 %vm124_vm0, %v898_v2  ;;  %v3659_v2 = vld [vmem:[%s4278_s3 + $0x38] sm:$0xff]  }
0x1105   :  { %1262 = vmatprep.mubr.bf16.mxu0 %v3222_v3 }
0x11d7   :  { %v936_v18 = vpop.f32.mrb[16].mxu0 }
0x11d8   :  { %v937_v21 = vadd.f32 %v936_v18, %v202_v4  ;;  %v938_v31 = vpop.f32.mrb[17].mxu0  ;;  %v174_v4 = vadd.f32 %v3396_v23, %v3426_v39 }
0x11d9   :  { %v939_v12 = vadd.f32 %v938_v31, %v178_v5  ;;  %v940_v32 = vpop.f32.mrb[18].mxu0 }
0x11da   :  { %3033 = vtanh.f32 %v937_v21  ;;  %v941_v35 = vpop.f32.mrb[19].mxu0  ;;  %v2763_v40 = vmul.f32 -1.442695, %v937_v21 }
0x11db   :  { %3035 = vtanh.f32 %v939_v12  ;;  %v2764_v14 = vmul.f32 -1.442695, %v939_v12 }
0x11dc   :  { %3037 = vpow2.f32 %v2763_v40 }
0x11dd   :  { %3039 = vpow2.f32 %v2764_v14 }
0x11e4   :  { %v3034_v38 = vpop.eup %3033 }
0x11e5   :  { %v3036_v13 = vpop.eup %3035  ;;  %959 = vrot.lane.b32.xlu1 %v3034_v38, %s3223_s13 }
0x11e6   :  { %976 = vrot.lane.b32.xlu0 %v3036_v13, %s3223_s13  ;;  %v3038_v28 = vpop.eup %3037 }
0x11e7   :  { %v3040_v27 = vpop.eup %3039  ;;  %v949_v41 = vadd.f32 1.0, %v3038_v28 }
0x11e8   :  { %v950_v16 = vadd.f32 1.0, %v3040_v27 }
0x11e9   :  { %3041 = vrcp.f32 %v949_v41 }
0x11ea   :  { %3043 = vrcp.f32 %v950_v16 }
0x11f3   :  { %v3042_v42 = vpop.eup %3041 }
0x11f4   :  { %v3044_v24 = vpop.eup %3043  ;;  %v957_v46 = vmul.f32 %v3042_v42, %v863_v48 }
0x11f5   :  { %v974_v20 = vmul.f32 %v3044_v24, %v880_v50 }
0x1257   :  { %v960_v43 = vpop.permute.xlu1 %959 }
0x1258   :  { %v962_v6 = vmul.f32 %v3042_v42, %v960_v43  ;;  %v977_v44 = vpop.permute.xlu0 %976 }
0x1259   :  { %v979_v45 = vmul.f32 %v3044_v24, %v977_v44 }
0x125a   :  { %964 = vrot.lane.b32.xlu1 %v962_v6, %s3221_s19 }
0x125b   :  { %981 = vrot.lane.b32.xlu0 %v979_v45, %s3221_s19 }
0x12cc   :  { %v965_v25 = vpop.permute.xlu1 %964 }
0x12cd   :  { %v3618_v8 = vadd.f32 %v965_v25, %v957_v46  ;;  %v982_v7 = vpop.permute.xlu0 %981 }
0x12ce   :  { %v3620_v22 = vadd.f32 %v982_v7, %v974_v20 }
0x12cf   :  { %3045 = vtanh.f32 %v3618_v8 }
0x12d0   :  { %3047 = vtanh.f32 %v3620_v22 }
0x12d9   :  { %v3046_v29 = vpop.eup %3045 }
0x12da   :  { %v3048_v26 = vpop.eup %3047  ;;  %970 = vrot.lane.b32.xlu1 %v3046_v29, %s3223_s13 }
0x12db   :  { %987 = vrot.lane.b32.xlu0 %v3048_v26, %s3223_s13  ;;  %v2921_v26 = vld [vmem:[%s4277_s2 + $0x40] ss:$8 sps:$4 sm:$0xff]  }
0x134c   :  { %v971_v47 = vpop.permute.xlu1 %970 }
0x134d   :  { %v973_v49 = vmul.f32 %v3042_v42, %v971_v47  ;;  %v988_v48 = vpop.permute.xlu0 %987  ;;  %v2924_v47 = vld [vmem:[%s4277_s2 + $0x50] ss:$8 sps:$4 sm:$0xff]  }
0x134e   :  { %v990_v51 = vmul.f32 %v3044_v24, %v988_v48  ;;  %v2927_v48 = vld [vmem:[%s4277_s2 + $0x60] ss:$8 sps:$4 sm:$0xff]  }
0x134f   :  { %994 = vrot.lane.b32.xlu1 %v973_v49, %s3221_s19  ;;  %v2929_v49 = vld [vmem:[%s4277_s2 + $0x64] ss:$8 sps:$4 sm:$0xff]  }
0x1350   :  { %998 = vrot.lane.b32.xlu0 %v990_v51, %s3223_s13 }
0x13c1   :  { %v3628_v50 = vpop.permute.xlu1 %994 }
0x13c2   :  { %v3630_v52 = vpop.permute.xlu0 %998 }
0x13c3   :  { %v1001_v53 = vsel %vm266_vm1, %v3628_v50, %v3630_v52 }
0x13c4   :  { %v1002_v63 = vpack.c.bf16 %v1001_v53, %v1001_v53 }
0x13c6   :  { %2765 = vmatmul.mubr.msk.bf16.vlgmr.msra.gmra.mrb[24].mxu1 %vm124_vm0, %v1002_v63  ;;  %v2932_v63 = vld [vmem:[%s4277_s2 + $0x74] ss:$8 sps:$4 sm:$0xff]  }
0x13c7   :  { %1356 = vmatpush1.bf16.msra.mxu1 %v3638_v55  ;;  %1387 = vmatprep.mubr.bf16.mxu1 %v3222_v3 }
0x13c8   :  { %1357 = vmatprep.subr.bf16.mxu1 %v3222_v3 }
0x13cb   :  { %1358 = vmatpush1.bf16.msra.mxu1 %v3645_v0 }
0x13cc   :  { %1359 = vmatprep.subr.bf16.mxu1 %v3652_v1 }
0x13cf   :  { %1360 = vmatpush1.bf16.msra.mxu1 %v3222_v3 }
0x13d0   :  { %1361 = vmatprep.subr.bf16.mxu1 %v3659_v2 }
0x13d3   :  { %1362 = vmatpush1.bf16.msra.mxu1 %v3222_v3 }
0x13d4   :  { %1459 = vmatprep.subr.bf16.mxu1 %v3222_v3 }
0x13d6   :  { %2807 = vmatmul.mubr.msk.bf16.vlgmr.msra.gmra.mrb[28].mxu1 %vm124_vm0, %v3379_v19  ;;  %v206_v19 = vadd.f32 %v3410_v30, %v3421_v37 }
0x13d7   :  { %1460 = vmatpush1.bf16.msra.mxu1 %v3638_v55  ;;  %1491 = vmatprep.mubr.bf16.mxu1 %v3222_v3 }
0x13d8   :  { %1461 = vmatprep.subr.bf16.mxu1 %v3222_v3 }
0x13db   :  { %1462 = vmatpush1.bf16.msra.mxu1 %v3645_v0 }
0x13dc   :  { %1463 = vmatprep.subr.bf16.mxu1 %v3652_v1 }
0x13df   :  { %1464 = vmatpush1.bf16.msra.mxu1 %v3222_v3 }
0x13e0   :  { %1465 = vmatprep.subr.bf16.mxu1 %v3659_v2 }
0x13e3   :  { %1466 = vmatpush1.bf16.msra.mxu1 %v3222_v3 }
0x13e4   :  { %1667 = vmatprep.subr.bf16.mxu1 %v3222_v3 }
0x1499   :  { %v1040_v5 = vpop.f32.mrb[24].mxu1 }
0x149a   :  { %v1041_v18 = vadd.f32 %v1040_v5, %v206_v19  ;;  %v1042_v21 = vpop.f32.mrb[25].mxu1  ;;  %v2930_v19 = vld [vmem:[%s4277_s2 + $0x70] ss:$8 sps:$4 sm:$0xff]  }
0x149b   :  { %v1043_v31 = vadd.f32 %v1042_v21, %v174_v4  ;;  %v1044_v12 = vpop.f32.mrb[26].mxu1 }
0x149c   :  { %3049 = vtanh.f32 %v1041_v18  ;;  %v1045_v32 = vpop.f32.mrb[27].mxu1  ;;  %v2766_v39 = vmul.f32 -1.442695, %v1041_v18 }
0x149d   :  { %3051 = vtanh.f32 %v1043_v31  ;;  %v2767_v40 = vmul.f32 -1.442695, %v1043_v31  ;;  %v1121_v32 = vsel %vm266_vm1, %v3485_v9, %v3630_v52  ;;  %v1123_v9 = vsel %vm266_vm1, %v3544_v59, %v3574_v61 }
0x149e   :  { %3053 = vpow2.f32 %v2766_v39  ;;  %v1124_v59 = vsel %vm266_vm1, %v3572_v56, %v3546_v62  ;;  %v2778_v62 = vld [vmem:[%s4279_s4 + $0x2] sm:$0x3] }
0x149f   :  { %3055 = vpow2.f32 %v2767_v40  ;;  %v1151_v56 = vrot.slane %v2778_v62, %v56_v34  ;;  %v1155_v52 = vrot.slane %v2778_v62, %v60_v36 }
0x14a6   :  { %v3050_v35 = vpop.eup %3049 }
0x14a7   :  { %v3052_v38 = vpop.eup %3051  ;;  %1063 = vrot.lane.b32.xlu0 %v3050_v35, %s3223_s13 }
0x14a8   :  { %1080 = vrot.lane.b32.xlu1 %v3052_v38, %s3223_s13  ;;  %v3054_v14 = vpop.eup %3053 }
0x14a9   :  { %v3682_v13 = vpop.f32.mrb[28].mxu1  ;;  %v3056_v28 = vpop.eup %3055  ;;  %v1053_v27 = vadd.f32 1.0, %v3054_v14 }
0x14aa   :  { %v3684_v30 = vpop.f32.mrb[29].mxu1  ;;  %v1054_v41 = vadd.f32 1.0, %v3056_v28 }
0x14ab   :  { %v1393_v37 = vpop.f32.mrb[30].mxu1  ;;  %3057 = vrcp.f32 %v1053_v27 }
0x14ac   :  { %v1394_v23 = vpop.f32.mrb[31].mxu1  ;;  %3059 = vrcp.f32 %v1054_v41  ;;  %v1122_v37 = vsel %vm266_vm1, %v3515_v58, %v3603_v57  ;;  %v1125_v58 = vsel %vm266_vm1, %v3601_v54, %v3517_v60  ;;  %v1126_v60 = vsel %vm266_vm1, %v3628_v50, %v3487_v15 }
0x14ad   :  { %v2850_v61 = vpack.c.bf16 %v1125_v58, %v1124_v59 }
0x14b5   :  { %v3058_v16 = vpop.eup %3057 }
0x14b6   :  { %v3060_v43 = vpop.eup %3059  ;;  %v1061_v45 = vmul.f32 %v3058_v16, %v3618_v8  ;;  %v2923_v8 = vld [vmem:[%s4277_s2 + $0x44] ss:$8 sps:$4 sm:$0xff]  }
0x14b7   :  { %v1078_v25 = vmul.f32 %v3060_v43, %v3620_v22  ;;  %v2926_v22 = vld [vmem:[%s4277_s2 + $0x54] ss:$8 sps:$4 sm:$0xff]   ;;  %1230 = vmatprep.subr.bf16.mxu0 %v2923_v8 }
0x14b8   :  { %1231 = vmatpush1.bf16.msra.mxu0 %v2921_v26 }
0x14b9   :  { %1232 = vmatprep.subr.bf16.mxu0 %v2926_v22 }
0x14bc   :  { %1233 = vmatpush1.bf16.msra.mxu0 %v2924_v47 }
0x14bd   :  { %1234 = vmatprep.subr.bf16.mxu0 %v2929_v49 }
0x14c0   :  { %1235 = vmatpush1.bf16.msra.mxu0 %v2927_v48 }
0x14c1   :  { %1236 = vmatprep.subr.bf16.mxu0 %v2932_v63 }
0x14c4   :  { %1237 = vmatpush1.bf16.msra.mxu0 %v2930_v19 }
0x14c5   :  { %1563 = vmatprep.subr.bf16.mxu0 %v3222_v3 }
0x1519   :  { %v1064_v42 = vpop.permute.xlu0 %1063 }
0x151a   :  { %v1066_v24 = vmul.f32 %v3058_v16, %v1064_v42  ;;  %v1081_v6 = vpop.permute.xlu1 %1080 }
0x151b   :  { %v1083_v44 = vmul.f32 %v3060_v43, %v1081_v6 }
0x151c   :  { %1068 = vrot.lane.b32.xlu0 %v1066_v24, %s3221_s19 }
0x151d   :  { %1085 = vrot.lane.b32.xlu1 %v1083_v44, %s3221_s19 }
0x158e   :  { %v1069_v46 = vpop.permute.xlu0 %1068 }
0x158f   :  { %v3690_v20 = vadd.f32 %v1069_v46, %v1061_v45  ;;  %v1086_v7 = vpop.permute.xlu1 %1085 }
0x1590   :  { %v3692_v29 = vadd.f32 %v1086_v7, %v1078_v25 }
0x1591   :  { %3061 = vtanh.f32 %v3690_v20 }
0x1592   :  { %3063 = vtanh.f32 %v3692_v29 }
0x159b   :  { %v3062_v51 = vpop.eup %3061 }
0x159c   :  { %v3064_v53 = vpop.eup %3063  ;;  %1074 = vrot.lane.b32.xlu0 %v3062_v51, %s3223_s13 }
0x159d   :  { %1091 = vrot.lane.b32.xlu1 %v3064_v53, %s3223_s13 }
0x160e   :  { %v1075_v4 = vpop.permute.xlu0 %1074 }
0x160f   :  { %v1077_v5 = vmul.f32 %v3058_v16, %v1075_v4  ;;  %v1092_v18 = vpop.permute.xlu1 %1091 }
0x1610   :  { %v3723_v21 = vmul.f32 %v3060_v43, %v1092_v18 }
0x1611   :  { %1096 = vrot.lane.b32.xlu0 %v1077_v5, %s3221_s19 }
0x1612   :  { %1117 = vrot.lane.b32.xlu1 %v3723_v21, %s3223_s13 }
0x1683   :  { %v1097_v31 = vpop.permute.xlu0 %1096 }
0x1684   :  { %1099 = vst.msk [vmem:[%s4284_s9] sm:$0xff] %vm266_vm1, %v1097_v31  ;;  %v1118_v12 = vpop.permute.xlu1 %1117  ;;  %v1127_v57 = vsel %vm266_vm1, %v1097_v31, %v3441_v11 }
0x1685   :  { %v1120_v35 = vsel %vm266_vm1, %v3439_v10, %v1118_v12  ;;  %v2849_v10 = vpack.c.bf16 %v1123_v9, %v1122_v37  ;;  %v2851_v54 = vpack.c.bf16 %v1127_v57, %v1126_v60 }
0x1686   :  { %v2848_v38 = vpack.c.bf16 %v1121_v32, %v1120_v35 }
0x1688   :  { %2791 = vmatmul.mubr.msk.bf16.vlgmr.msra.gmra.mrb[20].mxu0 %vm124_vm0, %v2848_v38 }
0x1689   :  { %1272 = vmatprep.mubr.bf16.mxu0 %v3222_v3  ;;  %1564 = vmatpush1.bf16.msra.mxu0 %v3638_v55 }
0x168a   :  { %1565 = vmatprep.subr.bf16.mxu0 %v3222_v3 }
0x168d   :  { %1566 = vmatpush1.bf16.msra.mxu0 %v3645_v0 }
0x168e   :  { %1567 = vmatprep.subr.bf16.mxu0 %v3652_v1 }
0x1690   :  { %2792 = vmatmul.mubr.msk.bf16.gmra.mrb[24].mxu0 %vm124_vm0, %v2849_v10 }
0x1691   :  { %1282 = vmatprep.mubr.bf16.mxu0 %v3222_v3  ;;  %1568 = vmatpush1.bf16.msra.mxu0 %v3222_v3 }
0x1692   :  { %1569 = vmatprep.subr.bf16.mxu0 %v3659_v2 }
0x1695   :  { %1570 = vmatpush1.bf16.msra.mxu0 %v3222_v3 }
0x1696   :  { %1771 = vmatprep.subr.bf16.mxu0 %v3222_v3 }
0x1698   :  { %2793 = vmatmul.mubr.msk.bf16.gmra.mrb[28].mxu0 %vm124_vm0, %v2850_v61 }
0x1699   :  { %1292 = vmatprep.mubr.bf16.mxu0 %v3222_v3 }
0x16a0   :  { %2794 = vmatmul.mubr.msk.bf16.gmra.mrb[32].mxu0 %vm124_vm0, %v2851_v54 }
0x16a1   :  { %1595 = vmatprep.mubr.bf16.mxu0 %v3222_v3 }
0x175b   :  { %v1264_v11 = vpop.f32.mrb[20].mxu0 }
0x175c   :  { %v1265_v23 = vadd.f32 %v1264_v11, %v1151_v56  ;;  %v1266_v39 = vpop.f32.mrb[21].mxu0 }
0x175d   :  { %v3777_v40 = vadd.f32 %v1266_v39, %v1155_v52  ;;  %v1268_v15 = vpop.f32.mrb[22].mxu0 }
0x175e   :  { %v1390_v50 = vadd.f32 %v3682_v13, %v1265_v23  ;;  %v3780_v14 = vadd.f32 %v1268_v15, %v1151_v56  ;;  %v1270_v28 = vpop.f32.mrb[23].mxu0 }
0x175f   :  { %v3782_v27 = vadd.f32 %v1270_v28, %v1155_v52 }
0x1760   :  { %3065 = vtanh.f32 %v1390_v50  ;;  %v2808_v31 = vmul.f32 -1.442695, %v1390_v50 }
0x1763   :  { %v1274_v41 = vpop.f32.mrb[24].mxu0 }
0x1764   :  { %v3784_v16 = vadd.f32 %v1274_v41, %v1151_v56  ;;  %v1276_v34 = vpop.f32.mrb[25].mxu0 }
0x1765   :  { %v3786_v42 = vadd.f32 %v1276_v34, %v1155_v52  ;;  %v1278_v36 = vpop.f32.mrb[26].mxu0 }
0x1766   :  { %v3788_v43 = vadd.f32 %v1278_v36, %v1151_v56  ;;  %v1280_v24 = vpop.f32.mrb[27].mxu0 }
0x1767   :  { %v3790_v6 = vadd.f32 %v1280_v24, %v1155_v52 }
0x176a   :  { %v3066_v44 = vpop.eup %3065 }
0x176b   :  { %v1284_v13 = vpop.f32.mrb[28].mxu0  ;;  %1412 = vrot.lane.b32.xlu1 %v3066_v44, %s3223_s13 }
0x176c   :  { %v3793_v45 = vadd.f32 %v1284_v13, %v1151_v56  ;;  %v1286_v46 = vpop.f32.mrb[29].mxu0 }
0x176d   :  { %v3795_v25 = vadd.f32 %v1286_v46, %v1155_v52  ;;  %v1288_v7 = vpop.f32.mrb[30].mxu0 }
0x176e   :  { %v3797_v26 = vadd.f32 %v1288_v7, %v1151_v56  ;;  %v1290_v8 = vpop.f32.mrb[31].mxu0 }
0x176f   :  { %v3799_v22 = vadd.f32 %v1290_v8, %v1155_v52 }
0x1773   :  { %v1294_v47 = vpop.f32.mrb[32].mxu0 }
0x1774   :  { %v3801_v49 = vadd.f32 %v1294_v47, %v1151_v56  ;;  %v1296_v48 = vpop.f32.mrb[33].mxu0 }
0x1775   :  { %v1297_v51 = vadd.f32 %v1296_v48, %v1155_v52  ;;  %v1298_v53 = vpop.f32.mrb[34].mxu0 }
0x1776   :  { %v3803_v63 = vadd.f32 %v1298_v53, %v1151_v56  ;;  %v1300_v19 = vpop.f32.mrb[35].mxu0 }
0x1777   :  { %v1301_v4 = vadd.f32 %v1300_v19, %v1155_v52 }
0x1779   :  { %v1392_v5 = vadd.f32 %v3684_v30, %v1301_v4 }
0x177b   :  { %3067 = vtanh.f32 %v1392_v5  ;;  %v2809_v35 = vmul.f32 -1.442695, %v1392_v5 }
0x177c   :  { %3069 = vpow2.f32 %v2808_v31 }
0x1785   :  { %v3068_v18 = vpop.eup %3067 }
0x1786   :  { %1429 = vrot.lane.b32.xlu0 %v3068_v18, %s3223_s13  ;;  %v3070_v12 = vpop.eup %3069 }
0x1787   :  { %v1402_v32 = vadd.f32 1.0, %v3070_v12 }
0x1789   :  { %3071 = vrcp.f32 %v1402_v32 }
0x178a   :  { %3073 = vpow2.f32 %v2809_v35 }
0x1793   :  { %v3072_v38 = vpop.eup %3071 }
0x1794   :  { %v3074_v10 = vpop.eup %3073  ;;  %v1410_v57 = vmul.f32 %v3072_v38, %v3374_v17 }
0x1795   :  { %v1403_v58 = vadd.f32 1.0, %v3074_v10 }
0x1797   :  { %3075 = vrcp.f32 %v1403_v58 }
0x17a1   :  { %v3076_v30 = vpop.eup %3075 }
0x17a2   :  { %v1427_v56 = vmul.f32 %v3076_v30, %v3374_v17 }
0x17dd   :  { %v1413_v37 = vpop.permute.xlu1 %1412 }
0x17de   :  { %v1415_v9 = vmul.f32 %v3072_v38, %v1413_v37 }
0x17e0   :  { %1417 = vrot.lane.b32.xlu1 %v1415_v9, %s3221_s19 }
0x17f8   :  { %v1430_v59 = vpop.permute.xlu0 %1429 }
0x17f9   :  { %v1432_v61 = vmul.f32 %v3076_v30, %v1430_v59 }
0x17fb   :  { %1434 = vrot.lane.b32.xlu0 %v1432_v61, %s3221_s19 }
0x1852   :  { %v1418_v60 = vpop.permute.xlu1 %1417 }
0x1853   :  { %v1420_v54 = vadd.f32 %v1418_v60, %v1410_v57 }
0x1855   :  { %3077 = vtanh.f32 %v1420_v54 }
0x185f   :  { %v3078_v62 = vpop.eup %3077 }
0x1860   :  { %1423 = vrot.lane.b32.xlu1 %v3078_v62, %s3223_s13 }
0x186d   :  { %v1435_v52 = vpop.permute.xlu0 %1434 }
0x186e   :  { %v1437_v11 = vadd.f32 %v1435_v52, %v1427_v56 }
0x1870   :  { %3079 = vtanh.f32 %v1437_v11 }
0x187a   :  { %v3080_v23 = vpop.eup %3079 }
0x187b   :  { %1440 = vrot.lane.b32.xlu0 %v3080_v23, %s3223_s13 }
0x18d2   :  { %v1424_v39 = vpop.permute.xlu1 %1423 }
0x18d3   :  { %v1426_v15 = vmul.f32 %v3072_v38, %v1424_v39 }
0x18d5   :  { %1447 = vrot.lane.b32.xlu1 %v1426_v15, %s3221_s19 }
0x18ed   :  { %v1441_v50 = vpop.permute.xlu0 %1440 }
0x18ee   :  { %v1443_v28 = vmul.f32 %v3076_v30, %v1441_v50 }
0x18f0   :  { %1451 = vrot.lane.b32.xlu0 %v1443_v28, %s3223_s13 }
0x1947   :  { %v3815_v41 = vpop.permute.xlu1 %1447 }
0x1962   :  { %v3817_v34 = vpop.permute.xlu0 %1451 }
0x1963   :  { %v1454_v17 = vsel %vm266_vm1, %v3815_v41, %v3817_v34 }
0x1964   :  { %v1455_v36 = vpack.c.bf16 %v1454_v17, %v1454_v17 }
0x1966   :  { %2810 = vmatmul.mubr.msk.bf16.vlgmr.msra.gmra.mrb[32].mxu1 %vm124_vm0, %v1455_v36 }
0x1967   :  { %1668 = vmatpush1.bf16.msra.mxu1 %v3638_v55  ;;  %1699 = vmatprep.mubr.bf16.mxu1 %v3222_v3 }
0x1968   :  { %1669 = vmatprep.subr.bf16.mxu1 %v3222_v3 }
0x196b   :  { %1670 = vmatpush1.bf16.msra.mxu1 %v3645_v0 }
0x196c   :  { %1671 = vmatprep.subr.bf16.mxu1 %v3652_v1 }
0x196f   :  { %1672 = vmatpush1.bf16.msra.mxu1 %v3222_v3 }
0x1970   :  { %1673 = vmatprep.subr.bf16.mxu1 %v3659_v2 }
0x1973   :  { %1674 = vmatpush1.bf16.msra.mxu1 %v3222_v3 }
0x1974   :  { %1875 = vmatprep.subr.bf16.mxu1 %v3222_v3 }
0x1a39   :  { %v1493_v24 = vpop.f32.mrb[32].mxu1 }
0x1a3a   :  { %v1494_v44 = vadd.f32 %v1493_v24, %v3780_v14  ;;  %v1495_v13 = vpop.f32.mrb[33].mxu1 }
0x1a3b   :  { %v1496_v46 = vadd.f32 %v1495_v13, %v1297_v51  ;;  %v1497_v7 = vpop.f32.mrb[34].mxu1 }
0x1a3c   :  { %3081 = vtanh.f32 %v1494_v44  ;;  %v1498_v8 = vpop.f32.mrb[35].mxu1  ;;  %v2811_v53 = vmul.f32 -1.442695, %v1494_v44 }
0x1a3d   :  { %3083 = vtanh.f32 %v1496_v46  ;;  %v2812_v19 = vmul.f32 -1.442695, %v1496_v46 }
0x1a3e   :  { %3085 = vpow2.f32 %v2811_v53 }
0x1a3f   :  { %3087 = vpow2.f32 %v2812_v19 }
0x1a46   :  { %v3082_v47 = vpop.eup %3081 }
0x1a47   :  { %v3084_v48 = vpop.eup %3083  ;;  %1516 = vrot.lane.b32.xlu1 %v3082_v47, %s3223_s13 }
0x1a48   :  { %1533 = vrot.lane.b32.xlu0 %v3084_v48, %s3223_s13  ;;  %v3086_v4 = vpop.eup %3085 }
0x1a49   :  { %v3088_v5 = vpop.eup %3087  ;;  %v1506_v18 = vadd.f32 1.0, %v3086_v4 }
0x1a4a   :  { %v1507_v14 = vadd.f32 1.0, %v3088_v5 }
0x1a4b   :  { %3089 = vrcp.f32 %v1506_v18 }
0x1a4c   :  { %3091 = vrcp.f32 %v1507_v14 }
0x1a55   :  { %v3090_v51 = vpop.eup %3089 }
0x1a56   :  { %v3092_v12 = vpop.eup %3091  ;;  %v1514_v37 = vmul.f32 %v3090_v51, %v1420_v54 }
0x1a57   :  { %v1531_v10 = vmul.f32 %v3092_v12, %v1437_v11 }
0x1ab9   :  { %v1517_v31 = vpop.permute.xlu1 %1516 }
0x1aba   :  { %v1519_v32 = vmul.f32 %v3090_v51, %v1517_v31  ;;  %v1534_v35 = vpop.permute.xlu0 %1533 }
0x1abb   :  { %v1536_v38 = vmul.f32 %v3092_v12, %v1534_v35 }
0x1abc   :  { %1521 = vrot.lane.b32.xlu1 %v1519_v32, %s3221_s19 }
0x1abd   :  { %1538 = vrot.lane.b32.xlu0 %v1536_v38, %s3221_s19 }
0x1b2e   :  { %v1522_v9 = vpop.permute.xlu1 %1521 }
0x1b2f   :  { %v1524_v58 = vadd.f32 %v1522_v9, %v1514_v37  ;;  %v1539_v30 = vpop.permute.xlu0 %1538 }
0x1b30   :  { %v1541_v59 = vadd.f32 %v1539_v30, %v1531_v10 }
0x1b31   :  { %3093 = vtanh.f32 %v1524_v58 }
0x1b32   :  { %3095 = vtanh.f32 %v1541_v59 }
0x1b3b   :  { %v3094_v61 = vpop.eup %3093 }
0x1b3c   :  { %v3096_v57 = vpop.eup %3095  ;;  %1527 = vrot.lane.b32.xlu1 %v3094_v61, %s3223_s13 }
0x1b3d   :  { %1544 = vrot.lane.b32.xlu0 %v3096_v57, %s3223_s13 }
0x1bae   :  { %v1528_v60 = vpop.permute.xlu1 %1527 }
0x1baf   :  { %v1530_v62 = vmul.f32 %v3090_v51, %v1528_v60  ;;  %v1545_v56 = vpop.permute.xlu0 %1544 }
0x1bb0   :  { %v1547_v52 = vmul.f32 %v3092_v12, %v1545_v56 }
0x1bb1   :  { %1551 = vrot.lane.b32.xlu1 %v1530_v62, %s3221_s19 }
0x1bb2   :  { %1555 = vrot.lane.b32.xlu0 %v1547_v52, %s3223_s13 }
0x1c23   :  { %v3841_v54 = vpop.permute.xlu1 %1551 }
0x1c24   :  { %v3843_v11 = vpop.permute.xlu0 %1555 }
0x1c25   :  { %v1558_v23 = vsel %vm266_vm1, %v3841_v54, %v3843_v11 }
0x1c26   :  { %v1559_v39 = vpack.c.bf16 %v1558_v23, %v1558_v23 }
0x1c28   :  { %2813 = vmatmul.mubr.msk.bf16.vlgmr.msra.gmra.mrb[36].mxu0 %vm124_vm0, %v1559_v39 }
0x1c29   :  { %1772 = vmatpush1.bf16.msra.mxu0 %v3638_v55  ;;  %1803 = vmatprep.mubr.bf16.mxu0 %v3222_v3 }
0x1c2a   :  { %1773 = vmatprep.subr.bf16.mxu0 %v3222_v3 }
0x1c2d   :  { %1774 = vmatpush1.bf16.msra.mxu0 %v3645_v0 }
0x1c2e   :  { %1775 = vmatprep.subr.bf16.mxu0 %v3652_v1 }
0x1c31   :  { %1776 = vmatpush1.bf16.msra.mxu0 %v3222_v3 }
0x1c32   :  { %1777 = vmatprep.subr.bf16.mxu0 %v3659_v2 }
0x1c35   :  { %1778 = vmatpush1.bf16.msra.mxu0 %v3222_v3 }
0x1c36   :  { %1979 = vmatprep.subr.bf16.mxu0 %v3222_v3 }
0x1cfb   :  { %v1597_v15 = vpop.f32.mrb[36].mxu0 }
0x1cfc   :  { %v1598_v50 = vadd.f32 %v1597_v15, %v3784_v16  ;;  %v1599_v28 = vpop.f32.mrb[37].mxu0 }
0x1cfd   :  { %v1600_v17 = vadd.f32 %v1599_v28, %v3799_v22  ;;  %v1601_v36 = vpop.f32.mrb[38].mxu0 }
0x1cfe   :  { %3097 = vtanh.f32 %v1598_v50  ;;  %v1602_v24 = vpop.f32.mrb[39].mxu0  ;;  %v2814_v46 = vmul.f32 -1.442695, %v1598_v50 }
0x1cff   :  { %3099 = vtanh.f32 %v1600_v17  ;;  %v2815_v7 = vmul.f32 -1.442695, %v1600_v17 }
0x1d00   :  { %3101 = vpow2.f32 %v2814_v46 }
0x1d01   :  { %3103 = vpow2.f32 %v2815_v7 }
0x1d08   :  { %v3098_v44 = vpop.eup %3097 }
0x1d09   :  { %v3100_v13 = vpop.eup %3099  ;;  %1620 = vrot.lane.b32.xlu1 %v3098_v44, %s3223_s13 }
0x1d0a   :  { %1637 = vrot.lane.b32.xlu0 %v3100_v13, %s3223_s13  ;;  %v3102_v8 = vpop.eup %3101 }
0x1d0b   :  { %v3104_v47 = vpop.eup %3103  ;;  %v1610_v16 = vadd.f32 1.0, %v3102_v8 }
0x1d0c   :  { %v1611_v48 = vadd.f32 1.0, %v3104_v47 }
0x1d0d   :  { %3105 = vrcp.f32 %v1610_v16 }
0x1d0e   :  { %3107 = vrcp.f32 %v1611_v48 }
0x1d17   :  { %v3106_v22 = vpop.eup %3105 }
0x1d18   :  { %v3108_v19 = vpop.eup %3107  ;;  %v1618_v14 = vmul.f32 %v3106_v22, %v1524_v58 }
0x1d19   :  { %v1635_v31 = vmul.f32 %v3108_v19, %v1541_v59 }
0x1d7b   :  { %v1621_v53 = vpop.permute.xlu1 %1620 }
0x1d7c   :  { %v1623_v4 = vmul.f32 %v3106_v22, %v1621_v53  ;;  %v1638_v5 = vpop.permute.xlu0 %1637 }
0x1d7d   :  { %v1640_v18 = vmul.f32 %v3108_v19, %v1638_v5 }
0x1d7e   :  { %1625 = vrot.lane.b32.xlu1 %v1623_v4, %s3221_s19 }
0x1d7f   :  { %1642 = vrot.lane.b32.xlu0 %v1640_v18, %s3221_s19 }
0x1df0   :  { %v1626_v51 = vpop.permute.xlu1 %1625 }
0x1df1   :  { %v1628_v12 = vadd.f32 %v1626_v51, %v1618_v14  ;;  %v1643_v32 = vpop.permute.xlu0 %1642 }
0x1df2   :  { %v1645_v35 = vadd.f32 %v1643_v32, %v1635_v31 }
0x1df3   :  { %3109 = vtanh.f32 %v1628_v12 }
0x1df4   :  { %3111 = vtanh.f32 %v1645_v35 }
0x1dfd   :  { %v3110_v38 = vpop.eup %3109 }
0x1dfe   :  { %v3112_v37 = vpop.eup %3111  ;;  %1631 = vrot.lane.b32.xlu1 %v3110_v38, %s3223_s13 }
0x1dff   :  { %1648 = vrot.lane.b32.xlu0 %v3112_v37, %s3223_s13 }
0x1e70   :  { %v1632_v9 = vpop.permute.xlu1 %1631 }
0x1e71   :  { %v1634_v10 = vmul.f32 %v3106_v22, %v1632_v9  ;;  %v1649_v30 = vpop.permute.xlu0 %1648 }
0x1e72   :  { %v1651_v61 = vmul.f32 %v3108_v19, %v1649_v30 }
0x1e73   :  { %1655 = vrot.lane.b32.xlu1 %v1634_v10, %s3221_s19 }
0x1e74   :  { %1659 = vrot.lane.b32.xlu0 %v1651_v61, %s3223_s13 }
0x1ee5   :  { %v3868_v58 = vpop.permute.xlu1 %1655 }
0x1ee6   :  { %v3870_v59 = vpop.permute.xlu0 %1659 }
0x1ee7   :  { %v1662_v57 = vsel %vm266_vm1, %v3868_v58, %v3870_v59 }
0x1ee8   :  { %v1663_v60 = vpack.c.bf16 %v1662_v57, %v1662_v57 }
0x1eea   :  { %2816 = vmatmul.mubr.msk.bf16.vlgmr.msra.gmra.mrb[36].mxu1 %vm124_vm0, %v1663_v60 }
0x1eeb   :  { %1876 = vmatpush1.bf16.msra.mxu1 %v3638_v55  ;;  %1907 = vmatprep.mubr.bf16.mxu1 %v3222_v3 }
0x1eec   :  { %1877 = vmatprep.subr.bf16.mxu1 %v3222_v3 }
0x1eef   :  { %1878 = vmatpush1.bf16.msra.mxu1 %v3645_v0 }
0x1ef0   :  { %1879 = vmatprep.subr.bf16.mxu1 %v3652_v1 }
0x1ef3   :  { %1880 = vmatpush1.bf16.msra.mxu1 %v3222_v3 }
0x1ef4   :  { %1881 = vmatprep.subr.bf16.mxu1 %v3659_v2 }
0x1ef7   :  { %1882 = vmatpush1.bf16.msra.mxu1 %v3222_v3 }
0x1ef8   :  { %2083 = vmatprep.subr.bf16.mxu1 %v3222_v3 }
0x1fbd   :  { %v1701_v62 = vpop.f32.mrb[36].mxu1 }
0x1fbe   :  { %v1702_v56 = vadd.f32 %v1701_v62, %v3788_v43  ;;  %v1703_v52 = vpop.f32.mrb[37].mxu1 }
0x1fbf   :  { %v1704_v23 = vadd.f32 %v1703_v52, %v3795_v25  ;;  %v1705_v39 = vpop.f32.mrb[38].mxu1 }
0x1fc0   :  { %3113 = vtanh.f32 %v1702_v56  ;;  %v1706_v15 = vpop.f32.mrb[39].mxu1  ;;  %v2817_v17 = vmul.f32 -1.442695, %v1702_v56 }
0x1fc1   :  { %3115 = vtanh.f32 %v1704_v23  ;;  %v2818_v36 = vmul.f32 -1.442695, %v1704_v23 }
0x1fc2   :  { %3117 = vpow2.f32 %v2817_v17 }
0x1fc3   :  { %3119 = vpow2.f32 %v2818_v36 }
0x1fca   :  { %v3114_v50 = vpop.eup %3113 }
0x1fcb   :  { %v3116_v28 = vpop.eup %3115  ;;  %1724 = vrot.lane.b32.xlu1 %v3114_v50, %s3223_s13 }
0x1fcc   :  { %1741 = vrot.lane.b32.xlu0 %v3116_v28, %s3223_s13  ;;  %v3118_v24 = vpop.eup %3117 }
0x1fcd   :  { %v3120_v44 = vpop.eup %3119  ;;  %v1714_v43 = vadd.f32 1.0, %v3118_v24 }
0x1fce   :  { %v1715_v13 = vadd.f32 1.0, %v3120_v44 }
0x1fcf   :  { %3121 = vrcp.f32 %v1714_v43 }
0x1fd0   :  { %3123 = vrcp.f32 %v1715_v13 }
0x1fd9   :  { %v3122_v25 = vpop.eup %3121 }
0x1fda   :  { %v3124_v7 = vpop.eup %3123  ;;  %v1722_v48 = vmul.f32 %v3122_v25, %v1628_v12 }
0x1fdb   :  { %v1739_v53 = vmul.f32 %v3124_v7, %v1645_v35 }
0x203d   :  { %v1725_v46 = vpop.permute.xlu1 %1724 }
0x203e   :  { %v1727_v8 = vmul.f32 %v3122_v25, %v1725_v46  ;;  %v1742_v47 = vpop.permute.xlu0 %1741 }
0x203f   :  { %v1744_v16 = vmul.f32 %v3124_v7, %v1742_v47 }
0x2040   :  { %1729 = vrot.lane.b32.xlu1 %v1727_v8, %s3221_s19 }
0x2041   :  { %1746 = vrot.lane.b32.xlu0 %v1744_v16, %s3221_s19 }
0x20b2   :  { %v1730_v22 = vpop.permute.xlu1 %1729 }
0x20b3   :  { %v1732_v19 = vadd.f32 %v1730_v22, %v1722_v48  ;;  %v1747_v4 = vpop.permute.xlu0 %1746 }
0x20b4   :  { %v1749_v5 = vadd.f32 %v1747_v4, %v1739_v53 }
0x20b5   :  { %3125 = vtanh.f32 %v1732_v19 }
0x20b6   :  { %3127 = vtanh.f32 %v1749_v5 }
0x20bf   :  { %v3126_v18 = vpop.eup %3125 }
0x20c0   :  { %v3128_v14 = vpop.eup %3127  ;;  %1735 = vrot.lane.b32.xlu1 %v3126_v18, %s3223_s13 }
0x20c1   :  { %1752 = vrot.lane.b32.xlu0 %v3128_v14, %s3223_s13 }
0x2132   :  { %v1736_v51 = vpop.permute.xlu1 %1735 }
0x2133   :  { %v1738_v31 = vmul.f32 %v3122_v25, %v1736_v51  ;;  %v1753_v32 = vpop.permute.xlu0 %1752 }
0x2134   :  { %v1755_v38 = vmul.f32 %v3124_v7, %v1753_v32 }
0x2135   :  { %1759 = vrot.lane.b32.xlu1 %v1738_v31, %s3221_s19 }
0x2136   :  { %1763 = vrot.lane.b32.xlu0 %v1755_v38, %s3223_s13 }
0x21a7   :  { %v3895_v12 = vpop.permute.xlu1 %1759 }
0x21a8   :  { %v3897_v35 = vpop.permute.xlu0 %1763 }
0x21a9   :  { %v1766_v37 = vsel %vm266_vm1, %v3895_v12, %v3897_v35 }
0x21aa   :  { %v1767_v9 = vpack.c.bf16 %v1766_v37, %v1766_v37 }
0x21ac   :  { %2819 = vmatmul.mubr.msk.bf16.vlgmr.msra.gmra.mrb[40].mxu0 %vm124_vm0, %v1767_v9 }
0x21ad   :  { %1980 = vmatpush1.bf16.msra.mxu0 %v3638_v55  ;;  %2011 = vmatprep.mubr.bf16.mxu0 %v3222_v3 }
0x21ae   :  { %1981 = vmatprep.subr.bf16.mxu0 %v3222_v3 }
0x21b1   :  { %1982 = vmatpush1.bf16.msra.mxu0 %v3645_v0 }
0x21b2   :  { %1983 = vmatprep.subr.bf16.mxu0 %v3652_v1 }
0x21b5   :  { %1984 = vmatpush1.bf16.msra.mxu0 %v3222_v3 }
0x21b6   :  { %1985 = vmatprep.subr.bf16.mxu0 %v3659_v2 }
0x21b9   :  { %1986 = vmatpush1.bf16.msra.mxu0 %v3222_v3 }
0x227f   :  { %v1805_v10 = vpop.f32.mrb[40].mxu0 }
0x2280   :  { %v1806_v30 = vadd.f32 %v1805_v10, %v3793_v45  ;;  %v1807_v61 = vpop.f32.mrb[41].mxu0 }
0x2281   :  { %v1808_v57 = vadd.f32 %v1807_v61, %v3790_v6  ;;  %v1809_v60 = vpop.f32.mrb[42].mxu0 }
0x2282   :  { %3129 = vtanh.f32 %v1806_v30  ;;  %v1810_v62 = vpop.f32.mrb[43].mxu0  ;;  %v2820_v23 = vmul.f32 -1.442695, %v1806_v30 }
0x2283   :  { %3131 = vtanh.f32 %v1808_v57  ;;  %v2821_v39 = vmul.f32 -1.442695, %v1808_v57 }
0x2284   :  { %3133 = vpow2.f32 %v2820_v23 }
0x2285   :  { %3135 = vpow2.f32 %v2821_v39 }
0x228c   :  { %v3130_v56 = vpop.eup %3129 }
0x228d   :  { %v3132_v52 = vpop.eup %3131  ;;  %1828 = vrot.lane.b32.xlu1 %v3130_v56, %s3223_s13 }
0x228e   :  { %1845 = vrot.lane.b32.xlu0 %v3132_v52, %s3223_s13  ;;  %v3134_v15 = vpop.eup %3133 }
0x228f   :  { %v3136_v50 = vpop.eup %3135  ;;  %v1818_v45 = vadd.f32 1.0, %v3134_v15 }
0x2290   :  { %v1819_v28 = vadd.f32 1.0, %v3136_v50 }
0x2291   :  { %3137 = vrcp.f32 %v1818_v45 }
0x2292   :  { %3139 = vrcp.f32 %v1819_v28 }
0x229b   :  { %v3138_v6 = vpop.eup %3137 }
0x229c   :  { %v3140_v36 = vpop.eup %3139  ;;  %v1826_v13 = vmul.f32 %v3138_v6, %v1732_v19 }
0x229d   :  { %v1843_v46 = vmul.f32 %v3140_v36, %v1749_v5 }
0x22ff   :  { %v1829_v17 = vpop.permute.xlu1 %1828 }
0x2300   :  { %v1831_v24 = vmul.f32 %v3138_v6, %v1829_v17  ;;  %v1846_v44 = vpop.permute.xlu0 %1845 }
0x2301   :  { %v1848_v43 = vmul.f32 %v3140_v36, %v1846_v44 }
0x2302   :  { %1833 = vrot.lane.b32.xlu1 %v1831_v24, %s3221_s19 }
0x2303   :  { %1850 = vrot.lane.b32.xlu0 %v1848_v43, %s3221_s19 }
0x2374   :  { %v1834_v25 = vpop.permute.xlu1 %1833 }
0x2375   :  { %v1836_v7 = vadd.f32 %v1834_v25, %v1826_v13  ;;  %v1851_v8 = vpop.permute.xlu0 %1850 }
0x2376   :  { %v1853_v47 = vadd.f32 %v1851_v8, %v1843_v46 }
0x2377   :  { %3141 = vtanh.f32 %v1836_v7 }
0x2378   :  { %3143 = vtanh.f32 %v1853_v47 }
0x2381   :  { %v3142_v16 = vpop.eup %3141 }
0x2382   :  { %v3144_v48 = vpop.eup %3143  ;;  %1839 = vrot.lane.b32.xlu1 %v3142_v16, %s3223_s13 }
0x2383   :  { %1856 = vrot.lane.b32.xlu0 %v3144_v48, %s3223_s13 }
0x23f4   :  { %v1840_v22 = vpop.permute.xlu1 %1839 }
0x23f5   :  { %v1842_v53 = vmul.f32 %v3138_v6, %v1840_v22  ;;  %v1857_v4 = vpop.permute.xlu0 %1856 }
0x23f6   :  { %v1859_v18 = vmul.f32 %v3140_v36, %v1857_v4 }
0x23f7   :  { %1863 = vrot.lane.b32.xlu1 %v1842_v53, %s3221_s19 }
0x23f8   :  { %1867 = vrot.lane.b32.xlu0 %v1859_v18, %s3223_s13 }
0x2469   :  { %v3921_v19 = vpop.permute.xlu1 %1863 }
0x246a   :  { %v3923_v5 = vpop.permute.xlu0 %1867 }
0x246b   :  { %v1870_v14 = vsel %vm266_vm1, %v3921_v19, %v3923_v5 }
0x246c   :  { %v1871_v51 = vpack.c.bf16 %v1870_v14, %v1870_v14 }
0x246e   :  { %2822 = vmatmul.mubr.msk.bf16.vlgmr.msra.gmra.mrb[40].mxu1 %vm124_vm0, %v1871_v51 }
0x246f   :  { %2084 = vmatpush1.bf16.msra.mxu1 %v3638_v55  ;;  %2115 = vmatprep.mubr.bf16.mxu1 %v3222_v3 }
0x2470   :  { %2085 = vmatprep.subr.bf16.mxu1 %v3222_v3 }
0x2473   :  { %2086 = vmatpush1.bf16.msra.mxu1 %v3645_v0 }
0x2474   :  { %2087 = vmatprep.subr.bf16.mxu1 %v3652_v1 }
0x2477   :  { %2088 = vmatpush1.bf16.msra.mxu1 %v3222_v3 }
0x2478   :  { %2089 = vmatprep.subr.bf16.mxu1 %v3659_v2 }
0x247b   :  { %2090 = vmatpush1.bf16.msra.mxu1 %v3222_v3 }
0x2541   :  { %v1909_v31 = vpop.f32.mrb[40].mxu1 }
0x2542   :  { %v1910_v32 = vadd.f32 %v1909_v31, %v3797_v26  ;;  %v1911_v38 = vpop.f32.mrb[41].mxu1 }
0x2543   :  { %v1912_v55 = vadd.f32 %v1911_v38, %v3786_v42  ;;  %v1913_v37 = vpop.f32.mrb[42].mxu1 }
0x2544   :  { %3145 = vtanh.f32 %v1910_v32  ;;  %v1914_v9 = vpop.f32.mrb[43].mxu1  ;;  %v2823_v1 = vmul.f32 -1.442695, %v1910_v32 }
0x2545   :  { %3147 = vtanh.f32 %v1912_v55  ;;  %v2824_v2 = vmul.f32 -1.442695, %v1912_v55 }
0x2546   :  { %3149 = vpow2.f32 %v2823_v1 }
0x2547   :  { %3151 = vpow2.f32 %v2824_v2 }
0x254e   :  { %v3146_v10 = vpop.eup %3145 }
0x254f   :  { %v3148_v0 = vpop.eup %3147  ;;  %1932 = vrot.lane.b32.xlu1 %v3146_v10, %s3223_s13 }
0x2550   :  { %1949 = vrot.lane.b32.xlu0 %v3148_v0, %s3223_s13  ;;  %v3150_v3 = vpop.eup %3149 }
0x2551   :  { %v3152_v30 = vpop.eup %3151  ;;  %v1922_v26 = vadd.f32 1.0, %v3150_v3 }
0x2552   :  { %v1923_v61 = vadd.f32 1.0, %v3152_v30 }
0x2553   :  { %3153 = vrcp.f32 %v1922_v26 }
0x2554   :  { %3155 = vrcp.f32 %v1923_v61 }
0x255d   :  { %v3154_v42 = vpop.eup %3153 }
0x255e   :  { %v3156_v60 = vpop.eup %3155  ;;  %v1930_v23 = vmul.f32 %v3154_v42, %v1836_v7 }
0x255f   :  { %v1947_v15 = vmul.f32 %v3156_v60, %v1853_v47 }
0x25c1   :  { %v1933_v57 = vpop.permute.xlu1 %1932 }
0x25c2   :  { %v1935_v62 = vmul.f32 %v3154_v42, %v1933_v57  ;;  %v1950_v56 = vpop.permute.xlu0 %1949 }
0x25c3   :  { %v1952_v52 = vmul.f32 %v3156_v60, %v1950_v56 }
0x25c4   :  { %1937 = vrot.lane.b32.xlu1 %v1935_v62, %s3221_s19 }
0x25c5   :  { %1954 = vrot.lane.b32.xlu0 %v1952_v52, %s3221_s19 }
0x2636   :  { %v1938_v39 = vpop.permute.xlu1 %1937 }
0x2637   :  { %v1940_v50 = vadd.f32 %v1938_v39, %v1930_v23  ;;  %v1955_v45 = vpop.permute.xlu0 %1954 }
0x2638   :  { %v1957_v28 = vadd.f32 %v1955_v45, %v1947_v15 }
0x2639   :  { %3157 = vtanh.f32 %v1940_v50 }
0x263a   :  { %3159 = vtanh.f32 %v1957_v28 }
0x2643   :  { %v3158_v6 = vpop.eup %3157 }
0x2644   :  { %v3160_v17 = vpop.eup %3159  ;;  %1943 = vrot.lane.b32.xlu1 %v3158_v6, %s3223_s13 }
0x2645   :  { %1960 = vrot.lane.b32.xlu0 %v3160_v17, %s3223_s13 }
0x26b6   :  { %v1944_v36 = vpop.permute.xlu1 %1943 }
0x26b7   :  { %v1946_v24 = vmul.f32 %v3154_v42, %v1944_v36  ;;  %v1961_v44 = vpop.permute.xlu0 %1960 }
0x26b8   :  { %v1963_v43 = vmul.f32 %v3156_v60, %v1961_v44 }
0x26b9   :  { %1967 = vrot.lane.b32.xlu1 %v1946_v24, %s3221_s19 }
0x26ba   :  { %1971 = vrot.lane.b32.xlu0 %v1963_v43, %s3223_s13 }
0x272b   :  { %v3947_v13 = vpop.permute.xlu1 %1967 }
0x272c   :  { %v3949_v25 = vpop.permute.xlu0 %1971 }
0x272d   :  { %v1974_v46 = vsel %vm266_vm1, %v3947_v13, %v3949_v25 }
0x272e   :  { %v1975_v7 = vpack.c.bf16 %v1974_v46, %v1974_v46 }
0x2730   :  { %2825 = vmatmul.mubr.msk.bf16.vlgmr.msra.gmra.mrb[44].mxu0 %vm124_vm0, %v1975_v7 }
0x2803   :  { %v2013_v8 = vpop.f32.mrb[44].mxu0 }
0x2804   :  { %v2014_v47 = vadd.f32 %v2013_v8, %v3801_v49  ;;  %v2015_v16 = vpop.f32.mrb[45].mxu0 }
0x2805   :  { %v2016_v48 = vadd.f32 %v2015_v16, %v3782_v27  ;;  %v2017_v22 = vpop.f32.mrb[46].mxu0 }
0x2806   :  { %3161 = vtanh.f32 %v2014_v47  ;;  %v2018_v53 = vpop.f32.mrb[47].mxu0  ;;  %v2826_v14 = vmul.f32 -1.442695, %v2014_v47 }
0x2807   :  { %3163 = vtanh.f32 %v2016_v48  ;;  %v2827_v51 = vmul.f32 -1.442695, %v2016_v48 }
0x2808   :  { %3165 = vpow2.f32 %v2826_v14 }
0x2809   :  { %3167 = vpow2.f32 %v2827_v51 }
0x2810   :  { %v3162_v4 = vpop.eup %3161 }
0x2811   :  { %v3164_v18 = vpop.eup %3163  ;;  %2036 = vrot.lane.b32.xlu1 %v3162_v4, %s3223_s13 }
0x2812   :  { %2053 = vrot.lane.b32.xlu0 %v3164_v18, %s3223_s13  ;;  %v3166_v31 = vpop.eup %3165 }
0x2813   :  { %v3168_v32 = vpop.eup %3167  ;;  %v2026_v49 = vadd.f32 1.0, %v3166_v31 }
0x2814   :  { %v2027_v38 = vadd.f32 1.0, %v3168_v32 }
0x2815   :  { %3169 = vrcp.f32 %v2026_v49 }
0x2816   :  { %3171 = vrcp.f32 %v2027_v38 }
0x281f   :  { %v3170_v27 = vpop.eup %3169 }
0x2820   :  { %v3172_v37 = vpop.eup %3171  ;;  %v2034_v1 = vmul.f32 %v3170_v27, %v1940_v50 }
0x2821   :  { %v2051_v3 = vmul.f32 %v3172_v37, %v1957_v28 }
0x2883   :  { %v2037_v55 = vpop.permute.xlu1 %2036 }
0x2884   :  { %v2039_v9 = vmul.f32 %v3170_v27, %v2037_v55  ;;  %v2054_v10 = vpop.permute.xlu0 %2053  ;;  %v2934_v55 = vld [vmem:[%s4280_s5 + $0x8] sm:$0xff]  }
0x2885   :  { %v2056_v0 = vmul.f32 %v3172_v37, %v2054_v10 }
0x2886   :  { %2041 = vrot.lane.b32.xlu1 %v2039_v9, %s3221_s19 }
0x2887   :  { %2058 = vrot.lane.b32.xlu0 %v2056_v0, %s3221_s19  ;;  %v2936_v0 = vld [vmem:[%s4280_s5 + $0x18] sm:$0xff]  }
0x28f8   :  { %v2042_v2 = vpop.permute.xlu1 %2041 }
0x28f9   :  { %v2044_v30 = vadd.f32 %v2042_v2, %v2034_v1  ;;  %v2059_v26 = vpop.permute.xlu0 %2058 }
0x28fa   :  { %v2061_v61 = vadd.f32 %v2059_v26, %v2051_v3 }
0x28fb   :  { %3173 = vtanh.f32 %v2044_v30 }
0x28fc   :  { %3175 = vtanh.f32 %v2061_v61 }
0x2905   :  { %v3174_v42 = vpop.eup %3173 }
0x2906   :  { %v3176_v57 = vpop.eup %3175  ;;  %2047 = vrot.lane.b32.xlu1 %v3174_v42, %s3223_s13 }
0x2907   :  { %2064 = vrot.lane.b32.xlu0 %v3176_v57, %s3223_s13  ;;  %v2204_v57 = vsel %vm266_vm1, %v3947_v13, %v3870_v59 }
0x2978   :  { %v2048_v60 = vpop.permute.xlu1 %2047 }
0x2979   :  { %v2050_v62 = vmul.f32 %v3170_v27, %v2048_v60  ;;  %v2065_v56 = vpop.permute.xlu0 %2064  ;;  %v2933_v27 = vld [vmem:[%s4280_s5] sm:$0xff]  }
0x297a   :  { %v2067_v52 = vmul.f32 %v3172_v37, %v2065_v56  ;;  %2864 = vmatprep.subr.bf16.mxu0 %v2933_v27  ;;  %v2935_v37 = vld [vmem:[%s4280_s5 + $0x10] sm:$0xff]   ;;  %v2203_v56 = vsel %vm266_vm1, %v3921_v19, %v3897_v35 }
0x297b   :  { %2071 = vrot.lane.b32.xlu1 %v2050_v62, %s3221_s19  ;;  %2865 = vmatpush3.bf16.msra.mxu0 %v2933_v27 }
0x297c   :  { %2075 = vrot.lane.b32.xlu0 %v2067_v52, %s3223_s13  ;;  %2866 = vmatprep.subr.bf16.mxu0 %v2934_v55 }
0x297f   :  { %2867 = vmatpush3.bf16.msra.mxu0 %v2934_v55 }
0x2980   :  { %2868 = vmatprep.subr.bf16.mxu0 %v2935_v37 }
0x2983   :  { %2869 = vmatpush3.bf16.msra.mxu0 %v2935_v37 }
0x2984   :  { %2870 = vmatprep.subr.bf16.mxu0 %v2936_v0 }
0x2987   :  { %2871 = vmatpush3.bf16.msra.mxu0 %v2936_v0 }
0x29ed   :  { %v3965_v23 = vpop.permute.xlu1 %2071 }
0x29ee   :  { %v3967_v39 = vpop.permute.xlu0 %2075 }
0x29ef   :  { %v2078_v15 = vsel %vm266_vm1, %v3965_v23, %v3967_v39  ;;  %v2200_v60 = vsel %vm266_vm1, %v3841_v54, %v3967_v39  ;;  %v2205_v54 = vsel %vm266_vm1, %v3965_v23, %v3843_v11 }
0x29f0   :  { %v2079_v50 = vpack.c.bf16 %v2078_v15, %v2078_v15  ;;  %v2854_v15 = vpack.c.bf16 %v2204_v57, %v2203_v56 }
0x29f2   :  { %2828 = vmatmul.mubr.msk.bf16.vlgmr.msra.gmra.mrb[44].mxu1 %vm124_vm0, %v2079_v50 }
0x2ac5   :  { %v2117_v45 = vpop.f32.mrb[44].mxu1 }
0x2ac6   :  { %v2118_v28 = vadd.f32 %v2117_v45, %v3803_v63  ;;  %v2119_v6 = vpop.f32.mrb[45].mxu1 }
0x2ac7   :  { %v2120_v17 = vadd.f32 %v2119_v6, %v3777_v40  ;;  %v2121_v36 = vpop.f32.mrb[46].mxu1 }
0x2ac8   :  { %3177 = vtanh.f32 %v2118_v28  ;;  %v2122_v24 = vpop.f32.mrb[47].mxu1  ;;  %v2829_v46 = vmul.f32 -1.442695, %v2118_v28 }
0x2ac9   :  { %3179 = vtanh.f32 %v2120_v17  ;;  %v2830_v7 = vmul.f32 -1.442695, %v2120_v17 }
0x2aca   :  { %3181 = vpow2.f32 %v2829_v46 }
0x2acb   :  { %3183 = vpow2.f32 %v2830_v7 }
0x2ad2   :  { %v3178_v44 = vpop.eup %3177 }
0x2ad3   :  { %v3180_v43 = vpop.eup %3179  ;;  %2140 = vrot.lane.b32.xlu0 %v3178_v44, %s3223_s13 }
0x2ad4   :  { %2157 = vrot.lane.b32.xlu1 %v3180_v43, %s3223_s13  ;;  %v3182_v8 = vpop.eup %3181 }
0x2ad5   :  { %v3184_v47 = vpop.eup %3183  ;;  %v2130_v63 = vadd.f32 1.0, %v3182_v8 }
0x2ad6   :  { %v2131_v16 = vadd.f32 1.0, %v3184_v47 }
0x2ad7   :  { %3185 = vrcp.f32 %v2130_v63 }
0x2ad8   :  { %3187 = vrcp.f32 %v2131_v16 }
0x2ae1   :  { %v3186_v40 = vpop.eup %3185 }
0x2ae2   :  { %v3188_v22 = vpop.eup %3187  ;;  %v2138_v14 = vmul.f32 %v3186_v40, %v2044_v30 }
0x2ae3   :  { %v2155_v31 = vmul.f32 %v3188_v22, %v2061_v61  ;;  %v2201_v61 = vsel %vm266_vm1, %v3868_v58, %v3949_v25  ;;  %v2202_v58 = vsel %vm266_vm1, %v3895_v12, %v3923_v5  ;;  %v2835_v12 = vld [vmem:[%s4281_s6] ss:$0 sm:$0xff]  ;;  %s3225_s6 = smov 112  }
0x2ae4   :  { %v2853_v52 = vpack.c.bf16 %v2202_v58, %v2201_v61  ;;  %v2515_v61 = vadd.s32 16, %v3412_v33  ;;  %v2516_v58 = vadd.s32 24, %v3412_v33 }
0x2b45   :  { %v2141_v48 = vpop.permute.xlu0 %2140 }
0x2b46   :  { %v2143_v53 = vmul.f32 %v3186_v40, %v2141_v48  ;;  %v2158_v4 = vpop.permute.xlu1 %2157 }
0x2b47   :  { %v2160_v18 = vmul.f32 %v3188_v22, %v2158_v4 }
0x2b48   :  { %2145 = vrot.lane.b32.xlu0 %v2143_v53, %s3221_s19 }
0x2b49   :  { %2162 = vrot.lane.b32.xlu1 %v2160_v18, %s3221_s19 }
0x2bba   :  { %v2146_v51 = vpop.permute.xlu0 %2145 }
0x2bbb   :  { %v3979_v32 = vadd.f32 %v2146_v51, %v2138_v14  ;;  %v2163_v49 = vpop.permute.xlu1 %2162 }
0x2bbc   :  { %v3981_v38 = vadd.f32 %v2163_v49, %v2155_v31 }
0x2bbd   :  { %3189 = vtanh.f32 %v3979_v32 }
0x2bbe   :  { %3191 = vtanh.f32 %v3981_v38 }
0x2bc7   :  { %v3190_v9 = vpop.eup %3189 }
0x2bc8   :  { %v3192_v10 = vpop.eup %3191  ;;  %2151 = vrot.lane.b32.xlu0 %v3190_v9, %s3223_s13 }
0x2bc9   :  { %2168 = vrot.lane.b32.xlu1 %v3192_v10, %s3223_s13 }
0x2c3a   :  { %v2152_v1 = vpop.permute.xlu0 %2151 }
0x2c3b   :  { %v2154_v2 = vmul.f32 %v3186_v40, %v2152_v1  ;;  %v2169_v3 = vpop.permute.xlu1 %2168  ;;  %v2514_v1 = vadd.s32 8, %v3412_v33 }
0x2c3c   :  { %v3999_v30 = vmul.f32 %v3188_v22, %v2169_v3 }
0x2c3d   :  { %2173 = vrot.lane.b32.xlu0 %v2154_v2, %s3221_s19 }
0x2c3e   :  { %2196 = vrot.lane.b32.xlu1 %v3999_v30, %s3223_s13  ;;  %s3209_s13 = scalar_lea.hbm %s4286_s11, 16 }
0x2c3f   :  { %p3210_p0 = scmp.ne.s32.totalorder %s4286_s11, %s3209_s13  ;;  %p3213_p1 = scmp.lt.u32.totalorder %s3209_s13, %s4286_s11 }
0x2c41   :  { %p3215_p2 = pnand %p3213_p1, %p3210_p0 }
0x2caf   :  { %v2174_v26 = vpop.permute.xlu0 %2173 }
0x2cb0   :  { %2831 = vst.msk [vmem:[%s4284_s9 + $0x10] sm:$0xff] %vm266_vm1, %v2174_v26  ;;  %v2197_v42 = vpop.permute.xlu1 %2196 }
0x2cb1   :  { %v2199_v62 = vsel %vm266_vm1, %v3815_v41, %v2197_v42  ;;  %v2206_v41 = vsel %vm266_vm1, %v2174_v26, %v3817_v34  ;;  %v2525_v26 = vand.u32 7, %v3412_v33 }
0x2cb2   :  { %v2852_v25 = vpack.c.bf16 %v2200_v60, %v2199_v62  ;;  %v2855_v59 = vpack.c.bf16 %v2206_v41, %v2205_v54  ;;  %v2532_v62 = vand.u32 7, %v2514_v1 }
0x2cb3   :  { %vm4091_vm2 = vcmp.lt.s32.totalorder %v2525_v26, 2 }
0x2cb4   :  { %2872 = vmatprep.mubr.msk.bf16.mxu0 %vm124_vm0, %v2852_v25  ;;  %vm4102_vm3 = vcmp.lt.s32.totalorder %v2532_v62, 2  ;;  %v2378_v62 = vld [vmem:[%s4282_s7 + $0x18] sm:$0xff] }
0x2cb5   :  { %2873 = vmatmul.mubr.msk.bf16.vlgmr.msra.gmra.mrb[48].mxu0 %vm124_vm0, %v2853_v52 }
0x2cb6   :  { %2876 = vmatprep.mubr.msk.bf16.mxu0 %vm124_vm0, %v2854_v15 }
0x2cbd   :  { %2877 = vmatmul.mubr.msk.bf16.gmra.mrb[52].mxu0 %vm124_vm0, %v2855_v59  ;;  %v2539_v59 = vand.u32 7, %v2515_v61 }
0x2cbf   :  { %vm4113_vm4 = vcmp.lt.s32.totalorder %v2539_v59, 2 }
0x2d88   :  { %v2874_v35 = vpop.f32.mrb[48].mxu0 }
0x2d89   :  { %v2320_v19 = vpop.f32.mrb[49].mxu0  ;;  %v4039_v50 = vadd.f32 %v2874_v35, %v2835_v12 }
0x2d8a   :  { %v4037_v5 = vadd.f32 %v2835_v12, %v2320_v19  ;;  %v2875_v13 = vpop.f32.mrb[50].mxu0 }
0x2d8b   :  { %v2323_v39 = vpop.f32.mrb[51].mxu0  ;;  %v4045_v23 = vadd.f32 %v2875_v13, %v2835_v12  ;;  %v2450_v6 = vmul.f32 %v4039_v50, %v4039_v50  ;;  %v2353_v53 = vmul.f32 0.5, %v4039_v50 }
0x2d8c   :  { %v4041_v34 = vadd.f32 %v2835_v12, %v2323_v39  ;;  %v2448_v11 = vmul.f32 %v4037_v5, %v4037_v5  ;;  %v2351_v48 = vmul.f32 0.5, %v4037_v5  ;;  %v2440_v42 = vadd.f32 1.0, %v4037_v5 }
0x2d8d   :  { %v2451_v44 = vmul.f32 %v4045_v23, %v4045_v23  ;;  %v2354_v18 = vmul.f32 0.5, %v4045_v23  ;;  %v2363_v51 = vmul.f32 1.442695, %v2353_v53  ;;  %v2442_v39 = vadd.f32 1.0, %v4039_v50 }
0x2d8e   :  { %2464 = vrot.lane.b32.xlu1 %v2448_v11, %s3224_s30  ;;  %v2449_v45 = vmul.f32 %v4041_v34, %v4041_v34  ;;  %v2352_v22 = vmul.f32 0.5, %v4041_v34  ;;  %v2359_v4 = vmul.f32 1.442695, %v2351_v48  ;;  %v2441_v52 = vadd.f32 1.0, %v4041_v34 }
0x2d8f   :  { %v2365_v49 = vmul.f32 1.442695, %v2354_v18 }
0x2d90   :  { %2466 = vrot.lane.b32.xlu0 %v2449_v45, %s3224_s30  ;;  %v2878_v28 = vpop.f32.mrb[52].mxu0  ;;  %v2361_v14 = vmul.f32 1.442695, %v2352_v22  ;;  %3193 = vpow2.f32 %v2359_v4  ;;  %v2519_v4 = vadd.s32 48, %v3412_v33 }
0x2d91   :  { %v2336_v17 = vpop.f32.mrb[53].mxu0  ;;  %v4055_v46 = vadd.f32 %v2878_v28, %v2835_v12  ;;  %v2443_v28 = vadd.f32 1.0, %v4045_v23 }
0x2d92   :  { %v4051_v36 = vadd.f32 %v2835_v12, %v2336_v17  ;;  %2468 = vrot.lane.b32.xlu1 %v2450_v6, %s3224_s30  ;;  %v2879_v24 = vpop.f32.mrb[54].mxu0  ;;  %3195 = vpow2.f32 %v2361_v14  ;;  %v2546_v17 = vand.u32 7, %v2516_v58  ;;  %v2567_v58 = vand.u32 7, %v2519_v4 }
0x2d93   :  { %v2339_v43 = vpop.f32.mrb[55].mxu0  ;;  %v4061_v47 = vadd.f32 %v2879_v24, %v2835_v12  ;;  %v2454_v16 = vmul.f32 %v4055_v46, %v4055_v46  ;;  %3197 = vpow2.f32 %v2363_v51  ;;  %v2357_v55 = vmul.f32 0.5, %v4055_v46 }
0x2d94   :  { %v4057_v7 = vadd.f32 %v2835_v12, %v2339_v43  ;;  %2470 = vrot.lane.b32.xlu0 %v2451_v44, %s3224_s30  ;;  %v2452_v8 = vmul.f32 %v4051_v36, %v4051_v36  ;;  %v2355_v31 = vmul.f32 0.5, %v4051_v36  ;;  %3199 = vpow2.f32 %v2365_v49 }
0x2d95   :  { %v2455_v40 = vmul.f32 %v4061_v47, %v4061_v47  ;;  %v2358_v9 = vmul.f32 0.5, %v4061_v47  ;;  %v2371_v0 = vmul.f32 1.442695, %v2357_v55  ;;  %v2517_v12 = vadd.s32 32, %v3412_v33 }
0x2d96   :  { %2472 = vrot.lane.b32.xlu1 %v2452_v8, %s3224_s30  ;;  %v2453_v63 = vmul.f32 %v4057_v7, %v4057_v7  ;;  %v2356_v27 = vmul.f32 0.5, %v4057_v7  ;;  %v2367_v37 = vmul.f32 1.442695, %v2355_v31  ;;  %v2518_v24 = vadd.s32 40, %v3412_v33 }
0x2d97   :  { %v2373_v3 = vmul.f32 1.442695, %v2358_v9  ;;  %v2444_v48 = vadd.f32 1.0, %v4051_v36  ;;  %v2553_v53 = vand.u32 7, %v2517_v12  ;;  %v2445_v55 = vadd.f32 1.0, %v4057_v7 }
0x2d98   :  { %2474 = vrot.lane.b32.xlu0 %v2453_v63, %s3224_s30  ;;  %v2369_v10 = vmul.f32 1.442695, %v2356_v27  ;;  %3201 = vpow2.f32 %v2367_v37  ;;  %vm4124_vm5 = vcmp.lt.s32.totalorder %v2546_v17, 2  ;;  %v2560_v9 = vand.u32 7, %v2518_v24  ;;  %v2375_v37 = vld [vmem:[%s4282_s7] sm:$0xff] }
0x2d99   :  { %vm4133_vm6 = vcmp.lt.s32.totalorder %v2553_v53, 2  ;;  %v2447_v59 = vadd.f32 1.0, %v4061_v47  ;;  %vm2623_vm8 = vcmp.lt.s32.totalorder %v2567_v58, 2 }
0x2d9a   :  { %2476 = vrot.lane.b32.xlu1 %v2454_v16, %s3224_s30  ;;  %v4078_v2 = vpop.eup %3193  ;;  %3203 = vpow2.f32 %v2369_v10  ;;  %v2520_v10 = vadd.s32 56, %v3412_v33  ;;  %vm2622_vm7 = vcmp.lt.s32.totalorder %v2560_v9, 2 }
0x2d9b   :  { %3205 = vpow2.f32 %v2371_v0  ;;  %v2496_v56 = vmul.f32 %v4078_v2, %v4078_v2 }
0x2d9c   :  { %2478 = vrot.lane.b32.xlu0 %v2455_v40, %s3224_s30  ;;  %v4083_v57 = vpop.eup %3195  ;;  %3207 = vpow2.f32 %v2373_v3  ;;  %v2574_v12 = vand.u32 7, %v2520_v10 }
0x2d9d   :  { %v4089_v15 = vpop.eup %3197  ;;  %v2497_v19 = vmul.f32 %v4083_v57, %v4083_v57 }
0x2d9e   :  { %v4099_v11 = vpop.eup %3199  ;;  %v2498_v43 = vmul.f32 %v4089_v15, %v4089_v15  ;;  %vm2624_vm9 = vcmp.lt.s32.totalorder %v2574_v12, 2  ;;  %v2381_v12 = vld [vmem:[%s4282_s7 + $0x30] sm:$0xff] }
0x2d9f   :  { %v2499_v14 = vmul.f32 %v4099_v11, %v4099_v11 }
0x2da2   :  { %v3202_v16 = vpop.eup %3201 }
0x2da3   :  { %v2500_v3 = vmul.f32 %v3202_v16, %v3202_v16 }
0x2da4   :  { %v3204_v49 = vpop.eup %3203 }
0x2da5   :  { %v3206_v61 = vpop.eup %3205 }
0x2e00   :  { %v2465_v60 = vpop.permute.xlu1 %2464 }
0x2e01   :  { %v2488_v25 = vsub.f32 %v2440_v42, %v2465_v60  ;;  %v2446_v60 = vadd.f32 1.0, %v4055_v46 }
0x2e02   :  { %v2467_v41 = vpop.permute.xlu0 %2466 }
0x2e03   :  { %v2504_v35 = vsub.f32 %v2488_v25, %v2496_v56  ;;  %v2489_v13 = vsub.f32 %v2441_v52, %v2467_v41  ;;  %v2501_v56 = vmul.f32 %v3204_v49, %v3204_v49  ;;  %v3208_v41 = vpop.eup %3207 }
0x2e04   :  { %v2469_v45 = vpop.permute.xlu1 %2468  ;;  %v2503_v6 = vmul.f32 %v3208_v41, %v3208_v41 }
0x2e05   :  { %v2505_v44 = vsub.f32 %v2489_v13, %v2497_v19  ;;  %v2490_v8 = vsub.f32 %v2442_v39, %v2469_v45  ;;  %v2625_v63 = vsel %vm4091_vm2, %v2504_v35, 0.0  ;;  %v2502_v19 = vmul.f32 %v3206_v61, %v3206_v61 }
0x2e06   :  { %2641 = vrot.lane.b32.xlu1 %v2625_v63, %s3225_s6  ;;  %v2471_v40 = vpop.permute.xlu0 %2470 }
0x2e07   :  { %v2506_v18 = vsub.f32 %v2490_v8, %v2498_v43  ;;  %v2491_v51 = vsub.f32 %v2443_v28, %v2471_v40  ;;  %v2626_v31 = vsel %vm4102_vm3, %v2505_v44, 0.0 }
0x2e08   :  { %v2473_v27 = vpop.permute.xlu1 %2472  ;;  %2643 = vrot.lane.b32.xlu0 %v2626_v31, %s3225_s6 }
0x2e09   :  { %v2507_v0 = vsub.f32 %v2491_v51, %v2499_v14  ;;  %v2492_v1 = vsub.f32 %v2444_v48, %v2473_v27  ;;  %v2627_v26 = vsel %vm4113_vm4, %v2506_v18, 0.0 }
0x2e0a   :  { %2645 = vrot.lane.b32.xlu1 %v2627_v26, %s3225_s6  ;;  %v2475_v42 = vpop.permute.xlu0 %2474 }
0x2e0b   :  { %v2508_v25 = vsub.f32 %v2492_v1, %v2500_v3  ;;  %v2493_v33 = vsub.f32 %v2445_v55, %v2475_v42  ;;  %v2628_v52 = vsel %vm4124_vm5, %v2507_v0, 0.0  ;;  %v2376_v0 = vld [vmem:[%s4282_s7 + $0x8] sm:$0xff] }
0x2e0c   :  { %v2477_v54 = vpop.permute.xlu1 %2476  ;;  %2647 = vrot.lane.b32.xlu0 %v2628_v52, %s3225_s6 }
0x2e0d   :  { %v2509_v35 = vsub.f32 %v2493_v33, %v2501_v56  ;;  %v2494_v13 = vsub.f32 %v2446_v60, %v2477_v54  ;;  %v2629_v39 = vsel %vm4133_vm6, %v2508_v25, 0.0  ;;  %v2379_v56 = vld [vmem:[%s4282_s7 + $0x20] sm:$0xff] }
0x2e0e   :  { %2649 = vrot.lane.b32.xlu1 %v2629_v39, %s3225_s6  ;;  %v2479_v45 = vpop.permute.xlu0 %2478 }
0x2e0f   :  { %v2510_v28 = vsub.f32 %v2494_v13, %v2502_v19  ;;  %v2495_v17 = vsub.f32 %v2447_v59, %v2479_v45  ;;  %v2630_v24 = vsel %vm2622_vm7, %v2509_v35, 0.0  ;;  %v2382_v19 = vld [vmem:[%s4282_s7 + $0x38] sm:$0xff] }
0x2e10   :  { %2651 = vrot.lane.b32.xlu0 %v2630_v24, %s3225_s6 }
0x2e11   :  { %v2511_v44 = vsub.f32 %v2495_v17, %v2503_v6  ;;  %v2631_v43 = vsel %vm2623_vm8, %v2510_v28, 0.0 }
0x2e12   :  { %2653 = vrot.lane.b32.xlu1 %v2631_v43, %s3225_s6 }
0x2e13   :  { %v2632_v8 = vsel %vm2624_vm9, %v2511_v44, 0.0 }
0x2e14   :  { %2655 = vrot.lane.b32.xlu0 %v2632_v8, %s3225_s6 }
0x2e18   :  { %2391 = vrot.lane.b32.xlu0 %v4078_v2, %s3225_s6 }
0x2e1c   :  { %2393 = vrot.lane.b32.xlu0 %v4083_v57, %s3225_s6 }
0x2e20   :  { %2395 = vrot.lane.b32.xlu0 %v4089_v15, %s3225_s6 }
0x2e24   :  { %2397 = vrot.lane.b32.xlu0 %v4099_v11, %s3225_s6 }
0x2e28   :  { %2399 = vrot.lane.b32.xlu0 %v3202_v16, %s3225_s6 }
0x2e2c   :  { %2401 = vrot.lane.b32.xlu0 %v3204_v49, %s3225_s6 }
0x2e30   :  { %2403 = vrot.lane.b32.xlu0 %v3206_v61, %s3225_s6  ;;  %v2377_v61 = vld [vmem:[%s4282_s7 + $0x10] sm:$0xff] }
0x2e34   :  { %2405 = vrot.lane.b32.xlu0 %v3208_v41, %s3225_s6  ;;  %v2380_v41 = vld [vmem:[%s4282_s7 + $0x28] sm:$0xff] }
0x2e38   :  { %1101 = vrot.lane.b32.xlu0 %v3690_v20, %s3226_s12 }
0x2e3c   :  { %1112 = vrot.lane.b32.xlu0 %v3692_v29, %s3226_s12 }
0x2e40   :  { %2179 = vrot.lane.b32.xlu0 %v3979_v32, %s3226_s12 }
0x2e44   :  { %2185 = vrot.lane.b32.xlu0 %v3999_v30, %s3221_s19 }
0x2e48   :  { %2191 = vrot.lane.b32.xlu0 %v3981_v38, %s3226_s12 }
0x2e78   :  { %v2642_v2 = vpop.permute.xlu1 %2641 }
0x2e79   :  { %v2665_v15 = vsel %vm2431_vm10, %v2642_v2, 0.0 }
0x2e7a   :  { %v2644_v57 = vpop.permute.xlu0 %2643 }
0x2e7b   :  { %v2666_v11 = vsel %vm2431_vm10, %v2644_v57, 0.0 }
0x2e7c   :  { %v2667_v63 = vadd.f32 %v2666_v11, %v2665_v15  ;;  %v2646_v16 = vpop.permute.xlu1 %2645 }
0x2e7d   :  { %v2668_v20 = vsel %vm2431_vm10, %v2646_v16, 0.0 }
0x2e7e   :  { %v2669_v40 = vadd.f32 %v2668_v20, %v2667_v63  ;;  %v2648_v29 = vpop.permute.xlu0 %2647 }
0x2e7f   :  { %v2670_v32 = vsel %vm2431_vm10, %v2648_v29, 0.0 }
0x2e80   :  { %v2671_v48 = vadd.f32 %v2670_v32, %v2669_v40  ;;  %v2650_v22 = vpop.permute.xlu1 %2649 }
0x2e81   :  { %v2672_v30 = vsel %vm2431_vm10, %v2650_v22, 0.0 }
0x2e82   :  { %v2673_v38 = vadd.f32 %v2672_v30, %v2671_v48  ;;  %v2652_v53 = vpop.permute.xlu0 %2651 }
0x2e83   :  { %v2674_v4 = vsel %vm2431_vm10, %v2652_v53, 0.0 }
0x2e84   :  { %v2675_v18 = vadd.f32 %v2674_v4, %v2673_v38  ;;  %v2654_v14 = vpop.permute.xlu1 %2653 }
0x2e85   :  { %v2676_v51 = vsel %vm2431_vm10, %v2654_v14, 0.0 }
0x2e86   :  { %v2677_v31 = vadd.f32 %v2676_v51, %v2675_v18  ;;  %v2656_v49 = vpop.permute.xlu0 %2655 }
0x2e87   :  { %v2678_v27 = vsel %vm2431_vm10, %v2656_v49, 0.0 }
0x2e88   :  { %v2679_v55 = vadd.f32 %v2678_v27, %v2677_v31 }
0x2e8a   :  { %2680 = vadd.xlane.f32.xlu1 %v2679_v55  ;;  %v2392_v9 = vpop.permute.xlu0 %2391 }
0x2e8b   :  { %v2415_v10 = vmul.f32 %v2392_v9, %v2375_v37 }
0x2e8d   :  { %v2423_v1 = vadd.f32 %v2415_v10, %v4037_v5 }
0x2e8e   :  { %v2394_v3 = vpop.permute.xlu0 %2393 }
0x2e8f   :  { %2432 = vst.msk [vmem:[%s4283_s8] sm:$0xff] %vm2431_vm10, %v2423_v1  ;;  %v2416_v26 = vmul.f32 %v2394_v3, %v2376_v0 }
0x2e91   :  { %v2424_v42 = vadd.f32 %v2416_v26, %v4041_v34 }
0x2e92   :  { %v2396_v60 = vpop.permute.xlu0 %2395 }
0x2e93   :  { %2433 = vst.msk [vmem:[%s4283_s8 + $0x8] sm:$0xff] %vm2431_vm10, %v2424_v42  ;;  %v2417_v5 = vmul.f32 %v2396_v60, %v2377_v61 }
0x2e95   :  { %v2425_v58 = vadd.f32 %v2417_v5, %v4039_v50 }
0x2e96   :  { %v2398_v25 = vpop.permute.xlu0 %2397 }
0x2e97   :  { %2434 = vst.msk [vmem:[%s4283_s8 + $0x10] sm:$0xff] %vm2431_vm10, %v2425_v58  ;;  %v2418_v34 = vmul.f32 %v2398_v25, %v2378_v62 }
0x2e99   :  { %v2426_v33 = vadd.f32 %v2418_v34, %v4045_v23 }
0x2e9a   :  { %v2400_v52 = vpop.permute.xlu0 %2399 }
0x2e9b   :  { %2435 = vst.msk [vmem:[%s4283_s8 + $0x18] sm:$0xff] %vm2431_vm10, %v2426_v33  ;;  %v2419_v50 = vmul.f32 %v2400_v52, %v2379_v56  ;;  %1106 = vrot.lane.b32.xlu1 %v3723_v21, %s3221_s19 }
0x2e9d   :  { %v2427_v54 = vadd.f32 %v2419_v50, %v4051_v36 }
0x2e9e   :  { %v2402_v59 = vpop.permute.xlu0 %2401 }
0x2e9f   :  { %2436 = vst.msk [vmem:[%s4283_s8 + $0x20] sm:$0xff] %vm2431_vm10, %v2427_v54  ;;  %v2420_v23 = vmul.f32 %v2402_v59, %v2380_v41 }
0x2ea1   :  { %v2428_v35 = vadd.f32 %v2420_v23, %v4057_v7 }
0x2ea2   :  { %v2404_v21 = vpop.permute.xlu0 %2403 }
0x2ea3   :  { %2437 = vst.msk [vmem:[%s4283_s8 + $0x28] sm:$0xff] %vm2431_vm10, %v2428_v35  ;;  %v2421_v36 = vmul.f32 %v2404_v21, %v2381_v12 }
0x2ea5   :  { %v2429_v13 = vadd.f32 %v2421_v36, %v4055_v46 }
0x2ea6   :  { %v2406_v39 = vpop.permute.xlu0 %2405 }
0x2ea7   :  { %2438 = vst.msk [vmem:[%s4283_s8 + $0x30] sm:$0xff] %vm2431_vm10, %v2429_v13  ;;  %v2422_v7 = vmul.f32 %v2406_v39, %v2382_v19 }
0x2ea9   :  { %v2430_v45 = vadd.f32 %v2422_v7, %v4061_v47 }
0x2eaa   :  { %v1102_v28 = vpop.permute.xlu0 %1101 }
0x2eab   :  { %2439 = vst.msk [vmem:[%s4283_s8 + $0x38] sm:$0xff] %vm2431_vm10, %v2430_v45 }
0x2eac   :  { %1104 = vst.msk [vmem:[%s4285_s10] sm:$0xff] %vm266_vm1, %v1102_v28 }
0x2eae   :  { %v1113_v46 = vpop.permute.xlu0 %1112 }
0x2eaf   :  { %2769 = vst.msk [vmem:[%s4285_s10 + $0x8] sm:$0xff] %vm266_vm1, %v1113_v46 }
0x2eb2   :  { %v2180_v6 = vpop.permute.xlu0 %2179 }
0x2eb3   :  { %2832 = vst.msk [vmem:[%s4285_s10 + $0x10] sm:$0xff] %vm266_vm1, %v2180_v6 }
0x2eb6   :  { %v2186_v47 = vpop.permute.xlu0 %2185 }
0x2eb7   :  { %2833 = vst.msk [vmem:[%s4284_s9 + $0x18] sm:$0xff] %vm266_vm1, %v2186_v47 }
0x2eba   :  { %v2192_v17 = vpop.permute.xlu0 %2191 }
0x2ebb   :  { %2834 = vst.msk [vmem:[%s4285_s10 + $0x18] sm:$0xff] %vm266_vm1, %v2192_v17 }
0x2f17   :  { %v2681_v24 = vpop.xlane.xlu1 %2680 }
0x2f18   :  { %v2682_v44 = vrot.slane %v2681_v24, 4 }
0x2f1a   :  { %v2683_v43 = vadd.f32 %v2682_v44, %v2681_v24 }
0x2f1b   :  { %v1107_v8 = vpop.permute.xlu1 %1106 }
0x2f1c   :  { %v2684_v2 = vrot.slane %v2683_v43, 2  ;;  %2768 = vst.msk [vmem:[%s4284_s9 + $0x8] sm:$0xff] %vm266_vm1, %v1107_v8 }
0x2f1e   :  { %v2685_v57 = vadd.f32 %v2684_v2, %v2683_v43 }
0x2f20   :  { %v2686_v15 = vrot.slane %v2685_v57, 1 }
0x2f22   :  { %v2687_v11 = vadd.f32 %v2686_v15, %v2685_v57 }
0x2f24   :  { %2888 = vpush %v2687_v11 }
0x2f55   :  { %s2889_s26 = spop %2888 }
0x2f56   :  { %s2689_s27 = smul.f32 -0.5, %s2889_s26 }
0x2f58   :  { %s2692_s28 = smul.f32 0.00390625, %s2689_s27 }
0x2f5a   :  { %2694 = sst [smem:[#allocation3]] %s2692_s28 }
0x2f5b   :  { %3218 = shalt.err (!%p3215_p2)
}
0x2f5c   :  { %s3227_s9 = smov [#allocation3]  }
0x2f5d   :  { %2708 = dma.smem_to_hbm %s3227_s9, 16, %s4286_s11, [#allocation4]  }
0x2f5e   :  { %3219 = dma.done.wait [#allocation4], 16  }
0x2f5f   :  { %3220 = vsyncadd [#allocation4], 4294967280 }
0x2f60   :  { %2718 = sfence }
0x2f61   :  { %2719 = vsyncpa [#allocation4], 1 }

</bundles_post_ra>
